<compile_context>
chip_gen: v7x
topology: tpu7x:2x2x1
jax: 0.10.0
libtpu: 0.0.40
codegen_flags: <defaults>
</compile_context>

<pallas_src>
import functools

import jax
import jax.numpy as jnp
from jax.experimental import pallas as pl
from jax.experimental.pallas import tpu as pltpu

C = 32                     # channel count fixed by the PyTorch module
HALO = 4                   # rows per halo block (3 needed for fp, 2 for dm)
MXU_DTYPE = jnp.bfloat16   # matmul input dtype (accumulation stays f32)

_SOBEL_X = ((-1.0, 0.0, 1.0), (-2.0, 0.0, 2.0), (-1.0, 0.0, 1.0))
_SOBEL_Y = ((-1.0, -2.0, -1.0), (0.0, 0.0, 0.0), (1.0, 2.0, 1.0))


# ---------------------------------------------------------------------------
# in-kernel helpers (pure functions of loaded values)
# ---------------------------------------------------------------------------
def _reflect_cols(x):
    """(R, W, Cany) -> (R, W+2, Cany) with ReflectionPad2d(1) columns."""
    w = x.shape[1]
    return jnp.concatenate([x[:, 1:2], x, x[:, w - 2:w - 1]], axis=1)


def _zero_cols(x):
    """(R, W, C) -> (R, W+2, C) with zero columns (Sobel conv padding=1)."""
    z = jnp.zeros_like(x[:, :1])
    return jnp.concatenate([z, x, z], axis=1)


def _fix_inner_rows(x, is_top, is_bot):
    """Image-boundary reflection fix for a slab covering rows [start-2, end+2).

    Slab row 1 is image row -1 (top tile) and slab row R-2 is image row H
    (bottom tile); replace them with the ReflectionPad2d(1) rows (image rows
    1 / H-2, i.e. slab rows 3 / R-4).  Interior tiles pass through unchanged.
    """
    r = x.shape[0]
    top = jnp.where(is_top, x[3:4], x[1:2])
    bot = jnp.where(is_bot, x[r - 4:r - 3], x[r - 2:r - 1])
    return jnp.concatenate([x[0:1], top, x[2:r - 2], bot, x[r - 1:r]], axis=0)


def _fix_outer_rows(x, is_top, is_bot):
    """Same fix for a slab covering rows [start-1, end+1) (R = th+2)."""
    r = x.shape[0]
    top = jnp.where(is_top, x[2:3], x[0:1])
    bot = jnp.where(is_bot, x[r - 3:r - 2], x[r - 1:r])
    return jnp.concatenate([top, x[1:r - 1], bot], axis=0)


def _conv3x3(xp, w_ref, bias, out_rows, w_img):
    """3x3 conv of an already padded slab via 3 accumulating MXU matmuls.

    xp:    (out_rows+2, W+2, Cin_total) padded f32 slab (Cin_total is C for a
           single input, 2C when two inputs are channel-concatenated).
    w_ref: (3, 3*Cin_total, C) per-kernel-row weights, dx-major / ci-minor.
    The per-row patch is cast to bf16 right before the dot (no full 9C/18C
    im2col matrix is ever materialized); accumulation is f32.
    """
    cin = xp.shape[-1]
    acc = jnp.zeros((out_rows * w_img, C), jnp.float32)
    for dy in range(3):                                   # static unroll
        taps = [xp[dy:dy + out_rows, dx:dx + w_img, :] for dx in range(3)]
        pat = jnp.concatenate(taps, axis=-1).astype(w_ref.dtype)
        acc = acc + jnp.dot(pat.reshape(out_rows * w_img, 3 * cin), w_ref[dy],
                            preferred_element_type=jnp.float32)
    return (acc + bias).reshape(out_rows, w_img, C)


# ---------------------------------------------------------------------------
# the fused kernel
# ---------------------------------------------------------------------------
def _egdu_fused_kernel(fp_ref, fpu_ref, fpd_ref, dm_ref, dmu_ref, dmd_ref,
                       w3_ref, b3_ref, w1_ref, b1_ref, w24_ref, b24_ref,
                       o_ref):
    i = pl.program_id(1)
    is_top = i == 0
    is_bot = i == pl.num_programs(1) - 1
    _, th, w, c = o_ref.shape

    # ---- assemble fea_pan rows [start-3, end+3); rows outside the image are
    # zero (the Sobel conv uses zero padding).  Halo rows come from the 4-row
    # blocks above/below the tile (clamped index maps at the image boundary).
    fp = fp_ref[0]                                        # (th, W, C)
    z3 = jnp.zeros((3, w, c), jnp.float32)
    top3 = jnp.where(is_top, z3, fpu_ref[0][HALO - 3:])   # rows start-3..start-1
    bot3 = jnp.where(is_bot, z3, fpd_ref[0][:3])          # rows end..end+2
    fpx = jnp.concatenate([top3, fp, bot3], axis=0)       # (th+6, W, C)

    # ---- separable Sobel -> edge rows [start-2, end+2)   (th+4, W, C)
    fpz = _zero_cols(fpx)                                 # (th+6, W+2, C)
    gx = fpz[:, 2:w + 2, :] - fpz[:, 0:w, :]              # column diff
    gb = fpz[:, 2:w + 2, :] + 2.0 * fpz[:, 1:w + 1, :] + fpz[:, 0:w, :]
    r = th + 4
    ex = gx[0:r] + 2.0 * gx[1:r + 1] + gx[2:r + 2]        # row blur
    ey = gb[2:r + 2] - gb[0:r]                            # row diff
    edge = 0.5 * jnp.abs(ex) + 0.5 * jnp.abs(ey)
    # the reference's 1/|max(fea_pan)| scale is folded into w3 by the wrapper

    # ---- conv3(edge) on rows [start-1, end+1)            (th+2, W, C)
    edge = _fix_inner_rows(edge, is_top, is_bot)          # image reflect rows
    conv3 = _conv3x3(_reflect_cols(edge), w3_ref, b3_ref[...], th + 2, w)

    # ---- conv1(dis_map) == "bicubic" on rows [start-1, end+1)
    # (F.interpolate(scale_factor=1, bicubic, align_corners=True) is identity)
    dmx = jnp.concatenate([dmu_ref[0][HALO - 2:], dm_ref[0], dmd_ref[0][:2]],
                          axis=0)                         # (th+4, W, C)
    dmx = _fix_inner_rows(dmx, is_top, is_bot)
    bicubic = _conv3x3(_reflect_cols(dmx), w1_ref, b1_ref[...], th + 2, w)

    # ---- out = conv2(bicubic) + conv4(conv3 * bicubic) + conv3
    conv3 = _fix_outer_rows(conv3, is_top, is_bot)
    bicubic = _fix_outer_rows(bicubic, is_top, is_bot)
    both = jnp.concatenate([bicubic, conv3 * bicubic], axis=-1)  # (th+2,W,2C)
    y = _conv3x3(_reflect_cols(both), w24_ref, b24_ref[...], th, w)
    o_ref[0] = (y + conv3[1:th + 1]).astype(o_ref.dtype)


# ---------------------------------------------------------------------------
# sizing helpers (generation-aware)
# ---------------------------------------------------------------------------
def _tpu_vmem_bytes():
    try:
        return int(pltpu.get_tpu_info().vmem_capacity_bytes)
    except Exception:
        return 128 * 1024 * 1024


def _sizing():
    cap = _tpu_vmem_bytes()
    vmem_limit = min(48 * 1024 * 1024, (5 * cap) // 8)      # v7x: ~40 MiB
    tile_target = 256 * 1024 if cap <= 64 * 1024 * 1024 else 512 * 1024
    return vmem_limit, tile_target


def _pick_row_tile(h, w_img, n_batch, tile_target):
    """Largest multiple-of-4 divisor of H whose f32 main tile <= target, while
    keeping >= 2 grid blocks in total when possible (both v7x TensorCores)."""
    if h % HALO != 0:
        return h                                            # single tile
    max_rows = max(HALO, tile_target // (w_img * C * 4))
    divs = [d for d in range(HALO, h + 1, HALO) if h % d == 0]
    fit = [d for d in divs if d <= max_rows] or [HALO]
    best = max(fit)
    if n_batch * (h // best) < 2:
        smaller = [d for d in fit if h // d >= 2]
        if smaller:
            best = max(smaller)
    return best


# ---------------------------------------------------------------------------
# parameters (deterministic, PyTorch-Conv2d-like init ranges)
# ---------------------------------------------------------------------------
def init_params(key):
    """Weight layout: (kh, kw, Cin, Cout).  A PyTorch Conv2d weight
    (Cout, Cin, kh, kw) maps onto this via transpose(2, 3, 1, 0)."""
    params = {}
    fan_in = C * 3 * 3
    bound = (1.0 / fan_in) ** 0.5
    for i, name in enumerate(("conv1", "conv2", "conv3", "conv4")):
        kw_, kb = jax.random.split(jax.random.fold_in(key, i))
        wgt = jax.random.uniform(kw_, (3, 3, C, C), jnp.float32, -bound, bound)
        bias = jax.random.uniform(kb, (1, C), jnp.float32, -bound, bound)
        params[name] = (wgt, bias)
    return params


# ---------------------------------------------------------------------------
# full EGDU forward (inputs / output in PyTorch NCHW)
# ---------------------------------------------------------------------------
def egdu_forward(fea_pan_nchw, dis_map_nchw, params, row_tile=None):
    fp = jnp.transpose(fea_pan_nchw, (0, 2, 3, 1)).astype(jnp.float32)  # NHWC
    dm = jnp.transpose(dis_map_nchw, (0, 2, 3, 1)).astype(jnp.float32)
    n, h, w, c = fp.shape
    if c != C or h < 4 or w < 2:
        raise ValueError("EGDU kernel expects 32 channels, H >= 4, W >= 2")

    vmem_limit, tile_target = _sizing()
    if row_tile is None:
        row_tile = _pick_row_tile(h, w, n, tile_target)
    if h % row_tile != 0:
        raise ValueError("row_tile must divide H")
    num_tiles = h // row_tile
    if num_tiles > 1 and row_tile % HALO != 0:
        raise ValueError("row_tile must be a multiple of 4 when H is tiled")

    # global max via a plain XLA reduction, folded into the conv3 weights
    # (Sobel is linear, |.| positively homogeneous; max == 0 -> inf like ref).
    inv_max = 1.0 / jnp.abs(jnp.max(fp))

    w1, b1 = params["conv1"]
    w2, b2 = params["conv2"]
    w3, b3 = params["conv3"]
    w4, b4 = params["conv4"]
    # per-kernel-row weights: (3, 3*Cin, Cout), dx-major / ci-minor
    w1r = w1.reshape(3, 3 * C, C).astype(MXU_DTYPE)
    w3r = (w3 * inv_max).reshape(3, 3 * C, C).astype(MXU_DTYPE)
    # fused conv2||conv4: per dx the K slots are [bicubic C, (conv3*bic) C]
    w24r = jnp.concatenate([w2, w4], axis=2).reshape(3, 6 * C, C).astype(MXU_DTYPE)
    b1f = b1.astype(jnp.float32)
    b3f = b3.astype(jnp.float32)
    b24 = (b2 + b4).astype(jnp.float32)

    bpt = max(row_tile // HALO, 1)            # 4-row halo blocks per tile
    nblk4 = (h + HALO - 1) // HALO
    main = pl.BlockSpec((1, row_tile, w, C), lambda nn, i: (nn, i, 0, 0))
    up = pl.BlockSpec((1, HALO, w, C),
                      lambda nn, i: (nn, jnp.maximum(i * bpt - 1, 0), 0, 0))
    dn = pl.BlockSpec((1, HALO, w, C),
                      lambda nn, i: (nn, jnp.minimum((i + 1) * bpt, nblk4 - 1),
                                     0, 0))
    cst = lambda shape: pl.BlockSpec(shape, lambda nn, i: (0,) * len(shape))

    out = pl.pallas_call(
        _egdu_fused_kernel,
        out_shape=jax.ShapeDtypeStruct((n, h, w, C), jnp.float32),
        grid=(n, num_tiles),
        in_specs=[main, up, dn,                     # fea_pan tile + halos
                  main, up, dn,                     # dis_map tile + halos
                  cst(w3r.shape), cst(b3f.shape),
                  cst(w1r.shape), cst(b1f.shape),
                  cst(w24r.shape), cst(b24.shape)],
        out_specs=pl.BlockSpec((1, row_tile, w, C), lambda nn, i: (nn, i, 0, 0)),
        compiler_params=pltpu.CompilerParams(
            dimension_semantics=("parallel", "parallel"),
            vmem_limit_bytes=vmem_limit),
    )(fp, fp, fp, dm, dm, dm, w3r, b3f, w1r, b1f, w24r, b24)

    return jnp.transpose(out, (0, 3, 1, 2))            # back to NCHW


# ---------------------------------------------------------------------------
# pure-JAX f32 reference (loose-tolerance self check only)
# ---------------------------------------------------------------------------
def _conv3x3_ref(x, wgt, bias):
    xp = jnp.pad(x, ((0, 0), (1, 1), (1, 1), (0, 0)), mode="reflect")
    h, w = x.shape[1], x.shape[2]
    acc = jnp.zeros(x.shape[:3] + (wgt.shape[-1],), jnp.float32)
    for dy in range(3):
        for dx in range(3):
            acc = acc + jnp.einsum("nhwc,co->nhwo",
                                   xp[:, dy:dy + h, dx:dx + w, :], wgt[dy, dx])
    return acc + bias.reshape(1, 1, 1, -1)


def _sobel_ref(x):
    xp = jnp.pad(x, ((0, 0), (1, 1), (1, 1), (0, 0)))
    h, w = x.shape[1], x.shape[2]
    ex = jnp.zeros_like(x)
    ey = jnp.zeros_like(x)
    for dy in range(3):
        for dx in range(3):
            patch = xp[:, dy:dy + h, dx:dx + w, :]
            ex = ex + _SOBEL_X[dy][dx] * patch
            ey = ey + _SOBEL_Y[dy][dx] * patch
    return 0.5 * jnp.abs(ex) + 0.5 * jnp.abs(ey)


def egdu_reference(fea_pan_nchw, dis_map_nchw, params):
    fp = jnp.transpose(fea_pan_nchw, (0, 2, 3, 1)).astype(jnp.float32)
    dm = jnp.transpose(dis_map_nchw, (0, 2, 3, 1)).astype(jnp.float32)
    fp = fp / jnp.max(fp)
    edge = _sobel_ref(fp)
    conv3 = _conv3x3_ref(edge, *params["conv3"])
    bicubic = _conv3x3_ref(dm, *params["conv1"])
    conv2 = _conv3x3_ref(bicubic, *params["conv2"])
    conv4 = _conv3x3_ref(conv3 * bicubic, *params["conv4"])
    return jnp.transpose(conv2 + conv3 + conv4, (0, 3, 1, 2))


if __name__ == "__main__":
    key = jax.random.PRNGKey(0)
    k1, k2, k3 = jax.random.split(key, 3)
    N, H, W = 2, 16, 16
    fea_pan = jax.random.normal(k1, (N, C, H, W), jnp.float32)
    dis_map = jax.random.normal(k2, (N, C, H, W), jnp.float32)
    params = init_params(k3)

    ref = egdu_reference(fea_pan, dis_map, params)

    # row_tile=8 exercises the multi-tile halo path; None uses the auto sizing
    # (single tile per batch image, is_top & is_bot both true).
    for rt in (8, None):
        fwd = jax.jit(functools.partial(egdu_forward, row_tile=rt))
        out = fwd(fea_pan, dis_map, params)
        jax.block_until_ready(out)
        assert out.shape == (N, C, H, W), out.shape
        max_err = float(jnp.max(jnp.abs(out - ref)))
        # loose tolerance: the kernel uses a bf16 MXU path with f32 accumulation
        assert max_err < 5e-2, (rt, max_err)

    print("KERNEL_OK")
</pallas_src>

<mosaic_0001>
module attributes {stable_mosaic.version = 11 : i64} {
  func.func @_egdu_fused_kernel(%arg0: i32, %arg1: i32, %arg2: memref<1x8x16x32xf32, #tpu.memory_space<vmem>>, %arg3: memref<1x4x16x32xf32, #tpu.memory_space<vmem>>, %arg4: memref<1x4x16x32xf32, #tpu.memory_space<vmem>>, %arg5: memref<1x8x16x32xf32, #tpu.memory_space<vmem>>, %arg6: memref<1x4x16x32xf32, #tpu.memory_space<vmem>>, %arg7: memref<1x4x16x32xf32, #tpu.memory_space<vmem>>, %arg8: memref<3x96x32xbf16, #tpu.memory_space<vmem>>, %arg9: memref<1x32xf32, #tpu.memory_space<vmem>>, %arg10: memref<3x96x32xbf16, #tpu.memory_space<vmem>>, %arg11: memref<1x32xf32, #tpu.memory_space<vmem>>, %arg12: memref<3x192x32xbf16, #tpu.memory_space<vmem>>, %arg13: memref<1x32xf32, #tpu.memory_space<vmem>>, %arg14: memref<1x8x16x32xf32, #tpu.memory_space<vmem>>) attributes {dimension_semantics = [#tpu.dimension_semantics<parallel>, #tpu.dimension_semantics<parallel>], iteration_bounds = array<i64: 2, 2>, scalar_prefetch = 0 : i64, scratch_operands = 0 : i64, tpu.core_type = #tpu.core_type<tc>, window_params = [{transform_indices = @transform_0, window_bounds = array<i64: 1, 8, 16, 32>}, {transform_indices = @transform_1, window_bounds = array<i64: 1, 4, 16, 32>}, {transform_indices = @transform_2, window_bounds = array<i64: 1, 4, 16, 32>}, {transform_indices = @transform_3, window_bounds = array<i64: 1, 8, 16, 32>}, {transform_indices = @transform_4, window_bounds = array<i64: 1, 4, 16, 32>}, {transform_indices = @transform_5, window_bounds = array<i64: 1, 4, 16, 32>}, {pipeline_mode = #tpu.pipeline_mode<synchronous>, transform_indices = @transform_6, window_bounds = array<i64: 3, 96, 32>}, {pipeline_mode = #tpu.pipeline_mode<synchronous>, transform_indices = @transform_7, window_bounds = array<i64: 1, 32>}, {pipeline_mode = #tpu.pipeline_mode<synchronous>, transform_indices = @transform_8, window_bounds = array<i64: 3, 96, 32>}, {pipeline_mode = #tpu.pipeline_mode<synchronous>, transform_indices = @transform_9, window_bounds = array<i64: 1, 32>}, {pipeline_mode = #tpu.pipeline_mode<synchronous>, transform_indices = @transform_10, window_bounds = array<i64: 3, 192, 32>}, {pipeline_mode = #tpu.pipeline_mode<synchronous>, transform_indices = @transform_11, window_bounds = array<i64: 1, 32>}, {transform_indices = @transform_12, window_bounds = array<i64: 1, 8, 16, 32>}]} {
    %c0_i32 = arith.constant 0 : i32
    %0 = arith.cmpi eq, %arg1, %c0_i32 : i32
    %c1_i32 = arith.constant 1 : i32
    %1 = arith.cmpi eq, %arg1, %c1_i32 : i32
    %c0 = arith.constant 0 : index
    %c0_0 = arith.constant 0 : index
    %c0_1 = arith.constant 0 : index
    %c0_2 = arith.constant 0 : index
    %2 = vector.load %arg2[%c0, %c0_0, %c0_1, %c0_2] : memref<1x8x16x32xf32, #tpu.memory_space<vmem>>, vector<1x8x16x32xf32>
    %3 = vector.shape_cast %2 : vector<1x8x16x32xf32> to vector<8x16x32xf32>
    %cst = arith.constant 0.000000e+00 : f32
    %4 = vector.broadcast %cst : f32 to vector<3x16x32xf32>
    %c0_3 = arith.constant 0 : index
    %c0_4 = arith.constant 0 : index
    %c0_5 = arith.constant 0 : index
    %c0_6 = arith.constant 0 : index
    %5 = vector.load %arg3[%c0_3, %c0_4, %c0_5, %c0_6] : memref<1x4x16x32xf32, #tpu.memory_space<vmem>>, vector<1x4x16x32xf32>
    %6 = vector.shape_cast %5 : vector<1x4x16x32xf32> to vector<4x16x32xf32>
    %7 = vector.extract_strided_slice %6 {offsets = [1, 0, 0], sizes = [3, 16, 32], strides = [1, 1, 1]} : vector<4x16x32xf32> to vector<3x16x32xf32>
    %8 = arith.select %0, %4, %7 : vector<3x16x32xf32>
    %c0_7 = arith.constant 0 : index
    %c0_8 = arith.constant 0 : index
    %c0_9 = arith.constant 0 : index
    %c0_10 = arith.constant 0 : index
    %9 = vector.load %arg4[%c0_7, %c0_8, %c0_9, %c0_10] : memref<1x4x16x32xf32, #tpu.memory_space<vmem>>, vector<1x4x16x32xf32>
    %10 = vector.shape_cast %9 : vector<1x4x16x32xf32> to vector<4x16x32xf32>
    %11 = vector.extract_strided_slice %10 {offsets = [0, 0, 0], sizes = [3, 16, 32], strides = [1, 1, 1]} : vector<4x16x32xf32> to vector<3x16x32xf32>
    %12 = arith.select %1, %4, %11 : vector<3x16x32xf32>
    %13 = tpu.concatenate %8, %3, %12 in 0 : vector<3x16x32xf32>, vector<8x16x32xf32>, vector<3x16x32xf32> -> vector<14x16x32xf32>
    %cst_11 = arith.constant 0.000000e+00 : f32
    %14 = vector.broadcast %cst_11 : f32 to vector<14x1x32xf32>
    %15 = tpu.concatenate %14, %13, %14 in 1 : vector<14x1x32xf32>, vector<14x16x32xf32>, vector<14x1x32xf32> -> vector<14x18x32xf32>
    %16 = vector.extract_strided_slice %15 {offsets = [0, 2, 0], sizes = [14, 16, 32], strides = [1, 1, 1]} : vector<14x18x32xf32> to vector<14x16x32xf32>
    %17 = vector.extract_strided_slice %15 {offsets = [0, 0, 0], sizes = [14, 16, 32], strides = [1, 1, 1]} : vector<14x18x32xf32> to vector<14x16x32xf32>
    %18 = arith.subf %16, %17 : vector<14x16x32xf32>
    %19 = vector.extract_strided_slice %15 {offsets = [0, 2, 0], sizes = [14, 16, 32], strides = [1, 1, 1]} : vector<14x18x32xf32> to vector<14x16x32xf32>
    %20 = vector.extract_strided_slice %15 {offsets = [0, 1, 0], sizes = [14, 16, 32], strides = [1, 1, 1]} : vector<14x18x32xf32> to vector<14x16x32xf32>
    %cst_12 = arith.constant 2.000000e+00 : f32
    %21 = vector.broadcast %cst_12 : f32 to vector<14x16x32xf32>
    %22 = arith.mulf %21, %20 : vector<14x16x32xf32>
    %23 = arith.addf %19, %22 : vector<14x16x32xf32>
    %24 = vector.extract_strided_slice %15 {offsets = [0, 0, 0], sizes = [14, 16, 32], strides = [1, 1, 1]} : vector<14x18x32xf32> to vector<14x16x32xf32>
    %25 = arith.addf %23, %24 : vector<14x16x32xf32>
    %26 = vector.extract_strided_slice %18 {offsets = [0, 0, 0], sizes = [12, 16, 32], strides = [1, 1, 1]} : vector<14x16x32xf32> to vector<12x16x32xf32>
    %27 = vector.extract_strided_slice %18 {offsets = [1, 0, 0], sizes = [12, 16, 32], strides = [1, 1, 1]} : vector<14x16x32xf32> to vector<12x16x32xf32>
    %cst_13 = arith.constant 2.000000e+00 : f32
    %28 = vector.broadcast %cst_13 : f32 to vector<12x16x32xf32>
    %29 = arith.mulf %28, %27 : vector<12x16x32xf32>
    %30 = arith.addf %26, %29 : vector<12x16x32xf32>
    %31 = vector.extract_strided_slice %18 {offsets = [2, 0, 0], sizes = [12, 16, 32], strides = [1, 1, 1]} : vector<14x16x32xf32> to vector<12x16x32xf32>
    %32 = arith.addf %30, %31 : vector<12x16x32xf32>
    %33 = vector.extract_strided_slice %25 {offsets = [2, 0, 0], sizes = [12, 16, 32], strides = [1, 1, 1]} : vector<14x16x32xf32> to vector<12x16x32xf32>
    %34 = vector.extract_strided_slice %25 {offsets = [0, 0, 0], sizes = [12, 16, 32], strides = [1, 1, 1]} : vector<14x16x32xf32> to vector<12x16x32xf32>
    %35 = arith.subf %33, %34 : vector<12x16x32xf32>
    %36 = math.absf %32 : vector<12x16x32xf32>
    %cst_14 = arith.constant 5.000000e-01 : f32
    %37 = vector.broadcast %cst_14 : f32 to vector<12x16x32xf32>
    %38 = arith.mulf %37, %36 : vector<12x16x32xf32>
    %39 = math.absf %35 : vector<12x16x32xf32>
    %cst_15 = arith.constant 5.000000e-01 : f32
    %40 = vector.broadcast %cst_15 : f32 to vector<12x16x32xf32>
    %41 = arith.mulf %40, %39 : vector<12x16x32xf32>
    %42 = arith.addf %38, %41 : vector<12x16x32xf32>
    %43 = vector.extract_strided_slice %42 {offsets = [3, 0, 0], sizes = [1, 16, 32], strides = [1, 1, 1]} : vector<12x16x32xf32> to vector<1x16x32xf32>
    %44 = vector.extract_strided_slice %42 {offsets = [1, 0, 0], sizes = [1, 16, 32], strides = [1, 1, 1]} : vector<12x16x32xf32> to vector<1x16x32xf32>
    %45 = arith.select %0, %43, %44 : vector<1x16x32xf32>
    %46 = vector.extract_strided_slice %42 {offsets = [8, 0, 0], sizes = [1, 16, 32], strides = [1, 1, 1]} : vector<12x16x32xf32> to vector<1x16x32xf32>
    %47 = vector.extract_strided_slice %42 {offsets = [10, 0, 0], sizes = [1, 16, 32], strides = [1, 1, 1]} : vector<12x16x32xf32> to vector<1x16x32xf32>
    %48 = arith.select %1, %46, %47 : vector<1x16x32xf32>
    %49 = vector.extract_strided_slice %42 {offsets = [0, 0, 0], sizes = [1, 16, 32], strides = [1, 1, 1]} : vector<12x16x32xf32> to vector<1x16x32xf32>
    %50 = vector.extract_strided_slice %42 {offsets = [2, 0, 0], sizes = [8, 16, 32], strides = [1, 1, 1]} : vector<12x16x32xf32> to vector<8x16x32xf32>
    %51 = vector.extract_strided_slice %42 {offsets = [11, 0, 0], sizes = [1, 16, 32], strides = [1, 1, 1]} : vector<12x16x32xf32> to vector<1x16x32xf32>
    %52 = tpu.concatenate %49, %45, %50, %48, %51 in 0 : vector<1x16x32xf32>, vector<1x16x32xf32>, vector<8x16x32xf32>, vector<1x16x32xf32>, vector<1x16x32xf32> -> vector<12x16x32xf32>
    %53 = vector.extract_strided_slice %52 {offsets = [0, 1, 0], sizes = [12, 1, 32], strides = [1, 1, 1]} : vector<12x16x32xf32> to vector<12x1x32xf32>
    %54 = vector.extract_strided_slice %52 {offsets = [0, 14, 0], sizes = [12, 1, 32], strides = [1, 1, 1]} : vector<12x16x32xf32> to vector<12x1x32xf32>
    %55 = tpu.concatenate %53, %52, %54 in 1 : vector<12x1x32xf32>, vector<12x16x32xf32>, vector<12x1x32xf32> -> vector<12x18x32xf32>
    %c0_16 = arith.constant 0 : index
    %c0_17 = arith.constant 0 : index
    %56 = vector.load %arg9[%c0_16, %c0_17] : memref<1x32xf32, #tpu.memory_space<vmem>>, vector<1x32xf32>
    %cst_18 = arith.constant 0.000000e+00 : f32
    %57 = vector.broadcast %cst_18 : f32 to vector<160x32xf32>
    %58 = vector.extract_strided_slice %55 {offsets = [0, 0, 0], sizes = [10, 16, 32], strides = [1, 1, 1]} : vector<12x18x32xf32> to vector<10x16x32xf32>
    %59 = vector.extract_strided_slice %55 {offsets = [0, 1, 0], sizes = [10, 16, 32], strides = [1, 1, 1]} : vector<12x18x32xf32> to vector<10x16x32xf32>
    %60 = vector.extract_strided_slice %55 {offsets = [0, 2, 0], sizes = [10, 16, 32], strides = [1, 1, 1]} : vector<12x18x32xf32> to vector<10x16x32xf32>
    %61 = tpu.concatenate %58, %59, %60 in 2 : vector<10x16x32xf32>, vector<10x16x32xf32>, vector<10x16x32xf32> -> vector<10x16x96xf32>
    %62 = arith.truncf %61 : vector<10x16x96xf32> to vector<10x16x96xbf16>
    %63 = vector.shape_cast %62 : vector<10x16x96xbf16> to vector<160x96xbf16>
    %c0_19 = arith.constant 0 : index
    %c0_20 = arith.constant 0 : index
    %c0_21 = arith.constant 0 : index
    %64 = vector.load %arg8[%c0_19, %c0_20, %c0_21] : memref<3x96x32xbf16, #tpu.memory_space<vmem>>, vector<1x96x32xbf16>
    %65 = vector.shape_cast %64 : vector<1x96x32xbf16> to vector<96x32xbf16>
    %cst_22 = arith.constant dense<0.000000e+00> : vector<160x32xf32>
    %66 = tpu.matmul %63, %65, %cst_22 {dimension_numbers = #tpu.dot_dimension_numbers<[1], [0], [0], [1], [0, 0, 1, 1], [], []>} : vector<160x96xbf16>, vector<96x32xbf16>, vector<160x32xf32> -> vector<160x32xf32>
    %67 = arith.addf %57, %66 : vector<160x32xf32>
    %68 = vector.extract_strided_slice %55 {offsets = [1, 0, 0], sizes = [10, 16, 32], strides = [1, 1, 1]} : vector<12x18x32xf32> to vector<10x16x32xf32>
    %69 = vector.extract_strided_slice %55 {offsets = [1, 1, 0], sizes = [10, 16, 32], strides = [1, 1, 1]} : vector<12x18x32xf32> to vector<10x16x32xf32>
    %70 = vector.extract_strided_slice %55 {offsets = [1, 2, 0], sizes = [10, 16, 32], strides = [1, 1, 1]} : vector<12x18x32xf32> to vector<10x16x32xf32>
    %71 = tpu.concatenate %68, %69, %70 in 2 : vector<10x16x32xf32>, vector<10x16x32xf32>, vector<10x16x32xf32> -> vector<10x16x96xf32>
    %72 = arith.truncf %71 : vector<10x16x96xf32> to vector<10x16x96xbf16>
    %73 = vector.shape_cast %72 : vector<10x16x96xbf16> to vector<160x96xbf16>
    %c1 = arith.constant 1 : index
    %c0_23 = arith.constant 0 : index
    %c0_24 = arith.constant 0 : index
    %74 = vector.load %arg8[%c1, %c0_23, %c0_24] : memref<3x96x32xbf16, #tpu.memory_space<vmem>>, vector<1x96x32xbf16>
    %75 = vector.shape_cast %74 : vector<1x96x32xbf16> to vector<96x32xbf16>
    %cst_25 = arith.constant dense<0.000000e+00> : vector<160x32xf32>
    %76 = tpu.matmul %73, %75, %cst_25 {dimension_numbers = #tpu.dot_dimension_numbers<[1], [0], [0], [1], [0, 0, 1, 1], [], []>} : vector<160x96xbf16>, vector<96x32xbf16>, vector<160x32xf32> -> vector<160x32xf32>
    %77 = arith.addf %67, %76 : vector<160x32xf32>
    %78 = vector.extract_strided_slice %55 {offsets = [2, 0, 0], sizes = [10, 16, 32], strides = [1, 1, 1]} : vector<12x18x32xf32> to vector<10x16x32xf32>
    %79 = vector.extract_strided_slice %55 {offsets = [2, 1, 0], sizes = [10, 16, 32], strides = [1, 1, 1]} : vector<12x18x32xf32> to vector<10x16x32xf32>
    %80 = vector.extract_strided_slice %55 {offsets = [2, 2, 0], sizes = [10, 16, 32], strides = [1, 1, 1]} : vector<12x18x32xf32> to vector<10x16x32xf32>
    %81 = tpu.concatenate %78, %79, %80 in 2 : vector<10x16x32xf32>, vector<10x16x32xf32>, vector<10x16x32xf32> -> vector<10x16x96xf32>
    %82 = arith.truncf %81 : vector<10x16x96xf32> to vector<10x16x96xbf16>
    %83 = vector.shape_cast %82 : vector<10x16x96xbf16> to vector<160x96xbf16>
    %c2 = arith.constant 2 : index
    %c0_26 = arith.constant 0 : index
    %c0_27 = arith.constant 0 : index
    %84 = vector.load %arg8[%c2, %c0_26, %c0_27] : memref<3x96x32xbf16, #tpu.memory_space<vmem>>, vector<1x96x32xbf16>
    %85 = vector.shape_cast %84 : vector<1x96x32xbf16> to vector<96x32xbf16>
    %cst_28 = arith.constant dense<0.000000e+00> : vector<160x32xf32>
    %86 = tpu.matmul %83, %85, %cst_28 {dimension_numbers = #tpu.dot_dimension_numbers<[1], [0], [0], [1], [0, 0, 1, 1], [], []>} : vector<160x96xbf16>, vector<96x32xbf16>, vector<160x32xf32> -> vector<160x32xf32>
    %87 = arith.addf %77, %86 : vector<160x32xf32>
    %88 = vector.broadcast %56 : vector<1x32xf32> to vector<160x32xf32>
    %89 = arith.addf %87, %88 : vector<160x32xf32>
    %90 = vector.shape_cast %89 : vector<160x32xf32> to vector<10x16x32xf32>
    %c0_29 = arith.constant 0 : index
    %c0_30 = arith.constant 0 : index
    %c0_31 = arith.constant 0 : index
    %c0_32 = arith.constant 0 : index
    %91 = vector.load %arg6[%c0_29, %c0_30, %c0_31, %c0_32] : memref<1x4x16x32xf32, #tpu.memory_space<vmem>>, vector<1x4x16x32xf32>
    %92 = vector.shape_cast %91 : vector<1x4x16x32xf32> to vector<4x16x32xf32>
    %93 = vector.extract_strided_slice %92 {offsets = [2, 0, 0], sizes = [2, 16, 32], strides = [1, 1, 1]} : vector<4x16x32xf32> to vector<2x16x32xf32>
    %c0_33 = arith.constant 0 : index
    %c0_34 = arith.constant 0 : index
    %c0_35 = arith.constant 0 : index
    %c0_36 = arith.constant 0 : index
    %94 = vector.load %arg5[%c0_33, %c0_34, %c0_35, %c0_36] : memref<1x8x16x32xf32, #tpu.memory_space<vmem>>, vector<1x8x16x32xf32>
    %95 = vector.shape_cast %94 : vector<1x8x16x32xf32> to vector<8x16x32xf32>
    %c0_37 = arith.constant 0 : index
    %c0_38 = arith.constant 0 : index
    %c0_39 = arith.constant 0 : index
    %c0_40 = arith.constant 0 : index
    %96 = vector.load %arg7[%c0_37, %c0_38, %c0_39, %c0_40] : memref<1x4x16x32xf32, #tpu.memory_space<vmem>>, vector<1x4x16x32xf32>
    %97 = vector.shape_cast %96 : vector<1x4x16x32xf32> to vector<4x16x32xf32>
    %98 = vector.extract_strided_slice %97 {offsets = [0, 0, 0], sizes = [2, 16, 32], strides = [1, 1, 1]} : vector<4x16x32xf32> to vector<2x16x32xf32>
    %99 = tpu.concatenate %93, %95, %98 in 0 : vector<2x16x32xf32>, vector<8x16x32xf32>, vector<2x16x32xf32> -> vector<12x16x32xf32>
    %100 = vector.extract_strided_slice %99 {offsets = [3, 0, 0], sizes = [1, 16, 32], strides = [1, 1, 1]} : vector<12x16x32xf32> to vector<1x16x32xf32>
    %101 = vector.extract_strided_slice %99 {offsets = [1, 0, 0], sizes = [1, 16, 32], strides = [1, 1, 1]} : vector<12x16x32xf32> to vector<1x16x32xf32>
    %102 = arith.select %0, %100, %101 : vector<1x16x32xf32>
    %103 = vector.extract_strided_slice %99 {offsets = [8, 0, 0], sizes = [1, 16, 32], strides = [1, 1, 1]} : vector<12x16x32xf32> to vector<1x16x32xf32>
    %104 = vector.extract_strided_slice %99 {offsets = [10, 0, 0], sizes = [1, 16, 32], strides = [1, 1, 1]} : vector<12x16x32xf32> to vector<1x16x32xf32>
    %105 = arith.select %1, %103, %104 : vector<1x16x32xf32>
    %106 = vector.extract_strided_slice %99 {offsets = [0, 0, 0], sizes = [1, 16, 32], strides = [1, 1, 1]} : vector<12x16x32xf32> to vector<1x16x32xf32>
    %107 = vector.extract_strided_slice %99 {offsets = [2, 0, 0], sizes = [8, 16, 32], strides = [1, 1, 1]} : vector<12x16x32xf32> to vector<8x16x32xf32>
    %108 = vector.extract_strided_slice %99 {offsets = [11, 0, 0], sizes = [1, 16, 32], strides = [1, 1, 1]} : vector<12x16x32xf32> to vector<1x16x32xf32>
    %109 = tpu.concatenate %106, %102, %107, %105, %108 in 0 : vector<1x16x32xf32>, vector<1x16x32xf32>, vector<8x16x32xf32>, vector<1x16x32xf32>, vector<1x16x32xf32> -> vector<12x16x32xf32>
    %110 = vector.extract_strided_slice %109 {offsets = [0, 1, 0], sizes = [12, 1, 32], strides = [1, 1, 1]} : vector<12x16x32xf32> to vector<12x1x32xf32>
    %111 = vector.extract_strided_slice %109 {offsets = [0, 14, 0], sizes = [12, 1, 32], strides = [1, 1, 1]} : vector<12x16x32xf32> to vector<12x1x32xf32>
    %112 = tpu.concatenate %110, %109, %111 in 1 : vector<12x1x32xf32>, vector<12x16x32xf32>, vector<12x1x32xf32> -> vector<12x18x32xf32>
    %c0_41 = arith.constant 0 : index
    %c0_42 = arith.constant 0 : index
    %113 = vector.load %arg11[%c0_41, %c0_42] : memref<1x32xf32, #tpu.memory_space<vmem>>, vector<1x32xf32>
    %cst_43 = arith.constant 0.000000e+00 : f32
    %114 = vector.broadcast %cst_43 : f32 to vector<160x32xf32>
    %115 = vector.extract_strided_slice %112 {offsets = [0, 0, 0], sizes = [10, 16, 32], strides = [1, 1, 1]} : vector<12x18x32xf32> to vector<10x16x32xf32>
    %116 = vector.extract_strided_slice %112 {offsets = [0, 1, 0], sizes = [10, 16, 32], strides = [1, 1, 1]} : vector<12x18x32xf32> to vector<10x16x32xf32>
    %117 = vector.extract_strided_slice %112 {offsets = [0, 2, 0], sizes = [10, 16, 32], strides = [1, 1, 1]} : vector<12x18x32xf32> to vector<10x16x32xf32>
    %118 = tpu.concatenate %115, %116, %117 in 2 : vector<10x16x32xf32>, vector<10x16x32xf32>, vector<10x16x32xf32> -> vector<10x16x96xf32>
    %119 = arith.truncf %118 : vector<10x16x96xf32> to vector<10x16x96xbf16>
    %120 = vector.shape_cast %119 : vector<10x16x96xbf16> to vector<160x96xbf16>
    %c0_44 = arith.constant 0 : index
    %c0_45 = arith.constant 0 : index
    %c0_46 = arith.constant 0 : index
    %121 = vector.load %arg10[%c0_44, %c0_45, %c0_46] : memref<3x96x32xbf16, #tpu.memory_space<vmem>>, vector<1x96x32xbf16>
    %122 = vector.shape_cast %121 : vector<1x96x32xbf16> to vector<96x32xbf16>
    %cst_47 = arith.constant dense<0.000000e+00> : vector<160x32xf32>
    %123 = tpu.matmul %120, %122, %cst_47 {dimension_numbers = #tpu.dot_dimension_numbers<[1], [0], [0], [1], [0, 0, 1, 1], [], []>} : vector<160x96xbf16>, vector<96x32xbf16>, vector<160x32xf32> -> vector<160x32xf32>
    %124 = arith.addf %114, %123 : vector<160x32xf32>
    %125 = vector.extract_strided_slice %112 {offsets = [1, 0, 0], sizes = [10, 16, 32], strides = [1, 1, 1]} : vector<12x18x32xf32> to vector<10x16x32xf32>
    %126 = vector.extract_strided_slice %112 {offsets = [1, 1, 0], sizes = [10, 16, 32], strides = [1, 1, 1]} : vector<12x18x32xf32> to vector<10x16x32xf32>
    %127 = vector.extract_strided_slice %112 {offsets = [1, 2, 0], sizes = [10, 16, 32], strides = [1, 1, 1]} : vector<12x18x32xf32> to vector<10x16x32xf32>
    %128 = tpu.concatenate %125, %126, %127 in 2 : vector<10x16x32xf32>, vector<10x16x32xf32>, vector<10x16x32xf32> -> vector<10x16x96xf32>
    %129 = arith.truncf %128 : vector<10x16x96xf32> to vector<10x16x96xbf16>
    %130 = vector.shape_cast %129 : vector<10x16x96xbf16> to vector<160x96xbf16>
    %c1_48 = arith.constant 1 : index
    %c0_49 = arith.constant 0 : index
    %c0_50 = arith.constant 0 : index
    %131 = vector.load %arg10[%c1_48, %c0_49, %c0_50] : memref<3x96x32xbf16, #tpu.memory_space<vmem>>, vector<1x96x32xbf16>
    %132 = vector.shape_cast %131 : vector<1x96x32xbf16> to vector<96x32xbf16>
    %cst_51 = arith.constant dense<0.000000e+00> : vector<160x32xf32>
    %133 = tpu.matmul %130, %132, %cst_51 {dimension_numbers = #tpu.dot_dimension_numbers<[1], [0], [0], [1], [0, 0, 1, 1], [], []>} : vector<160x96xbf16>, vector<96x32xbf16>, vector<160x32xf32> -> vector<160x32xf32>
    %134 = arith.addf %124, %133 : vector<160x32xf32>
    %135 = vector.extract_strided_slice %112 {offsets = [2, 0, 0], sizes = [10, 16, 32], strides = [1, 1, 1]} : vector<12x18x32xf32> to vector<10x16x32xf32>
    %136 = vector.extract_strided_slice %112 {offsets = [2, 1, 0], sizes = [10, 16, 32], strides = [1, 1, 1]} : vector<12x18x32xf32> to vector<10x16x32xf32>
    %137 = vector.extract_strided_slice %112 {offsets = [2, 2, 0], sizes = [10, 16, 32], strides = [1, 1, 1]} : vector<12x18x32xf32> to vector<10x16x32xf32>
    %138 = tpu.concatenate %135, %136, %137 in 2 : vector<10x16x32xf32>, vector<10x16x32xf32>, vector<10x16x32xf32> -> vector<10x16x96xf32>
    %139 = arith.truncf %138 : vector<10x16x96xf32> to vector<10x16x96xbf16>
    %140 = vector.shape_cast %139 : vector<10x16x96xbf16> to vector<160x96xbf16>
    %c2_52 = arith.constant 2 : index
    %c0_53 = arith.constant 0 : index
    %c0_54 = arith.constant 0 : index
    %141 = vector.load %arg10[%c2_52, %c0_53, %c0_54] : memref<3x96x32xbf16, #tpu.memory_space<vmem>>, vector<1x96x32xbf16>
    %142 = vector.shape_cast %141 : vector<1x96x32xbf16> to vector<96x32xbf16>
    %cst_55 = arith.constant dense<0.000000e+00> : vector<160x32xf32>
    %143 = tpu.matmul %140, %142, %cst_55 {dimension_numbers = #tpu.dot_dimension_numbers<[1], [0], [0], [1], [0, 0, 1, 1], [], []>} : vector<160x96xbf16>, vector<96x32xbf16>, vector<160x32xf32> -> vector<160x32xf32>
    %144 = arith.addf %134, %143 : vector<160x32xf32>
    %145 = vector.broadcast %113 : vector<1x32xf32> to vector<160x32xf32>
    %146 = arith.addf %144, %145 : vector<160x32xf32>
    %147 = vector.shape_cast %146 : vector<160x32xf32> to vector<10x16x32xf32>
    %148 = vector.extract_strided_slice %90 {offsets = [2, 0, 0], sizes = [1, 16, 32], strides = [1, 1, 1]} : vector<10x16x32xf32> to vector<1x16x32xf32>
    %149 = vector.extract_strided_slice %90 {offsets = [0, 0, 0], sizes = [1, 16, 32], strides = [1, 1, 1]} : vector<10x16x32xf32> to vector<1x16x32xf32>
    %150 = arith.select %0, %148, %149 : vector<1x16x32xf32>
    %151 = vector.extract_strided_slice %90 {offsets = [7, 0, 0], sizes = [1, 16, 32], strides = [1, 1, 1]} : vector<10x16x32xf32> to vector<1x16x32xf32>
    %152 = vector.extract_strided_slice %90 {offsets = [9, 0, 0], sizes = [1, 16, 32], strides = [1, 1, 1]} : vector<10x16x32xf32> to vector<1x16x32xf32>
    %153 = arith.select %1, %151, %152 : vector<1x16x32xf32>
    %154 = vector.extract_strided_slice %90 {offsets = [1, 0, 0], sizes = [8, 16, 32], strides = [1, 1, 1]} : vector<10x16x32xf32> to vector<8x16x32xf32>
    %155 = tpu.concatenate %150, %154, %153 in 0 : vector<1x16x32xf32>, vector<8x16x32xf32>, vector<1x16x32xf32> -> vector<10x16x32xf32>
    %156 = vector.extract_strided_slice %147 {offsets = [2, 0, 0], sizes = [1, 16, 32], strides = [1, 1, 1]} : vector<10x16x32xf32> to vector<1x16x32xf32>
    %157 = vector.extract_strided_slice %147 {offsets = [0, 0, 0], sizes = [1, 16, 32], strides = [1, 1, 1]} : vector<10x16x32xf32> to vector<1x16x32xf32>
    %158 = arith.select %0, %156, %157 : vector<1x16x32xf32>
    %159 = vector.extract_strided_slice %147 {offsets = [7, 0, 0], sizes = [1, 16, 32], strides = [1, 1, 1]} : vector<10x16x32xf32> to vector<1x16x32xf32>
    %160 = vector.extract_strided_slice %147 {offsets = [9, 0, 0], sizes = [1, 16, 32], strides = [1, 1, 1]} : vector<10x16x32xf32> to vector<1x16x32xf32>
    %161 = arith.select %1, %159, %160 : vector<1x16x32xf32>
    %162 = vector.extract_strided_slice %147 {offsets = [1, 0, 0], sizes = [8, 16, 32], strides = [1, 1, 1]} : vector<10x16x32xf32> to vector<8x16x32xf32>
    %163 = tpu.concatenate %158, %162, %161 in 0 : vector<1x16x32xf32>, vector<8x16x32xf32>, vector<1x16x32xf32> -> vector<10x16x32xf32>
    %164 = arith.mulf %155, %163 : vector<10x16x32xf32>
    %165 = tpu.concatenate %163, %164 in 2 : vector<10x16x32xf32>, vector<10x16x32xf32> -> vector<10x16x64xf32>
    %166 = vector.extract_strided_slice %165 {offsets = [0, 1, 0], sizes = [10, 1, 64], strides = [1, 1, 1]} : vector<10x16x64xf32> to vector<10x1x64xf32>
    %167 = vector.extract_strided_slice %165 {offsets = [0, 14, 0], sizes = [10, 1, 64], strides = [1, 1, 1]} : vector<10x16x64xf32> to vector<10x1x64xf32>
    %168 = tpu.concatenate %166, %165, %167 in 1 : vector<10x1x64xf32>, vector<10x16x64xf32>, vector<10x1x64xf32> -> vector<10x18x64xf32>
    %c0_56 = arith.constant 0 : index
    %c0_57 = arith.constant 0 : index
    %169 = vector.load %arg13[%c0_56, %c0_57] : memref<1x32xf32, #tpu.memory_space<vmem>>, vector<1x32xf32>
    %cst_58 = arith.constant 0.000000e+00 : f32
    %170 = vector.broadcast %cst_58 : f32 to vector<128x32xf32>
    %171 = vector.extract_strided_slice %168 {offsets = [0, 0, 0], sizes = [8, 16, 64], strides = [1, 1, 1]} : vector<10x18x64xf32> to vector<8x16x64xf32>
    %172 = vector.extract_strided_slice %168 {offsets = [0, 1, 0], sizes = [8, 16, 64], strides = [1, 1, 1]} : vector<10x18x64xf32> to vector<8x16x64xf32>
    %173 = vector.extract_strided_slice %168 {offsets = [0, 2, 0], sizes = [8, 16, 64], strides = [1, 1, 1]} : vector<10x18x64xf32> to vector<8x16x64xf32>
    %174 = tpu.concatenate %171, %172, %173 in 2 : vector<8x16x64xf32>, vector<8x16x64xf32>, vector<8x16x64xf32> -> vector<8x16x192xf32>
    %175 = arith.truncf %174 : vector<8x16x192xf32> to vector<8x16x192xbf16>
    %176 = vector.shape_cast %175 : vector<8x16x192xbf16> to vector<128x192xbf16>
    %c0_59 = arith.constant 0 : index
    %c0_60 = arith.constant 0 : index
    %c0_61 = arith.constant 0 : index
    %177 = vector.load %arg12[%c0_59, %c0_60, %c0_61] : memref<3x192x32xbf16, #tpu.memory_space<vmem>>, vector<1x192x32xbf16>
    %178 = vector.shape_cast %177 : vector<1x192x32xbf16> to vector<192x32xbf16>
    %cst_62 = arith.constant dense<0.000000e+00> : vector<128x32xf32>
    %179 = tpu.matmul %176, %178, %cst_62 {dimension_numbers = #tpu.dot_dimension_numbers<[1], [0], [0], [1], [0, 0, 1, 1], [], []>} : vector<128x192xbf16>, vector<192x32xbf16>, vector<128x32xf32> -> vector<128x32xf32>
    %180 = arith.addf %170, %179 : vector<128x32xf32>
    %181 = vector.extract_strided_slice %168 {offsets = [1, 0, 0], sizes = [8, 16, 64], strides = [1, 1, 1]} : vector<10x18x64xf32> to vector<8x16x64xf32>
    %182 = vector.extract_strided_slice %168 {offsets = [1, 1, 0], sizes = [8, 16, 64], strides = [1, 1, 1]} : vector<10x18x64xf32> to vector<8x16x64xf32>
    %183 = vector.extract_strided_slice %168 {offsets = [1, 2, 0], sizes = [8, 16, 64], strides = [1, 1, 1]} : vector<10x18x64xf32> to vector<8x16x64xf32>
    %184 = tpu.concatenate %181, %182, %183 in 2 : vector<8x16x64xf32>, vector<8x16x64xf32>, vector<8x16x64xf32> -> vector<8x16x192xf32>
    %185 = arith.truncf %184 : vector<8x16x192xf32> to vector<8x16x192xbf16>
    %186 = vector.shape_cast %185 : vector<8x16x192xbf16> to vector<128x192xbf16>
    %c1_63 = arith.constant 1 : index
    %c0_64 = arith.constant 0 : index
    %c0_65 = arith.constant 0 : index
    %187 = vector.load %arg12[%c1_63, %c0_64, %c0_65] : memref<3x192x32xbf16, #tpu.memory_space<vmem>>, vector<1x192x32xbf16>
    %188 = vector.shape_cast %187 : vector<1x192x32xbf16> to vector<192x32xbf16>
    %cst_66 = arith.constant dense<0.000000e+00> : vector<128x32xf32>
    %189 = tpu.matmul %186, %188, %cst_66 {dimension_numbers = #tpu.dot_dimension_numbers<[1], [0], [0], [1], [0, 0, 1, 1], [], []>} : vector<128x192xbf16>, vector<192x32xbf16>, vector<128x32xf32> -> vector<128x32xf32>
    %190 = arith.addf %180, %189 : vector<128x32xf32>
    %191 = vector.extract_strided_slice %168 {offsets = [2, 0, 0], sizes = [8, 16, 64], strides = [1, 1, 1]} : vector<10x18x64xf32> to vector<8x16x64xf32>
    %192 = vector.extract_strided_slice %168 {offsets = [2, 1, 0], sizes = [8, 16, 64], strides = [1, 1, 1]} : vector<10x18x64xf32> to vector<8x16x64xf32>
    %193 = vector.extract_strided_slice %168 {offsets = [2, 2, 0], sizes = [8, 16, 64], strides = [1, 1, 1]} : vector<10x18x64xf32> to vector<8x16x64xf32>
    %194 = tpu.concatenate %191, %192, %193 in 2 : vector<8x16x64xf32>, vector<8x16x64xf32>, vector<8x16x64xf32> -> vector<8x16x192xf32>
    %195 = arith.truncf %194 : vector<8x16x192xf32> to vector<8x16x192xbf16>
    %196 = vector.shape_cast %195 : vector<8x16x192xbf16> to vector<128x192xbf16>
    %c2_67 = arith.constant 2 : index
    %c0_68 = arith.constant 0 : index
    %c0_69 = arith.constant 0 : index
    %197 = vector.load %arg12[%c2_67, %c0_68, %c0_69] : memref<3x192x32xbf16, #tpu.memory_space<vmem>>, vector<1x192x32xbf16>
    %198 = vector.shape_cast %197 : vector<1x192x32xbf16> to vector<192x32xbf16>
    %cst_70 = arith.constant dense<0.000000e+00> : vector<128x32xf32>
    %199 = tpu.matmul %196, %198, %cst_70 {dimension_numbers = #tpu.dot_dimension_numbers<[1], [0], [0], [1], [0, 0, 1, 1], [], []>} : vector<128x192xbf16>, vector<192x32xbf16>, vector<128x32xf32> -> vector<128x32xf32>
    %200 = arith.addf %190, %199 : vector<128x32xf32>
    %201 = vector.broadcast %169 : vector<1x32xf32> to vector<128x32xf32>
    %202 = arith.addf %200, %201 : vector<128x32xf32>
    %203 = vector.shape_cast %202 : vector<128x32xf32> to vector<8x16x32xf32>
    %204 = vector.extract_strided_slice %155 {offsets = [1, 0, 0], sizes = [8, 16, 32], strides = [1, 1, 1]} : vector<10x16x32xf32> to vector<8x16x32xf32>
    %205 = arith.addf %203, %204 : vector<8x16x32xf32>
    %c0_71 = arith.constant 0 : index
    %c0_72 = arith.constant 0 : index
    %c0_73 = arith.constant 0 : index
    %c0_74 = arith.constant 0 : index
    %206 = vector.load %arg14[%c0_71, %c0_72, %c0_73, %c0_74] : memref<1x8x16x32xf32, #tpu.memory_space<vmem>>, vector<1x8x16x32xf32>
    %207 = vector.shape_cast %206 : vector<1x8x16x32xf32> to vector<8x16x32xf32>
    %208 = vector.shape_cast %205 : vector<8x16x32xf32> to vector<1x8x16x32xf32>
    tpu.vector_store %arg14[%c0_71, %c0_72, %c0_73, %c0_74], %208 {strides = array<i32>} : memref<1x8x16x32xf32, #tpu.memory_space<vmem>>, vector<1x8x16x32xf32>,
    return
  }
  func.func @transform_0(%arg0: i32, %arg1: i32) -> (i32, i32, i32, i32) {
    %c0_i32 = arith.constant 0 : i32
    %c0_i32_0 = arith.constant 0 : i32
    %c0_i32_1 = arith.constant 0 : i32
    return %arg0, %arg1, %c0_i32, %c0_i32_0 : i32, i32, i32, i32
  }
  func.func @transform_1(%arg0: i32, %arg1: i32) -> (i32, i32, i32, i32) {
    %c2_i32 = arith.constant 2 : i32
    %0 = arith.muli %arg1, %c2_i32 : i32
    %c1_i32 = arith.constant 1 : i32
    %1 = arith.subi %0, %c1_i32 : i32
    %c0_i32 = arith.constant 0 : i32
    %2 = arith.maxsi %1, %c0_i32 : i32
    %c0_i32_0 = arith.constant 0 : i32
    %c0_i32_1 = arith.constant 0 : i32
    %c0_i32_2 = arith.constant 0 : i32
    return %arg0, %2, %c0_i32_0, %c0_i32_1 : i32, i32, i32, i32
  }
  func.func @transform_2(%arg0: i32, %arg1: i32) -> (i32, i32, i32, i32) {
    %c1_i32 = arith.constant 1 : i32
    %0 = arith.addi %arg1, %c1_i32 : i32
    %c2_i32 = arith.constant 2 : i32
    %1 = arith.muli %0, %c2_i32 : i32
    %c3_i32 = arith.constant 3 : i32
    %2 = arith.minsi %1, %c3_i32 : i32
    %c0_i32 = arith.constant 0 : i32
    %c0_i32_0 = arith.constant 0 : i32
    %c0_i32_1 = arith.constant 0 : i32
    return %arg0, %2, %c0_i32, %c0_i32_0 : i32, i32, i32, i32
  }
  func.func @transform_3(%arg0: i32, %arg1: i32) -> (i32, i32, i32, i32) {
    %c0_i32 = arith.constant 0 : i32
    %c0_i32_0 = arith.constant 0 : i32
    %c0_i32_1 = arith.constant 0 : i32
    return %arg0, %arg1, %c0_i32, %c0_i32_0 : i32, i32, i32, i32
  }
  func.func @transform_4(%arg0: i32, %arg1: i32) -> (i32, i32, i32, i32) {
    %c2_i32 = arith.constant 2 : i32
    %0 = arith.muli %arg1, %c2_i32 : i32
    %c1_i32 = arith.constant 1 : i32
    %1 = arith.subi %0, %c1_i32 : i32
    %c0_i32 = arith.constant 0 : i32
    %2 = arith.maxsi %1, %c0_i32 : i32
    %c0_i32_0 = arith.constant 0 : i32
    %c0_i32_1 = arith.constant 0 : i32
    %c0_i32_2 = arith.constant 0 : i32
    return %arg0, %2, %c0_i32_0, %c0_i32_1 : i32, i32, i32, i32
  }
  func.func @transform_5(%arg0: i32, %arg1: i32) -> (i32, i32, i32, i32) {
    %c1_i32 = arith.constant 1 : i32
    %0 = arith.addi %arg1, %c1_i32 : i32
    %c2_i32 = arith.constant 2 : i32
    %1 = arith.muli %0, %c2_i32 : i32
    %c3_i32 = arith.constant 3 : i32
    %2 = arith.minsi %1, %c3_i32 : i32
    %c0_i32 = arith.constant 0 : i32
    %c0_i32_0 = arith.constant 0 : i32
    %c0_i32_1 = arith.constant 0 : i32
    return %arg0, %2, %c0_i32, %c0_i32_0 : i32, i32, i32, i32
  }
  func.func @transform_6(%arg0: i32, %arg1: i32) -> (i32, i32, i32) {
    %c0_i32 = arith.constant 0 : i32
    %c0_i32_0 = arith.constant 0 : i32
    %c0_i32_1 = arith.constant 0 : i32
    %c0_i32_2 = arith.constant 0 : i32
    return %c0_i32, %c0_i32_0, %c0_i32_1 : i32, i32, i32
  }
  func.func @transform_7(%arg0: i32, %arg1: i32) -> (i32, i32) {
    %c0_i32 = arith.constant 0 : i32
    %c0_i32_0 = arith.constant 0 : i32
    %c0_i32_1 = arith.constant 0 : i32
    return %c0_i32, %c0_i32_0 : i32, i32
  }
  func.func @transform_8(%arg0: i32, %arg1: i32) -> (i32, i32, i32) {
    %c0_i32 = arith.constant 0 : i32
    %c0_i32_0 = arith.constant 0 : i32
    %c0_i32_1 = arith.constant 0 : i32
    %c0_i32_2 = arith.constant 0 : i32
    return %c0_i32, %c0_i32_0, %c0_i32_1 : i32, i32, i32
  }
  func.func @transform_9(%arg0: i32, %arg1: i32) -> (i32, i32) {
    %c0_i32 = arith.constant 0 : i32
    %c0_i32_0 = arith.constant 0 : i32
    %c0_i32_1 = arith.constant 0 : i32
    return %c0_i32, %c0_i32_0 : i32, i32
  }
  func.func @transform_10(%arg0: i32, %arg1: i32) -> (i32, i32, i32) {
    %c0_i32 = arith.constant 0 : i32
    %c0_i32_0 = arith.constant 0 : i32
    %c0_i32_1 = arith.constant 0 : i32
    %c0_i32_2 = arith.constant 0 : i32
    return %c0_i32, %c0_i32_0, %c0_i32_1 : i32, i32, i32
  }
  func.func @transform_11(%arg0: i32, %arg1: i32) -> (i32, i32) {
    %c0_i32 = arith.constant 0 : i32
    %c0_i32_0 = arith.constant 0 : i32
    %c0_i32_1 = arith.constant 0 : i32
    return %c0_i32, %c0_i32_0 : i32, i32
  }
  func.func @transform_12(%arg0: i32, %arg1: i32) -> (i32, i32, i32, i32) {
    %c0_i32 = arith.constant 0 : i32
    %c0_i32_0 = arith.constant 0 : i32
    %c0_i32_1 = arith.constant 0 : i32
    return %arg0, %arg1, %c0_i32, %c0_i32_0 : i32, i32, i32, i32
  }
}

</mosaic_0001>

<bundles_post_ra>
// kernel: egdu_forward.1
= control target key start
LH: loop header
LB: loop body
LE: loop exit
PB: predicated region body
PF: predicated region fallthrough
CT: control target
= control target key end

     0   :  { %s9422_s0 = inlined_call_operand.vmem [shape: f32[2,16,16,32], index: 0, kind: input, shape index: {}, may-alias: {0,1,2}]   ;;  %s9423_s1 = inlined_call_operand.vmem [shape: f32[2,16,16,32], index: 1, kind: input, shape index: {}, may-alias: {0,1,2}]   ;;  %s9424_s2 = inlined_call_operand.vmem [shape: f32[2,16,16,32], index: 2, kind: input, shape index: {}, may-alias: {0,1,2}]   ;;  %s9425_s3 = inlined_call_operand.vmem [shape: f32[2,16,16,32], index: 3, kind: input, shape index: {}, may-alias: {3,4,5}]   ;;  %s9426_s4 = inlined_call_operand.vmem [shape: f32[2,16,16,32], index: 4, kind: input, shape index: {}, may-alias: {3,4,5}]   ;;  %s9427_s5 = inlined_call_operand.vmem [shape: f32[2,16,16,32], index: 5, kind: input, shape index: {}, may-alias: {3,4,5}]   ;;  %s9428_s6 = inlined_call_operand.vmem [shape: bf16[3,96,32], index: 6, kind: input, shape index: {}]   ;;  %s9429_s7 = inlined_call_operand.vmem [shape: f32[1,32], index: 7, kind: input, shape index: {}]   ;;  %s9430_s8 = inlined_call_operand.vmem [shape: bf16[3,96,32], index: 8, kind: input, shape index: {}]   ;;  %s9431_s9 = inlined_call_operand.vmem [shape: f32[1,32], index: 9, kind: input, shape index: {}]   ;;  %s9432_s10 = inlined_call_operand.vmem [shape: bf16[3,192,32], index: 10, kind: input, shape index: {}]   ;;  %s9433_s11 = inlined_call_operand.vmem [shape: f32[1,32], index: 11, kind: input, shape index: {}]   ;;  %s9434_s12 = inlined_call_operand.hbm [shape: f32[2,16,16,32], index: 12, kind: output, shape index: {}]  }
   0x1   :  { %9495 = sst [smem:[#allocation49_spill]] %s9422_s0 }
   0x2   :  { %9496 = sst [smem:[#allocation50_spill]] %s9425_s3 }
   0x3   :  { %9497 = sst [smem:[#allocation51_spill]] %s9426_s4 }
   0x4   :  { %17 = vsyncpa [#allocation3], 0 }
   0x5   :  { %19 = vsyncpa [#allocation3 + $0x1], 0  ;;  %s6735_s21 = smov 0   ;;  %s6737_s22 = smov 0  }
   0x6   :  { %s6739_s23 = smov 0   ;;  %s6741_s24 = smov 0  }
   0x7   :  { %s6743_s25 = smov 0   ;;  %s6745_s26 = smov 0  }
   0x8   :  { %s6747_s27 = smov 0   ;;  %s6749_s28 = smov 0  }
   0x9 LB: > { %9498 = sst [smem:[#allocation5_spill]] %s6642_s23  ;;  %s5328_s29 = sadd.s32 4294967295, %s6662_s28   ;;  %s6662_s28 = sphi %s6749_s28, %s25_s28   ;;  %s6658_s27 = sphi %s6747_s27, %s9622_s27   ;;  %s6654_s26 = sphi %s6745_s26, %s9621_s26   ;;  %s6650_s25 = sphi %s6743_s25, %s9620_s25   ;;  %s6646_s24 = sphi %s6741_s24, %s9619_s24   ;;  %s6642_s23 = sphi %s6739_s23, %s9618_s23   ;;  %s6638_s22 = sphi %s6737_s22, %s9624_s22   ;;  %s6634_s21 = sphi %s6735_s21, %s9623_s21  }
   0xa   : > { %9499 = sst [smem:[#allocation6_spill]] %s6654_s26  ;;  %s5329_s30 = sadd.s32 4294967294, %s6662_s28  }
   0xb   : > { %9500 = sst [smem:[#allocation7_spill]] %s6658_s27  ;;  %s34_s13 = sadd.s32 1, %s6654_s26 }
   0xc   : > { %p35_p0 = scmp.ge.s32.totalorder %s34_s13, 2  ;;  %s37_s14 = sadd.s32 1, %s6658_s27 }
   0xd   : > { %p382_p1 = scmp.ne.s32.totalorder %s6642_s23, %s6638_s22  ;;  %p383_p2 = scmp.eq.s32.totalorder %s5328_s29, 3 }
   0xe   : > { %s9626_s13 = smov (%p35_p0, %s34_s13), 0  ;;  %s9628_s14 = smov (!%p35_p0, %s37_s14), %s6658_s27 }
   0xf   : > { %9501 = sst [smem:[#allocation8_spill]] %s9626_s13  ;;  %s368_s15 = ssub.s32 %s6654_s26, %s9626_s13 }
  0x10   : > { %p6786_p3 = por %p383_p2, %p382_p1  ;;  %p39_p4 = scmp.ge.s32.totalorder %s9628_s14, 2 }
  0x11   : > { %p388_p5 = scmp.ne.s32.totalorder %s6638_s22, %s6634_s21  ;;  %p389_p6 = scmp.eq.s32.totalorder %s5329_s30, 3 }
  0x12   : > { %p5344_p7 = scmp.ge.s32.totalorder %s6662_s28, 1  ;;  %s9630_s14 = smov (%p39_p4, %s9628_s14), 0 }
  0x13   : > { %9503 = sst [smem:[#allocation9_spill]] %s9630_s14  ;;  %p6795_p8 = por %p389_p6, %p388_p5 }
  0x14   : > { %p541_p9 = scmp.lt.s32.totalorder %s6662_s28, 5  ;;  %s367_s18 = ssub.s32 %s6658_s27, %s9630_s14 }
  0x15   : > { %s9504_s17 = scalar_select %p6795_p8, 1, 0 }
  0x16   : > { %s372_s19 = sadd.s32 1, %s6642_s23  ;;  %s369_s20 = sor.u32 %s368_s15, %s367_s18 }
  0x17   : > { %9505 = sst [smem:[#allocation10_spill]] %s9504_s17  ;;  %p542_p10 = pnand %p5344_p7, %p541_p9 }
  0x18   : > { %p370_p11 = scmp.eq.s32.totalorder %s369_s20, 0 }
  0x19   : > { %545 = sbr.rel (%p542_p10) target bundleno = 1347 (0x543), region = 68 }
  0x1a   : > { %s6804_s29 = scalar_select %p370_p11, %s6642_s23, %s372_s19  }
  0x1c   : > { %9506 = sst [smem:[#allocation11_spill]] %s6804_s29 }
  0x20   : > { %s5346_s30 = sshll.u32 %s6646_s24, 3  ;;  %p655_p12 = scmp.lt.s32.totalorder %s6650_s25, 1  ;;  %vm830_vm0 = vcmask 1040384   ;;  %vm2030_vm1 = vcmask 1045504   ;;  %vm1754_vm2 = vcmask 1046528   ;;  %vm957_vm4 = vcmask 1041408  }
  0x21   : > { %p657_p13 = scmp.lt.s32.totalorder %s5346_s30, 15  ;;  %s5350_s27 = sshll.u32 %s6646_s24, 1  ;;  %vm2141_vm6 = vcmask 261120   ;;  %vm2162_vm7 = vcmask 523264   ;;  %vm2283_vm8 = vcmask 785408  }
  0x22   : > { %s656_s13 = scalar_select %p655_p12, %s6650_s25, 1 }
  0x23   : > { %s9632_s30 = smov (!%p657_p13, %s5346_s30), 15  ;;  %s5351_s18 = sadd.s32 4294967295, %s5350_s27 }
  0x24   : > { %s6809_s26 = sshll.u32 %s656_s13, 5  ;;  %s5347_s14 = sshll.u32 %s9632_s30, 1 }
  0x25   : > { %s6813_s15 = sadd.s32 %s6809_s26, %s5347_s14  ;;  %p667_p0 = scmp.gt.s32.totalorder %s5351_s18, 0 }
  0x26   : > { %s9440_s19 = sshll.u32 %s6813_s15, 3  ;;  %s9507_s3 = sld [smem:[#allocation50_spill]] }
  0x27   : > { %s9634_s18 = smov (!%p667_p0, %s5351_s18), 0  ;;  %s5647_s14 = sadd.s32 2, %s5350_s27 }
  0x28   : > { %s5352_s13 = sshll.u32 %s9634_s18, 2  ;;  %p686_p2 = scmp.lt.s32.totalorder %s5647_s14, 3 }
  0x29   : > { %p672_p1 = scmp.lt.s32.totalorder %s5352_s13, 15  ;;  %p754_p4 = scmp.eq.s32.totalorder %s6646_s24, 0 }
  0x2a   : > { %s9638_s14 = smov (!%p686_p2, %s5647_s14), 3  ;;  %s9445_s18 = smov 64  }
  0x2b   : > { %s9636_s13 = smov (!%p672_p1, %s5352_s13), 15  ;;  %s5357_s30 = sshll.u32 %s9638_s14, 2 }
  0x2c   : > { %s6821_s23 = scalar_lea.vmem %s9507_s3, %s9440_s19  ;;  %s5353_s27 = sshll.u32 %s9636_s13, 1 }
  0x2d   : > { %v2823_v0 = vld [vmem:[%s6821_s23] sm:$0xff]  ;;  %v2824_v1 = vld [vmem:[%s6821_s23 + $0x8] sm:$0xff]  ;;  %v6826_v2 = vld [vmem:[%s6821_s23 + $0x10] sm:$0xff]  ;;  %s6870_s29 = sadd.s32 %s5353_s27, %s6809_s26  ;;  %p691_p5 = scmp.lt.s32.totalorder %s5357_s30, 15 }
  0x2e   : > { %v2861_v3 = vrot.slane %v2823_v0, 1  ;;  %v2901_v4 = vrot.slane %v2823_v0, 7  ;;  %v2902_v5 = vrot.slane %v2824_v1, 7  ;;  %v2969_v6 = vrot.slane %v2824_v1, 5  ;;  %v6829_v7 = vld [vmem:[%s6821_s23 + $0x18] sm:$0xff]  ;;  %v6832_v8 = vld [vmem:[%s6821_s23 + $0x20] sm:$0xff] }
  0x2f   : > { %v2862_v9 = vrot.slane %v6826_v2, 1  ;;  %v2904_v10 = vrot.slane %v6826_v2, 7  ;;  %v2905_v11 = vrot.slane %v6829_v7, 7  ;;  %v2970_v12 = vrot.slane %v6829_v7, 5  ;;  %v2828_v33 = vld [vmem:[%s6821_s23 + $0x28] sm:$0xff]  ;;  %v2831_v38 = vld [vmem:[%s6821_s23 + $0x40] sm:$0xff] }
  0x30   : > { %v6839_v13 = vsel %vm830_vm0, %v2901_v4, %v2902_v5  ;;  %v6842_v14 = vsel %vm830_vm0, %v2861_v3, %v2901_v4  ;;  %v3005_v15 = vsel %vm830_vm0, %v2902_v5, %v2969_v6  ;;  %v2863_v16 = vrot.slane %v6832_v8, 1  ;;  %s9441_s20 = sshll.u32 %s6870_s29, 3  ;;  %s9512_s4 = sld [smem:[#allocation51_spill]]  ;;  %v2832_v47 = vld [vmem:[%s6821_s23 + $0x48] sm:$0xff] }
  0x31   : > { %9508 = vst [vmem:[#allocation12_spill] sm:$0xff] %v6839_v13  ;;  %9509 = vst [vmem:[#allocation13_spill] sm:$0xff] %v6842_v14  ;;  %v3156_v17 = vrot.slane %v6842_v14, 2  ;;  %v3157_v18 = vrot.slane %v6839_v13, 2  ;;  %v3159_v19 = vrot.slane %v3005_v15, 2  ;;  %v6849_v20 = vsel %vm830_vm0, %v2904_v10, %v2905_v11  ;;  %s9640_s30 = smov (!%p691_p5, %s5357_s30), 15 }
  0x32   : > { %9510 = vst [vmem:[#allocation14_spill] sm:$0xff] %v6849_v20  ;;  %v6852_v21 = vsel %vm830_vm0, %v2862_v9, %v2904_v10  ;;  %v3006_v22 = vsel %vm830_vm0, %v2905_v11, %v2970_v12  ;;  %v3052_v23 = vrot.slane %v6849_v20, 1  ;;  %v3046_v24 = vrot.slane %v6842_v14, 1  ;;  %s9442_s19 = smov 32   ;;  %s5358_s14 = sshll.u32 %s9640_s30, 1 }
  0x33   : > { %9511 = vst [vmem:[#allocation15_spill] sm:$0xff] %v6852_v21  ;;  %v3158_v25 = vsel %vm2030_vm1, %v3156_v17, %v3157_v18  ;;  %v3160_v26 = vsel %vm2030_vm1, %v3157_v18, %v3159_v19  ;;  %v3051_v27 = vrot.slane %v6852_v21, 1  ;;  %v3054_v28 = vrot.slane %v3006_v22, 1  ;;  %s778_s13 = scalar_select %p754_p4, 1, 0 }
  0x34   : > { %v6124_v29 = vpack.i.bf16 %v3160_v26, %v3158_v25  ;;  %v3047_v30 = vrot.slane %v6839_v13, 1  ;;  %v3049_v31 = vrot.slane %v3005_v15, 1  ;;  %v3161_v32 = vrot.slane %v6852_v21, 2  ;;  %s9518_s30 = sshll.u32 %s6813_s15, 3  ;;  %s9519_s0 = sld [smem:[#allocation49_spill]] }
  0x35   : > { %v3053_v34 = vsel %vm1754_vm2, %v3051_v27, %v3052_v23  ;;  %v3055_v35 = vsel %vm1754_vm2, %v3052_v23, %v3054_v28  ;;  %v3162_v36 = vrot.slane %v6849_v20, 2  ;;  %v3164_v37 = vrot.slane %v3006_v22, 2  ;;  %s9520_s3 = sshll.u32 %s6870_s29, 3  ;;  %s9521_s15 = smov 32   ;;  %v2829_v27 = vld [vmem:[%s6821_s23 + $0x30] sm:$0xff] }
  0x36   : > { %6125 = vrot.lane.b32.xlu1 %v6124_v29, %s9445_s18  ;;  %v6129_v39 = vpack.i.bf16 %v3055_v35, %v3053_v34  ;;  %v3048_v40 = vsel %vm1754_vm2, %v3046_v24, %v3047_v30  ;;  %v3050_v41 = vsel %vm1754_vm2, %v3047_v30, %v3049_v31  ;;  %v2907_v42 = vrot.slane %v6832_v8, 7  ;;  %s6886_s27 = scalar_lea.vmem %s9512_s4, %s9441_s20  ;;  %s6907_s20 = sadd.s32 %s5358_s14, %s6809_s26 }
  0x37   : > { %v6119_v43 = vpack.i.bf16 %v3050_v41, %v3048_v40  ;;  %v3163_v44 = vsel %vm2030_vm1, %v3161_v32, %v3162_v36  ;;  %v3165_v45 = vsel %vm2030_vm1, %v3162_v36, %v3164_v37  ;;  %v2908_v46 = vrot.slane %v2828_v33, 7  ;;  %v2821_v51 = vld [vmem:[%s6886_s27 + $0x30] sm:$0xff]  ;;  %v2822_v56 = vld [vmem:[%s6886_s27 + $0x38] sm:$0xff]  ;;  %s6929_s26 = scalar_select %p754_p4, 0, 255 }
  0x38   : > { %v6139_v48 = vpack.i.bf16 %v3165_v45, %v3163_v44  ;;  %v2971_v49 = vrot.slane %v2828_v33, 5  ;;  %v6890_v50 = vsel %vm830_vm0, %v2863_v16, %v2907_v42  ;;  %v2865_v52 = vrot.slane %v2831_v38, 1  ;;  %v2830_v32 = vld [vmem:[%s6821_s23 + $0x38] sm:$0xff]  ;;  %p755_p6 = scmp.eq.s32.totalorder %s6646_s24, 1 }
  0x39   : > { %9513 = vst [vmem:[#allocation16_spill] sm:$0xff] %v6890_v50  ;;  %6120 = vrot.lane.b32.xlu0 %v6119_v43, %s9442_s19  ;;  %v6895_v53 = vsel %vm830_vm0, %v2907_v42, %v2908_v46  ;;  %v3056_v54 = vrot.slane %v6890_v50, 1  ;;  %v3166_v55 = vrot.slane %v6890_v50, 2  ;;  %v2913_v57 = vrot.slane %v2831_v38, 7 }
  0x3a   : > { %9514 = vst [vmem:[#allocation17_spill] sm:$0xff] %v6895_v53  ;;  %6130 = vrot.lane.b32.xlu1 %v6129_v39, %s9442_s19  ;;  %v3007_v58 = vsel %vm830_vm0, %v2908_v46, %v2971_v49  ;;  %v3057_v59 = vrot.slane %v6895_v53, 1  ;;  %v3167_v60 = vrot.slane %v6895_v53, 2  ;;  %v2914_v61 = vrot.slane %v2832_v47, 7  ;;  %s6936_s19 = scalar_lea.vmem %s9519_s0, %s9518_s30  ;;  %s9567_s0 = sshll.u32 %s6907_s20, 3 }
  0x3b   : > { %v3059_v62 = vrot.slane %v3007_v58, 1  ;;  %v3169_v63 = vrot.slane %v3007_v58, 2  ;;  %v779_v0 = vstv %s778_s13  ;;  %v2973_v1 = vrot.slane %v2832_v47, 5  ;;  %v756_v37 = vld [vmem:[%s6936_s19] sm:$0xff]  ;;  %v757_v38 = vld [vmem:[%s6936_s19 + $0x8] sm:$0xff]  ;;  %v758_v43 = vld [vmem:[%s6936_s19 + $0x10] sm:$0xff]  ;;  %s7781_s29 = scalar_lea.vmem %s9427_s5, %s9567_s0 }
  0x3c   : > { %v3058_v3 = vsel %vm1754_vm2, %v3056_v54, %v3057_v59  ;;  %v3168_v4 = vsel %vm2030_vm1, %v3166_v55, %v3167_v60  ;;  %vm6911_vm3 = vcmp.eq.s32.totalorder %v779_v0, 1  ;;  %v9515_v5 = vmov 0  ;;  %v759_v44 = vld [vmem:[%s6936_s19 + $0x18] sm:$0xff]  ;;  %v760_v55 = vld [vmem:[%s6936_s19 + $0x20] sm:$0xff]  ;;  %v761_v58 = vld [vmem:[%s6936_s19 + $0x28] sm:$0xff] }
  0x3d   : > { %v9516_v5 = vsel %vm6911_vm3, 4294967295, %v9515_v5  ;;  %v6916_v6 = vsel %vm830_vm0, %v2913_v57, %v2914_v61  ;;  %v3060_v8 = vsel %vm1754_vm2, %v3057_v59, %v3059_v62  ;;  %v3170_v9 = vsel %vm2030_vm1, %v3167_v60, %v3169_v63  ;;  %s7602_s17 = scalar_select %p755_p6, 1, 0 }
  0x3e   : > { %9517 = vst [vmem:[#allocation18_spill] sm:$0xff] %v9516_v5  ;;  %v2843_v10 = vsel %vm6911_vm3, %v6826_v2, %v2821_v51  ;;  %v2844_v11 = vsel %vm6911_vm3, %v6829_v7, %v2822_v56  ;;  %6140 = vrot.lane.b32.xlu1 %v6139_v48, %s9445_s18  ;;  %v6134_v12 = vpack.i.bf16 %v3060_v8, %v3058_v3  ;;  %s6943_s18 = scalar_lea.vmem %s9423_s1, %s9520_s3  ;;  %v3067_v25 = vrot.slane %v6916_v6, 1  ;;  %s9524_s3 = smov 64  }
  0x3f   : > { %v6144_v15 = vpack.i.bf16 %v3170_v9, %v3168_v4  ;;  %v2860_v16 = vrot.slane %v2843_v10, 1  ;;  %v2898_v17 = vrot.slane %v2843_v10, 7  ;;  %v2899_v2 = vrot.slane %v2844_v11, 7  ;;  %v6954_v22 = vld [vmem:[%s6943_s18 + $0x20] sm:%s6929_s26]  ;;  %s7650_s14 = scalar_select %p755_p6, 0, 255 }
  0x40   : > { %v2968_v7 = vrot.slane %v2844_v11, 5  ;;  %v6946_v18 = vsel %vm830_vm0, %v2865_v52, %v2913_v57  ;;  %v6949_v19 = vsel %vm830_vm0, %v2914_v61, %v2973_v1  ;;  %6135 = vrot.lane.b32.xlu0 %v6134_v12, %s9521_s15  ;;  %v2864_v42 = vrot.slane %v2829_v27, 1 }
  0x41   : > { %v6957_v23 = vsel %vm830_vm0, %v2860_v16, %v2898_v17  ;;  %v3066_v24 = vrot.slane %v6946_v18, 1  ;;  %v3069_v26 = vrot.slane %v6949_v19, 1  ;;  %v6965_v29 = vsel %vm830_vm0, %v2898_v17, %v2899_v2 }
  0x42   : > { %9522 = vst [vmem:[#allocation19_spill] sm:$0xff] %v6957_v23  ;;  %9523 = vst [vmem:[#allocation20_spill] sm:$0xff] %v6965_v29  ;;  %v3004_v30 = vsel %vm830_vm0, %v2899_v2, %v2968_v7  ;;  %v3041_v31 = vrot.slane %v6957_v23, 1  ;;  %6145 = vrot.lane.b32.xlu1 %v6144_v15, %s9524_s3  ;;  %v3042_v33 = vrot.slane %v6965_v29, 1  ;;  %v3151_v35 = vrot.slane %v6957_v23, 2 }
  0x43   : > { %v3044_v34 = vrot.slane %v3004_v30, 1  ;;  %v3152_v36 = vrot.slane %v6965_v29, 2  ;;  %v3154_v39 = vrot.slane %v3004_v30, 2  ;;  %v3068_v40 = vsel %vm1754_vm2, %v3066_v24, %v3067_v25 }
  0x44   : > { %v3070_v41 = vsel %vm1754_vm2, %v3067_v25, %v3069_v26  ;;  %v3043_v45 = vsel %vm1754_vm2, %v3041_v31, %v3042_v33  ;;  %v2910_v52 = vrot.slane %v2829_v27, 7  ;;  %v2911_v54 = vrot.slane %v2830_v32, 7 }
  0x45   : > { %v3045_v46 = vsel %vm1754_vm2, %v3042_v33, %v3044_v34  ;;  %v3153_v47 = vsel %vm2030_vm1, %v3151_v35, %v3152_v36  ;;  %v6164_v48 = vpack.i.bf16 %v3070_v41, %v3068_v40  ;;  %v3155_v51 = vsel %vm2030_vm1, %v3152_v36, %v3154_v39 }
  0x46   : > { %v6149_v49 = vpack.i.bf16 %v3045_v46, %v3043_v45  ;;  %v6154_v56 = vpack.i.bf16 %v3155_v51, %v3153_v47  ;;  %v2972_v57 = vrot.slane %v2830_v32, 5  ;;  %v840_v59 = vrot.slane %v756_v37, 7 }
  0x47   : > { %v841_v60 = vrot.slane %v757_v38, 7  ;;  %v6988_v61 = vsel %vm830_vm0, %v2910_v52, %v2911_v54  ;;  %v6991_v62 = vsel %vm830_vm0, %v2864_v42, %v2910_v52  ;;  %v843_v63 = vrot.slane %v758_v43, 7 }
  0x48   : > { %6150 = vrot.lane.b32.xlu0 %v6149_v49, %s9521_s15  ;;  %9525 = vst [vmem:[#allocation21_spill] sm:$0xff] %v6988_v61  ;;  %9526 = vst [vmem:[#allocation22_spill] sm:$0xff] %v6991_v62  ;;  %v844_v0 = vrot.slane %v759_v44, 7  ;;  %6155 = vrot.lane.b32.xlu1 %v6154_v56, %s9524_s3  ;;  %v6995_v1 = vsel %vm830_vm0, %v2911_v54, %v2972_v57  ;;  %v3061_v3 = vrot.slane %v6991_v62, 1  ;;  %v3062_v4 = vrot.slane %v6988_v61, 1 }
  0x49   : > { %v842_v8 = vsel %vm830_vm0, %v840_v59, %v841_v60  ;;  %v3064_v9 = vrot.slane %v6995_v1, 1  ;;  %v846_v11 = vrot.slane %v760_v55, 7  ;;  %v847_v12 = vrot.slane %v761_v58, 7 }
  0x4a   : > { %v7002_v10 = vsel %vm830_vm0, %v843_v63, %v844_v0  ;;  %v3063_v15 = vsel %vm1754_vm2, %v3061_v3, %v3062_v4  ;;  %v918_v16 = vsel %vm830_vm0, 0.0, %v840_v59  ;;  %v7007_v17 = vsel %vm830_vm0, 0.0, %v843_v63 }
  0x4b   : > { %v932_v2 = vsel %vm830_vm0, %v841_v60, 0.0  ;;  %v3065_v7 = vsel %vm1754_vm2, %v3062_v4, %v3064_v9  ;;  %v848_v24 = vsel %vm830_vm0, %v846_v11, %v847_v12  ;;  %v920_v25 = vsel %vm830_vm0, 0.0, %v846_v11 }
  0x4c   : > { %6165 = vrot.lane.b32.xlu0 %v6164_v48, %s9521_s15  ;;  %v7015_v26 = vsel %vm830_vm0, %v844_v0, 0.0  ;;  %v6159_v27 = vpack.i.bf16 %v3065_v7, %v3063_v15  ;;  %v934_v30 = vsel %vm830_vm0, %v847_v12, 0.0  ;;  %v967_v31 = vrot.slane %v918_v16, 6 }
  0x4d   : > { %v968_v32 = vrot.slane %v842_v8, 6  ;;  %v7019_v33 = vrot.slane %v7007_v17, 6  ;;  %v7022_v34 = vrot.slane %v7002_v10, 6  ;;  %v973_v35 = vrot.slane %v920_v25, 6 }
  0x4e   : > { %v974_v36 = vrot.slane %v848_v24, 6  ;;  %6160 = vrot.lane.b32.xlu1 %v6159_v27, %s9521_s15  ;;  %v7026_v38 = vsub.f32 %v918_v16, %v967_v31  ;;  %v1093_v40 = vmul.f32 2.0, %v918_v16  ;;  %v1094_v51 = vmul.f32 2.0, %v842_v8 }
  0x4f   : > { %v969_v37 = vsel %vm957_vm4, %v967_v31, %v968_v32  ;;  %v7028_v39 = vsub.f32 %v932_v2, %v968_v32  ;;  %v7033_v41 = vsel %vm957_vm4, %v7019_v33, %v7022_v34  ;;  %v7040_v44 = vsub.f32 %v7007_v17, %v7019_v33 }
  0x50   : > { %v975_v42 = vsel %vm957_vm4, %v973_v35, %v974_v36  ;;  %v7036_v43 = vsub.f32 %v842_v8, %v969_v37  ;;  %v7044_v45 = vsub.f32 %v7002_v10, %v7033_v41  ;;  %v7048_v46 = vsub.f32 %v7015_v26, %v7022_v34 }
  0x51   : > { %v7050_v47 = vsub.f32 %v920_v25, %v973_v35  ;;  %v7052_v48 = vsub.f32 %v848_v24, %v975_v42  ;;  %v7054_v49 = vsub.f32 %v934_v30, %v974_v36  ;;  %v1095_v52 = vmul.f32 2.0, %v932_v2 }
  0x52   : > { %v1099_v54 = vmul.f32 2.0, %v920_v25  ;;  %v1100_v55 = vmul.f32 2.0, %v848_v24  ;;  %v1101_v56 = vmul.f32 2.0, %v934_v30  ;;  %v1183_v57 = vrot.slane %v1093_v40, 7 }
  0x53   : > { %v1373_v58 = vmul.f32 2.0, %v7040_v44  ;;  %v1184_v59 = vrot.slane %v1094_v51, 7  ;;  %v1186_v60 = vrot.slane %v1095_v52, 7  ;;  %v1374_v0 = vmul.f32 2.0, %v7044_v45 }
  0x54   : > { %v1193_v63 = vrot.slane %v1099_v54, 7  ;;  %v1194_v3 = vrot.slane %v1100_v55, 7  ;;  %v1196_v4 = vrot.slane %v1101_v56, 7  ;;  %v1289_v9 = vadd.f32 %v1183_v57, %v918_v16 }
  0x55   : > { %v1375_v11 = vmul.f32 2.0, %v7048_v46  ;;  %v1185_v12 = vsel %vm830_vm0, %v1183_v57, %v1184_v59  ;;  %v1187_v15 = vsel %vm830_vm0, %v1184_v59, %v1186_v60  ;;  %v1409_v27 = vadd.f32 %v1373_v58, %v7026_v38 }
  0x56   : > { %v1295_v7 = vadd.f32 %v1193_v63, %v920_v25  ;;  %v1195_v40 = vsel %vm830_vm0, %v1193_v63, %v1194_v3  ;;  %v1197_v51 = vsel %vm830_vm0, %v1194_v3, %v1196_v4  ;;  %v1290_v52 = vadd.f32 %v1185_v12, %v842_v8 }
  0x57   : > { %v1291_v54 = vadd.f32 %v1187_v15, %v932_v2  ;;  %v1296_v28 = vadd.f32 %v1195_v40, %v848_v24  ;;  %v1297_v55 = vadd.f32 %v1197_v51, %v934_v30  ;;  %v7064_v56 = vadd.f32 %v1289_v9, %v967_v31  ;;  %v762_v24 = vld [vmem:[%s6936_s19 + $0x30] sm:$0xff]  ;;  %v763_v9 = vld [vmem:[%s6936_s19 + $0x38] sm:$0xff] }
  0x58   : > { %v7066_v16 = vadd.f32 %v1295_v7, %v973_v35  ;;  %v7068_v29 = vadd.f32 %v1290_v52, %v969_v37  ;;  %v1410_v25 = vadd.f32 %v1374_v0, %v7036_v43  ;;  %v1411_v58 = vadd.f32 %v1375_v11, %v7028_v39 }
  0x59   : > { %v7070_v57 = vadd.f32 %v1291_v54, %v968_v32  ;;  %v7074_v59 = vadd.f32 %v1296_v28, %v975_v42  ;;  %v7076_v60 = vadd.f32 %v1297_v55, %v974_v36  ;;  %v1445_v8 = vadd.f32 %v1409_v27, %v7050_v47 }
  0x5a   : > { %v1481_v2 = vsub.f32 %v7066_v16, %v7064_v56  ;;  %v1446_v30 = vadd.f32 %v1410_v25, %v7052_v48  ;;  %v1447_v31 = vadd.f32 %v1411_v58, %v7054_v49  ;;  %v3171_v32 = vrot.slane %v6991_v62, 2 }
  0x5b   : > { %9527 = vst [vmem:[#allocation23_spill] sm:$0xff] %v7070_v57  ;;  %v3172_v35 = vrot.slane %v6988_v61, 2  ;;  %v1482_v28 = vsub.f32 %v7074_v59, %v7068_v29  ;;  %v1483_v36 = vsub.f32 %v7076_v60, %v7070_v57  ;;  %v1517_v37 = vand.u32 2147483647, %v1445_v8 }
  0x5c   : > { %v1589_v42 = vand.u32 2147483647, %v1481_v2  ;;  %v1518_v63 = vand.u32 2147483647, %v1446_v30  ;;  %v1519_v0 = vand.u32 2147483647, %v1447_v31 }
  0x5d   : > { %v3173_v3 = vsel %vm2030_vm1, %v3171_v32, %v3172_v35  ;;  %v3174_v4 = vrot.slane %v6995_v1, 2  ;;  %v1553_v11 = vmul.f32 0.5, %v1517_v37  ;;  %v1590_v12 = vand.u32 2147483647, %v1482_v28 }
  0x5e   : > { %v1591_v15 = vand.u32 2147483647, %v1483_v36  ;;  %v1625_v7 = vmul.f32 0.5, %v1589_v42  ;;  %v1554_v27 = vmul.f32 0.5, %v1518_v63  ;;  %v1555_v40 = vmul.f32 0.5, %v1519_v0 }
  0x5f   : > { %v3175_v51 = vsel %vm2030_vm1, %v3172_v35, %v3174_v4  ;;  %v849_v52 = vrot.slane %v762_v24, 7  ;;  %v1626_v54 = vmul.f32 0.5, %v1590_v12  ;;  %v850_v8 = vrot.slane %v763_v9, 7 }
  0x60   : > { %v1627_v55 = vmul.f32 0.5, %v1591_v15  ;;  %v7094_v25 = vadd.f32 %v1625_v7, %v1553_v11  ;;  %v6169_v58 = vpack.i.bf16 %v3175_v51, %v3173_v3  ;;  %v1096_v1 = vmul.f32 2.0, %v7007_v17 }
  0x61   : > { %v921_v2 = vsel %vm830_vm0, 0.0, %v849_v52  ;;  %v1097_v30 = vmul.f32 2.0, %v7002_v10  ;;  %v7099_v31 = vadd.f32 %v1626_v54, %v1554_v27  ;;  %v851_v35 = vsel %vm830_vm0, %v849_v52, %v850_v8 }
  0x62   : > { %9528 = vst [vmem:[#allocation24_spill] sm:$0xff] %v7094_v25  ;;  %v7101_v32 = vadd.f32 %v1627_v55, %v1555_v40  ;;  %v1709_v28 = vrot.slane %v7094_v25, 3  ;;  %v1770_v24 = vrot.slane %v7094_v25, 1  ;;  %6170 = vrot.lane.b32.xlu1 %v6169_v58, %s9524_s3  ;;  %v935_v36 = vsel %vm830_vm0, %v850_v8, 0.0 }
  0x63   : > { %9529 = vst [vmem:[#allocation25_spill] sm:$0xff] %v7099_v31  ;;  %v976_v37 = vrot.slane %v921_v2, 6  ;;  %v1098_v42 = vmul.f32 2.0, %v7015_v26  ;;  %v1771_v63 = vrot.slane %v7099_v31, 1  ;;  %v977_v4 = vrot.slane %v851_v35, 6 }
  0x64   : > { %9530 = vst [vmem:[#allocation26_spill] sm:$0xff] %v7101_v32  ;;  %v1773_v0 = vrot.slane %v7101_v32, 1  ;;  %v1854_v3 = vrot.slane %v7101_v32, 7  ;;  %v1102_v11 = vmul.f32 2.0, %v921_v2  ;;  %v1103_v12 = vmul.f32 2.0, %v851_v35  ;;  %v6467_v32 = vld [vmem:[%s6943_s18 + $0x38] sm:%s6929_s26] }
  0x65   : > { %v7112_v9 = vsub.f32 %v921_v2, %v976_v37  ;;  %v1104_v15 = vmul.f32 2.0, %v935_v36  ;;  %v1772_v7 = vsel %vm1754_vm2, %v1770_v24, %v1771_v63  ;;  %v978_v51 = vsel %vm957_vm4, %v976_v37, %v977_v4 }
  0x66   : > { %v7116_v27 = vsel %vm1754_vm2, %v1771_v63, %v1773_v0  ;;  %v1890_v40 = vsel %vm830_vm0, %v1773_v0, %v1854_v3  ;;  %v7121_v52 = vsel %vm830_vm0, %v1709_v28, %v1772_v7  ;;  %v7124_v58 = vsub.f32 %v851_v35, %v978_v51 }
  0x67   : > { %9531 = vst [vmem:[#allocation27_spill] sm:$0xff] %v7116_v27  ;;  %9532 = vst [vmem:[#allocation28_spill] sm:$0xff] %v7121_v52  ;;  %v1936_v54 = vrot.slane %v7116_v27, 1  ;;  %v1938_v55 = vrot.slane %v1890_v40, 1  ;;  %v1935_v8 = vrot.slane %v7121_v52, 1  ;;  %v7127_v62 = vsub.f32 %v935_v36, %v977_v4 }
  0x68   : > { %v1188_v24 = vrot.slane %v1096_v1, 7  ;;  %v1189_v61 = vrot.slane %v1097_v30, 7  ;;  %v1191_v23 = vrot.slane %v1098_v42, 7  ;;  %v1198_v0 = vrot.slane %v1102_v11, 7 }
  0x69   : > { %v1939_v63 = vsel %vm1754_vm2, %v1936_v54, %v1938_v55  ;;  %v1199_v3 = vrot.slane %v1103_v12, 7  ;;  %v1937_v50 = vsel %vm1754_vm2, %v1935_v8, %v1936_v54  ;;  %v1201_v7 = vrot.slane %v1104_v15, 7 }
  0x6a   : > { %v1190_v28 = vsel %vm830_vm0, %v1188_v24, %v1189_v61  ;;  %v1292_v53 = vadd.f32 %v1188_v24, %v7007_v17  ;;  %v6174_v14 = vpack.i.bf16 %v1939_v63, %v1937_v50  ;;  %v1192_v13 = vsel %vm830_vm0, %v1189_v61, %v1191_v23 }
  0x6b   : > { %v1200_v21 = vsel %vm830_vm0, %v1198_v0, %v1199_v3  ;;  %v1293_v1 = vadd.f32 %v1190_v28, %v7002_v10  ;;  %v1202_v30 = vsel %vm830_vm0, %v1199_v3, %v1201_v7  ;;  %v1294_v42 = vadd.f32 %v1192_v13, %v7015_v26 }
  0x6c   : > { %v1298_v11 = vadd.f32 %v1198_v0, %v921_v2  ;;  %v1299_v12 = vadd.f32 %v1200_v21, %v851_v35  ;;  %6175 = vrot.lane.b32.xlu0 %v6174_v14, %s9521_s15  ;;  %v1300_v54 = vadd.f32 %v1202_v30, %v935_v36  ;;  %v7140_v15 = vadd.f32 %v1292_v53, %v7019_v33 }
  0x6d   : > { %v7143_v50 = vadd.f32 %v1293_v1, %v7033_v41  ;;  %v1376_v23 = vmul.f32 2.0, %v7050_v47  ;;  %v7147_v61 = vadd.f32 %v1294_v42, %v7022_v34  ;;  %v1377_v21 = vmul.f32 2.0, %v7052_v48  ;;  %v765_v1 = vld [vmem:[%s6936_s19 + $0x48] sm:$0xff] }
  0x6e   : > { %v7149_v10 = vadd.f32 %v1298_v11, %v976_v37  ;;  %v7151_v13 = vadd.f32 %v1299_v12, %v978_v51  ;;  %v7154_v14 = vadd.f32 %v1300_v54, %v977_v4  ;;  %v1378_v53 = vmul.f32 2.0, %v7054_v49  ;;  %v764_v51 = vld [vmem:[%s6936_s19 + $0x40] sm:$0xff] }
  0x6f   : > { %v1412_v17 = vadd.f32 %v1376_v23, %v7040_v44  ;;  %v2046_v26 = vrot.slane %v7121_v52, 2  ;;  %v1413_v33 = vadd.f32 %v1377_v21, %v7044_v45  ;;  %v2047_v2 = vrot.slane %v7116_v27, 2  ;;  %v6464_v52 = vld [vmem:[%s6943_s18 + $0x30] sm:%s6929_s26] }
  0x70   : > { %v1484_v34 = vsub.f32 %v7149_v10, %v7140_v15  ;;  %v1485_v41 = vsub.f32 %v7151_v13, %v7143_v50  ;;  %v1414_v35 = vadd.f32 %v1378_v53, %v7048_v46  ;;  %v1486_v37 = vsub.f32 %v7154_v14, %v7147_v61 }
  0x71   : > { %v1448_v36 = vadd.f32 %v1412_v17, %v7112_v9  ;;  %v2049_v4 = vrot.slane %v1890_v40, 2  ;;  %v1449_v55 = vadd.f32 %v1413_v33, %v7124_v58  ;;  %v2048_v63 = vsel %vm2030_vm1, %v2046_v26, %v2047_v2 }
  0x72   : > { %v1592_v8 = vand.u32 2147483647, %v1484_v34  ;;  %v1593_v24 = vand.u32 2147483647, %v1485_v41  ;;  %v1450_v0 = vadd.f32 %v1414_v35, %v7127_v62  ;;  %v1594_v28 = vand.u32 2147483647, %v1486_v37 }
  0x73   : > { %v1520_v3 = vand.u32 2147483647, %v1448_v36  ;;  %v2050_v7 = vsel %vm2030_vm1, %v2047_v2, %v2049_v4  ;;  %v1521_v30 = vand.u32 2147483647, %v1449_v55  ;;  %v852_v21 = vrot.slane %v764_v51, 7 }
  0x74   : > { %v1628_v42 = vmul.f32 0.5, %v1592_v8  ;;  %v1629_v11 = vmul.f32 0.5, %v1593_v24  ;;  %v6184_v12 = vpack.i.bf16 %v2050_v7, %v2048_v63  ;;  %v1522_v54 = vand.u32 2147483647, %v1450_v0 }
  0x75   : > { %v1556_v40 = vmul.f32 0.5, %v1520_v3  ;;  %v1630_v23 = vmul.f32 0.5, %v1594_v28  ;;  %v1557_v53 = vmul.f32 0.5, %v1521_v30  ;;  %v853_v17 = vrot.slane %v765_v1, 7 }
  0x76   : > { %6185 = vrot.lane.b32.xlu1 %v6184_v12, %s9524_s3  ;;  %v1379_v26 = vmul.f32 2.0, %v7112_v9  ;;  %v1380_v33 = vmul.f32 2.0, %v7124_v58  ;;  %v1558_v34 = vmul.f32 0.5, %v1522_v54  ;;  %v922_v2 = vsel %vm830_vm0, 0.0, %v852_v21 }
  0x77   : > { %v1664_v41 = vadd.f32 %v1628_v42, %v1556_v40  ;;  %v1381_v35 = vmul.f32 2.0, %v7127_v62  ;;  %v1665_v36 = vadd.f32 %v1629_v11, %v1557_v53  ;;  %v854_v37 = vsel %vm830_vm0, %v852_v21, %v853_v17 }
  0x78   : > { %v936_v4 = vsel %vm830_vm0, %v853_v17, 0.0  ;;  %v979_v51 = vrot.slane %v922_v2, 6  ;;  %v1666_v55 = vadd.f32 %v1630_v23, %v1558_v34  ;;  %v980_v63 = vrot.slane %v854_v37, 6 }
  0x79   : > { %v1710_v8 = vrot.slane %v1664_v41, 3  ;;  %v1775_v24 = vrot.slane %v1664_v41, 1  ;;  %v1776_v0 = vrot.slane %v1665_v36, 1  ;;  %v1105_v28 = vmul.f32 2.0, %v922_v2 }
  0x7a   : > { %v7182_v3 = vsub.f32 %v922_v2, %v979_v51  ;;  %v1106_v7 = vmul.f32 2.0, %v854_v37  ;;  %v1778_v1 = vrot.slane %v1666_v55, 1  ;;  %v1855_v30 = vrot.slane %v1666_v55, 7 }
  0x7b   : > { %v981_v42 = vsel %vm957_vm4, %v979_v51, %v980_v63  ;;  %v7185_v11 = vsub.f32 %v936_v4, %v980_v63  ;;  %v1777_v12 = vsel %vm1754_vm2, %v1775_v24, %v1776_v0  ;;  %v1107_v40 = vmul.f32 2.0, %v936_v4 }
  0x7c   : > { %v7188_v54 = vsub.f32 %v854_v37, %v981_v42  ;;  %v1203_v23 = vrot.slane %v1105_v28, 7  ;;  %v7191_v21 = vsel %vm1754_vm2, %v1776_v0, %v1778_v1  ;;  %v7194_v53 = vsel %vm830_vm0, %v1710_v8, %v1777_v12 }
  0x7d   : > { %9533 = vst [vmem:[#allocation29_spill] sm:$0xff] %v7191_v21  ;;  %9534 = vst [vmem:[#allocation30_spill] sm:$0xff] %v7194_v53  ;;  %v1891_v17 = vsel %vm830_vm0, %v1778_v1, %v1855_v30  ;;  %v1204_v34 = vrot.slane %v1106_v7, 7  ;;  %v1940_v41 = vrot.slane %v7194_v53, 1  ;;  %v1941_v36 = vrot.slane %v7191_v21, 1 }
  0x7e   : > { %v1943_v55 = vrot.slane %v1891_v17, 1  ;;  %v2051_v24 = vrot.slane %v7194_v53, 2  ;;  %v2052_v27 = vrot.slane %v7191_v21, 2  ;;  %v2054_v28 = vrot.slane %v1891_v17, 2 }
  0x7f   : > { %v1205_v0 = vsel %vm830_vm0, %v1203_v23, %v1204_v34  ;;  %v1206_v20 = vrot.slane %v1107_v40, 7  ;;  %v1942_v8 = vsel %vm1754_vm2, %v1940_v41, %v1941_v36  ;;  %v1301_v7 = vadd.f32 %v1203_v23, %v922_v2 }
  0x80   : > { %v1944_v1 = vsel %vm1754_vm2, %v1941_v36, %v1943_v55  ;;  %v1302_v30 = vadd.f32 %v1205_v0, %v854_v37  ;;  %v2053_v31 = vsel %vm2030_vm1, %v2051_v24, %v2052_v27  ;;  %v2055_v5 = vsel %vm2030_vm1, %v2052_v27, %v2054_v28 }
  0x81   : > { %v6179_v12 = vpack.i.bf16 %v1944_v1, %v1942_v8  ;;  %v1207_v53 = vsel %vm830_vm0, %v1204_v34, %v1206_v20  ;;  %v6189_v25 = vpack.i.bf16 %v2055_v5, %v2053_v31  ;;  %v7211_v17 = vadd.f32 %v1301_v7, %v979_v51 }
  0x82   : > { %v1303_v21 = vadd.f32 %v1207_v53, %v936_v4  ;;  %v7213_v57 = vadd.f32 %v1302_v30, %v981_v42  ;;  %v1415_v40 = vadd.f32 %v1379_v26, %v7050_v47  ;;  %v1416_v2 = vadd.f32 %v1380_v33, %v7052_v48 }
  0x83   : > { %6180 = vrot.lane.b32.xlu0 %v6179_v12, %s9521_s15  ;;  %v1417_v37 = vadd.f32 %v1381_v35, %v7054_v49  ;;  %v837_v23 = vrot.slane %v6464_v52, 7  ;;  %v1487_v20 = vsub.f32 %v7211_v17, %v7066_v16  ;;  %v838_v31 = vrot.slane %v6467_v32, 7 }
  0x84   : > { %v7219_v41 = vadd.f32 %v1303_v21, %v980_v63  ;;  %v1488_v5 = vsub.f32 %v7213_v57, %v7074_v59  ;;  %v1451_v27 = vadd.f32 %v1415_v40, %v7182_v3  ;;  %v1452_v4 = vadd.f32 %v1416_v2, %v7188_v54 }
  0x85   : > { %v1453_v47 = vadd.f32 %v1417_v37, %v7185_v11  ;;  %v917_v48 = vsel %vm830_vm0, 0.0, %v837_v23  ;;  %v1595_v52 = vand.u32 2147483647, %v1487_v20  ;;  %v839_v59 = vsel %vm830_vm0, %v837_v23, %v838_v31 }
  0x86   : > { %v1489_v49 = vsub.f32 %v7219_v41, %v7076_v60  ;;  %v1596_v26 = vand.u32 2147483647, %v1488_v5  ;;  %v1523_v16 = vand.u32 2147483647, %v1451_v27  ;;  %v1524_v33 = vand.u32 2147483647, %v1452_v4 }
  0x87   : > { %6190 = vrot.lane.b32.xlu0 %v6189_v25, %s9524_s3  ;;  %v1525_v35 = vand.u32 2147483647, %v1453_v47  ;;  %v1631_v51 = vmul.f32 0.5, %v1595_v52  ;;  %v931_v42 = vsel %vm830_vm0, %v838_v31, 0.0  ;;  %v964_v36 = vrot.slane %v917_v48, 6 }
  0x88   : > { %v1597_v32 = vand.u32 2147483647, %v1489_v49  ;;  %v1632_v63 = vmul.f32 0.5, %v1596_v26  ;;  %v1559_v21 = vmul.f32 0.5, %v1523_v16  ;;  %v1560_v53 = vmul.f32 0.5, %v1524_v33 }
  0x89   : > { %v1561_v34 = vmul.f32 0.5, %v1525_v35  ;;  %v965_v60 = vrot.slane %v839_v59, 6  ;;  %v1090_v24 = vmul.f32 2.0, %v917_v48  ;;  %v1091_v28 = vmul.f32 2.0, %v839_v59 }
  0x8a   : > { %v1633_v55 = vmul.f32 0.5, %v1597_v32  ;;  %v1667_v0 = vadd.f32 %v1631_v51, %v1559_v21  ;;  %v1668_v25 = vadd.f32 %v1632_v63, %v1560_v53  ;;  %v7234_v8 = vsub.f32 %v917_v48, %v964_v36 }
  0x8b   : > { %v1092_v1 = vmul.f32 2.0, %v931_v42  ;;  %v966_v30 = vsel %vm957_vm4, %v964_v36, %v965_v60  ;;  %v7237_v12 = vsub.f32 %v931_v42, %v965_v60  ;;  %v1178_v40 = vrot.slane %v1090_v24, 7 }
  0x8c   : > { %v1669_v7 = vadd.f32 %v1633_v55, %v1561_v34  ;;  %v1711_v2 = vrot.slane %v1667_v0, 3  ;;  %v1780_v37 = vrot.slane %v1667_v0, 1  ;;  %v1781_v23 = vrot.slane %v1668_v25, 1 }
  0x8d   : > { %v7239_v20 = vsub.f32 %v839_v59, %v966_v30  ;;  %v1179_v27 = vrot.slane %v1091_v28, 7  ;;  %v1181_v4 = vrot.slane %v1092_v1, 7  ;;  %v1286_v49 = vadd.f32 %v1178_v40, %v917_v48 }
  0x8e   : > { %v1783_v5 = vrot.slane %v1669_v7, 1  ;;  %v1856_v31 = vrot.slane %v1669_v7, 7  ;;  %v1782_v47 = vsel %vm1754_vm2, %v1780_v37, %v1781_v23  ;;  %v1370_v52 = vmul.f32 2.0, %v7026_v38  ;;  %v766_v7 = vld [vmem:[%s6936_s19 + $0x50] sm:$0xff] }
  0x8f   : > { %v1371_v26 = vmul.f32 2.0, %v7036_v43  ;;  %v7248_v33 = vsel %vm830_vm0, %v1711_v2, %v1782_v47  ;;  %v1180_v32 = vsel %vm830_vm0, %v1178_v40, %v1179_v27  ;;  %v1182_v55 = vsel %vm830_vm0, %v1179_v27, %v1181_v4 }
  0x90   : > { %v7245_v16 = vsel %vm1754_vm2, %v1781_v23, %v1783_v5  ;;  %9536 = vst [vmem:[#allocation32_spill] sm:$0xff] %v7248_v33  ;;  %v1892_v35 = vsel %vm830_vm0, %v1783_v5, %v1856_v31  ;;  %v2056_v51 = vrot.slane %v7248_v33, 2  ;;  %v1945_v21 = vrot.slane %v7248_v33, 1  ;;  %v767_v5 = vld [vmem:[%s6936_s19 + $0x58] sm:$0xff] }
  0x91   : > { %9535 = vst [vmem:[#allocation31_spill] sm:$0xff] %v7245_v16  ;;  %v2057_v63 = vrot.slane %v7245_v16, 2  ;;  %v2059_v48 = vrot.slane %v1892_v35, 2  ;;  %v1946_v53 = vrot.slane %v7245_v16, 1  ;;  %v1948_v34 = vrot.slane %v1892_v35, 1 }
  0x92   : > { %v1287_v24 = vadd.f32 %v1180_v32, %v839_v59  ;;  %v1288_v25 = vadd.f32 %v1182_v55, %v931_v42  ;;  %v7259_v1 = vadd.f32 %v1286_v49, %v964_v36  ;;  %v1372_v59 = vmul.f32 2.0, %v7028_v39 }
  0x93   : > { %v2058_v28 = vsel %vm2030_vm1, %v2056_v51, %v2057_v63  ;;  %v2060_v0 = vsel %vm2030_vm1, %v2057_v63, %v2059_v48  ;;  %v1947_v2 = vsel %vm1754_vm2, %v1945_v21, %v1946_v53  ;;  %v1949_v37 = vsel %vm1754_vm2, %v1946_v53, %v1948_v34 }
  0x94   : > { %v6204_v40 = vpack.i.bf16 %v2060_v0, %v2058_v28  ;;  %v7264_v23 = vadd.f32 %v1287_v24, %v966_v30  ;;  %v6194_v31 = vpack.i.bf16 %v1949_v37, %v1947_v2  ;;  %v7267_v47 = vadd.f32 %v1288_v25, %v965_v60 }
  0x95   : > { %v1406_v27 = vadd.f32 %v1370_v52, %v7234_v8  ;;  %v1407_v42 = vadd.f32 %v1371_v26, %v7239_v20  ;;  %v1478_v36 = vsub.f32 %v7140_v15, %v7259_v1  ;;  %v855_v30 = vrot.slane %v766_v7, 7 }
  0x96   : > { %6205 = vrot.lane.b32.xlu1 %v6204_v40, %s9524_s3  ;;  %v1479_v4 = vsub.f32 %v7143_v50, %v7264_v23  ;;  %6195 = vrot.lane.b32.xlu0 %v6194_v31, %s9521_s15  ;;  %v1408_v60 = vadd.f32 %v1372_v59, %v7237_v12  ;;  %v1480_v52 = vsub.f32 %v7147_v61, %v7267_v47  ;;  %v856_v35 = vrot.slane %v767_v5, 7 }
  0x97   : > { %v1442_v49 = vadd.f32 %v1406_v27, %v7040_v44  ;;  %v1443_v32 = vadd.f32 %v1407_v42, %v7044_v45  ;;  %v1586_v26 = vand.u32 2147483647, %v1478_v36  ;;  %v923_v15 = vsel %vm830_vm0, 0.0, %v855_v30 }
  0x98   : > { %v1587_v51 = vand.u32 2147483647, %v1479_v4  ;;  %v1444_v63 = vadd.f32 %v1408_v60, %v7048_v46  ;;  %v1588_v48 = vand.u32 2147483647, %v1480_v52  ;;  %v857_v21 = vsel %vm830_vm0, %v855_v30, %v856_v35 }
  0x99   : > { %v1514_v50 = vand.u32 2147483647, %v1442_v49  ;;  %v1515_v53 = vand.u32 2147483647, %v1443_v32  ;;  %v1622_v34 = vmul.f32 0.5, %v1586_v26  ;;  %v937_v44 = vsel %vm830_vm0, %v856_v35, 0.0 }
  0x9a   : > { %v1623_v55 = vmul.f32 0.5, %v1587_v51  ;;  %v1516_v24 = vand.u32 2147483647, %v1444_v63  ;;  %v1624_v28 = vmul.f32 0.5, %v1588_v48  ;;  %v982_v0 = vrot.slane %v923_v15, 6 }
  0x9b   : > { %v1550_v61 = vmul.f32 0.5, %v1514_v50  ;;  %v1551_v45 = vmul.f32 0.5, %v1515_v53  ;;  %v983_v25 = vrot.slane %v857_v21, 6  ;;  %v1108_v7 = vmul.f32 2.0, %v923_v15 }
  0x9c   : > { %v1109_v40 = vmul.f32 2.0, %v857_v21  ;;  %v1552_v2 = vmul.f32 0.5, %v1516_v24  ;;  %v7287_v46 = vsub.f32 %v923_v15, %v982_v0  ;;  %v1110_v5 = vmul.f32 2.0, %v937_v44 }
  0x9d   : > { %v1658_v37 = vadd.f32 %v1622_v34, %v1550_v61  ;;  %v1659_v31 = vadd.f32 %v1623_v55, %v1551_v45  ;;  %v984_v59 = vsel %vm957_vm4, %v982_v0, %v983_v25  ;;  %v7290_v27 = vsub.f32 %v937_v44, %v983_v25 }
  0x9e   : > { %v1208_v42 = vrot.slane %v1108_v7, 7  ;;  %v1660_v36 = vadd.f32 %v1624_v28, %v1552_v2  ;;  %v7292_v60 = vsub.f32 %v857_v21, %v984_v59  ;;  %v1209_v52 = vrot.slane %v1109_v40, 7 }
  0x9f   : > { %v1708_v4 = vrot.slane %v1658_v37, 3  ;;  %v1765_v30 = vrot.slane %v1658_v37, 1  ;;  %v1766_v49 = vrot.slane %v1659_v31, 1  ;;  %v1211_v35 = vrot.slane %v1110_v5, 7 }
  0xa0   : > { %v1304_v32 = vadd.f32 %v1208_v42, %v923_v15  ;;  %v1768_v26 = vrot.slane %v1660_v36, 1  ;;  %v1853_v51 = vrot.slane %v1660_v36, 7  ;;  %v1382_v63 = vmul.f32 2.0, %v7182_v3 }
  0xa1   : > { %v1383_v50 = vmul.f32 2.0, %v7188_v54  ;;  %v1767_v48 = vsel %vm1754_vm2, %v1765_v30, %v1766_v49  ;;  %v1210_v53 = vsel %vm830_vm0, %v1208_v42, %v1209_v52  ;;  %v1212_v34 = vsel %vm830_vm0, %v1209_v52, %v1211_v35 }
  0xa2   : > { %v7299_v55 = vadd.f32 %v1304_v32, %v982_v0  ;;  %v7302_v24 = vsel %vm1754_vm2, %v1766_v49, %v1768_v26  ;;  %v7305_v61 = vsel %vm830_vm0, %v1708_v4, %v1767_v48  ;;  %v1889_v15 = vsel %vm830_vm0, %v1768_v26, %v1853_v51 }
  0xa3   : > { %9537 = vst [vmem:[#allocation33_spill] sm:$0xff] %v7302_v24  ;;  %9538 = vst [vmem:[#allocation34_spill] sm:$0xff] %v7305_v61  ;;  %v1305_v28 = vadd.f32 %v1210_v53, %v857_v21  ;;  %v1930_v45 = vrot.slane %v7305_v61, 1  ;;  %v1931_v7 = vrot.slane %v7302_v24, 1  ;;  %v1933_v40 = vrot.slane %v1889_v15, 1 }
  0xa4   : > { %v1306_v2 = vadd.f32 %v1212_v34, %v937_v44  ;;  %v1384_v0 = vmul.f32 2.0, %v7185_v11  ;;  %v1418_v5 = vadd.f32 %v1382_v63, %v7112_v9  ;;  %v1419_v31 = vadd.f32 %v1383_v50, %v7124_v58  ;;  %v6470_v34 = vld [vmem:[%s6943_s18 + $0x28] sm:%s6929_s26] }
  0xa5   : > { %v7310_v37 = vadd.f32 %v1305_v28, %v984_v59  ;;  %v1932_v42 = vsel %vm1754_vm2, %v1930_v45, %v1931_v7  ;;  %v1934_v36 = vsel %vm1754_vm2, %v1931_v7, %v1933_v40  ;;  %v1490_v21 = vsub.f32 %v7299_v55, %v7149_v10 }
  0xa6   : > { %v7317_v4 = vadd.f32 %v1306_v2, %v983_v25  ;;  %v6209_v30 = vpack.i.bf16 %v1934_v36, %v1932_v42  ;;  %v1420_v44 = vadd.f32 %v1384_v0, %v7127_v62  ;;  %v1454_v59 = vadd.f32 %v1418_v5, %v7287_v46 }
  0xa7   : > { %v1455_v49 = vadd.f32 %v1419_v31, %v7292_v60  ;;  %v1491_v9 = vsub.f32 %v7310_v37, %v7151_v13  ;;  %v1598_v25 = vand.u32 2147483647, %v1490_v21  ;;  %v3176_v52 = vrot.slane %v6946_v18, 2 }
  0xa8   : > { %v1492_v58 = vsub.f32 %v7317_v4, %v7154_v14  ;;  %6210 = vrot.lane.b32.xlu1 %v6209_v30, %s9521_s15  ;;  %v1456_v10 = vadd.f32 %v1420_v44, %v7290_v27  ;;  %v1526_v62 = vand.u32 2147483647, %v1454_v59  ;;  %v3177_v32 = vrot.slane %v6916_v6, 2 }
  0xa9   : > { %v1527_v35 = vand.u32 2147483647, %v1455_v49  ;;  %v1599_v26 = vand.u32 2147483647, %v1491_v9  ;;  %v1634_v63 = vmul.f32 0.5, %v1598_v25  ;;  %v3179_v13 = vrot.slane %v6949_v19, 2 }
  0xaa   : > { %v1600_v51 = vand.u32 2147483647, %v1492_v58  ;;  %v1528_v50 = vand.u32 2147483647, %v1456_v10  ;;  %v1562_v14 = vmul.f32 0.5, %v1526_v62  ;;  %v3178_v53 = vsel %vm2030_vm1, %v3176_v52, %v3177_v32 }
  0xab   : > { %v1563_v48 = vmul.f32 0.5, %v1527_v35  ;;  %v1635_v28 = vmul.f32 0.5, %v1599_v26  ;;  %v3180_v7 = vsel %vm2030_vm1, %v3177_v32, %v3179_v13  ;;  %v2041_v40 = vrot.slane %v7305_v61, 2 }
  0xac   : > { %v1636_v45 = vmul.f32 0.5, %v1600_v51  ;;  %v1564_v2 = vmul.f32 0.5, %v1528_v50  ;;  %v1670_v0 = vadd.f32 %v1634_v63, %v1562_v14  ;;  %v6229_v5 = vpack.i.bf16 %v3180_v7, %v3178_v53 }
  0xad   : > { %v2042_v31 = vrot.slane %v7302_v24, 2  ;;  %v1671_v42 = vadd.f32 %v1635_v28, %v1563_v48  ;;  %v2044_v36 = vrot.slane %v1889_v15, 2  ;;  %v835_v19 = vrot.slane %v6470_v34, 7 }
  0xae   : > { %v9539_v21 = vrot.slane %v6954_v22, 7  ;;  %v1672_v44 = vadd.f32 %v1636_v45, %v1564_v2  ;;  %v1712_v59 = vrot.slane %v1670_v0, 3  ;;  %v1785_v49 = vrot.slane %v1670_v0, 1  ;;  %6230 = vrot.lane.b32.xlu1 %v6229_v5, %s9524_s3 }
  0xaf   : > { %v2043_v9 = vsel %vm2030_vm1, %v2041_v40, %v2042_v31  ;;  %v1786_v58 = vrot.slane %v1671_v42, 1  ;;  %v2045_v25 = vsel %vm2030_vm1, %v2042_v31, %v2044_v36  ;;  %v930_v15 = vsel %vm830_vm0, %v835_v19, 0.0  ;;  %v2833_v31 = vld [vmem:[%s6821_s23 + $0x50] sm:$0xff] }
  0xb0   : > { %v916_v30 = vsel %vm830_vm0, 0.0, %v9539_v21  ;;  %v9540_v52 = vmov %v9539_v21  ;;  %v1788_v62 = vrot.slane %v1672_v44, 1  ;;  %v1857_v35 = vrot.slane %v1672_v44, 7 }
  0xb1   : > { %v836_v10 = vsel %vm830_vm0, %v9540_v52, %v835_v19  ;;  %v6214_v32 = vpack.i.bf16 %v2045_v25, %v2043_v9  ;;  %v961_v26 = vrot.slane %v916_v30, 6  ;;  %v1787_v51 = vsel %vm1754_vm2, %v1785_v49, %v1786_v58 }
  0xb2   : > { %v962_v63 = vrot.slane %v836_v10, 6  ;;  %v1087_v13 = vmul.f32 2.0, %v916_v30  ;;  %v1088_v50 = vmul.f32 2.0, %v836_v10  ;;  %v7351_v14 = vsel %vm1754_vm2, %v1786_v58, %v1788_v62 }
  0xb3   : > { %9541 = vst [vmem:[#allocation35_spill] sm:$0xff] %v7351_v14  ;;  %v7354_v48 = vsel %vm830_vm0, %v1712_v59, %v1787_v51  ;;  %v7357_v22 = vsel %vm830_vm0, %v1788_v62, %v1857_v35  ;;  %v7359_v53 = vsub.f32 %v916_v30, %v961_v26  ;;  %v1951_v28 = vrot.slane %v7351_v14, 1  ;;  %v2834_v62 = vld [vmem:[%s6821_s23 + $0x58] sm:$0xff] }
  0xb4   : > { %9542 = vst [vmem:[#allocation36_spill] sm:$0xff] %v7354_v48  ;;  %v1950_v34 = vrot.slane %v7354_v48, 1  ;;  %v1953_v45 = vrot.slane %v7357_v22, 1  ;;  %v963_v7 = vsel %vm957_vm4, %v961_v26, %v962_v63  ;;  %v7367_v2 = vsub.f32 %v930_v15, %v962_v63 }
  0xb5   : > { %v7365_v40 = vsub.f32 %v836_v10, %v963_v7  ;;  %v1089_v0 = vmul.f32 2.0, %v930_v15  ;;  %v1173_v5 = vrot.slane %v1087_v13, 7  ;;  %v1174_v19 = vrot.slane %v1088_v50, 7 }
  0xb6   : > { %v1952_v42 = vsel %vm1754_vm2, %v1950_v34, %v1951_v28  ;;  %v1954_v36 = vsel %vm1754_vm2, %v1951_v28, %v1953_v45  ;;  %v1367_v21 = vmul.f32 2.0, %v7234_v8  ;;  %v1368_v9 = vmul.f32 2.0, %v7239_v20 }
  0xb7   : > { %v6199_v44 = vpack.i.bf16 %v1954_v36, %v1952_v42  ;;  %v1176_v59 = vrot.slane %v1089_v0, 7  ;;  %v1283_v49 = vadd.f32 %v1173_v5, %v916_v30  ;;  %v1175_v58 = vsel %vm830_vm0, %v1173_v5, %v1174_v19 }
  0xb8   : > { %v1369_v25 = vmul.f32 2.0, %v7237_v12  ;;  %v1403_v52 = vadd.f32 %v1367_v21, %v7359_v53  ;;  %v2866_v35 = vrot.slane %v2833_v31, 1  ;;  %v1284_v13 = vadd.f32 %v1175_v58, %v836_v10 }
  0xb9   : > { %6200 = vrot.lane.b32.xlu0 %v6199_v44, %s9521_s15  ;;  %v1177_v51 = vsel %vm830_vm0, %v1174_v19, %v1176_v59  ;;  %v1325_v50 = vadd.f32 %v1283_v49, %v961_v26  ;;  %v1404_v34 = vadd.f32 %v1368_v9, %v7365_v40  ;;  %v2916_v0 = vrot.slane %v2833_v31, 7 }
  0xba   : > { %v1285_v28 = vadd.f32 %v1177_v51, %v930_v15  ;;  %v1405_v30 = vadd.f32 %v1369_v25, %v7367_v2  ;;  %v1439_v45 = vadd.f32 %v1403_v52, %v7026_v38  ;;  %v1326_v5 = vadd.f32 %v1284_v13, %v963_v7  ;;  %v9544_v7 = vld [vmem:[#allocation23_spill] sm:$0xff] }
  0xbb   : > { %v1440_v42 = vadd.f32 %v1404_v34, %v7036_v43  ;;  %v1475_v36 = vsub.f32 %v7064_v56, %v1325_v50  ;;  %v2917_v21 = vrot.slane %v2834_v62, 7  ;;  %v2974_v10 = vrot.slane %v2834_v62, 5  ;;  %v768_v62 = vld [vmem:[%s6936_s19 + $0x60] sm:$0xff] }
  0xbc   : > { %v1327_v16 = vadd.f32 %v1285_v28, %v962_v63  ;;  %v1441_v44 = vadd.f32 %v1405_v30, %v7028_v39  ;;  %v1511_v19 = vand.u32 2147483647, %v1439_v45  ;;  %v1476_v15 = vsub.f32 %v7068_v29, %v1326_v5  ;;  %v769_v45 = vld [vmem:[%s6936_s19 + $0x68] sm:$0xff]  ;;  %v9546_v5 = vld [vmem:[#allocation24_spill] sm:$0xff] }
  0xbd   : > { %6215 = vrot.lane.b32.xlu0 %v6214_v32, %s9524_s3  ;;  %v1512_v26 = vand.u32 2147483647, %v1440_v42  ;;  %v1583_v59 = vand.u32 2147483647, %v1475_v36  ;;  %v7389_v38 = vsel %vm830_vm0, %v2916_v0, %v2917_v21  ;;  %v7393_v63 = vsel %vm830_vm0, %v2866_v35, %v2916_v0 }
  0xbe   : > { %9543 = vst [vmem:[#allocation37_spill] sm:$0xff] %v7389_v38  ;;  %v1477_v43 = vsub.f32 %v9544_v7, %v1327_v16  ;;  %v1513_v31 = vand.u32 2147483647, %v1441_v44  ;;  %v1547_v56 = vmul.f32 0.5, %v1511_v19  ;;  %9545 = vst [vmem:[#allocation23_spill] sm:$0xff] %v7393_v63  ;;  %v7396_v32 = vsel %vm830_vm0, %v2917_v21, %v2974_v10 }
  0xbf   : > { %v1548_v39 = vmul.f32 0.5, %v1512_v26  ;;  %v1584_v49 = vand.u32 2147483647, %v1476_v15  ;;  %v1619_v9 = vmul.f32 0.5, %v1583_v59  ;;  %v3071_v25 = vrot.slane %v7393_v63, 1  ;;  %v9548_v59 = vld [vmem:[#allocation25_spill] sm:$0xff] }
  0xc0   : > { %v1549_v29 = vmul.f32 0.5, %v1513_v31  ;;  %v1585_v58 = vand.u32 2147483647, %v1477_v43  ;;  %v3072_v52 = vrot.slane %v7389_v38, 1  ;;  %v3074_v13 = vrot.slane %v7396_v32, 1  ;;  %v6491_v26 = vld [vmem:[%s9430_s8 + $0x40] sm:$0xff]  }
  0xc1   : > { %v1620_v16 = vmul.f32 0.5, %v1584_v49  ;;  %v1655_v51 = vadd.f32 %v1619_v9, %v1547_v56  ;;  %v2061_v35 = vrot.slane %v7354_v48, 2  ;;  %v2062_v28 = vrot.slane %v7351_v14, 2  ;;  %v9549_v56 = vld [vmem:[#allocation26_spill] sm:$0xff] }
  0xc2   : > { %v1621_v50 = vmul.f32 0.5, %v1585_v58  ;;  %v7404_v34 = vsel %vm1754_vm2, %v3071_v25, %v3072_v52  ;;  %v2064_v30 = vrot.slane %v7357_v22, 2  ;;  %v7413_v21 = vsel %vm1754_vm2, %v3072_v52, %v3074_v13  ;;  %v770_v14 = vld [vmem:[%s6936_s19 + $0x70] sm:$0xff] }
  0xc3   : > { %v1656_v0 = vadd.f32 %v1620_v16, %v1548_v39  ;;  %v1688_v36 = vsel %vm6911_vm3, %v9546_v5, %v1655_v51  ;;  %v858_v44 = vrot.slane %v768_v62, 7  ;;  %v7421_v7 = vsel %vm2030_vm1, %v2061_v35, %v2062_v28  ;;  %v6490_v5 = vld [vmem:[%s9430_s8 + $0x38] sm:$0xff]  }
  0xc4   : > { %v1657_v19 = vadd.f32 %v1621_v50, %v1549_v29  ;;  %v1707_v10 = vrot.slane %v1688_v36, 3  ;;  %v1760_v15 = vrot.slane %v1688_v36, 1  ;;  %v7424_v43 = vsel %vm2030_vm1, %v2062_v28, %v2064_v30 }
  0xc5   : > { %v1689_v22 = vsel %vm6911_vm3, %v9548_v59, %v1656_v0  ;;  %v859_v31 = vrot.slane %v769_v45, 7  ;;  %v924_v29 = vsel %vm830_vm0, 0.0, %v858_v44  ;;  %v6489_v0 = vld [vmem:[%s9430_s8 + $0x30] sm:$0xff]  }
  0xc6   : > { %v1690_v39 = vsel %vm6911_vm3, %v9549_v56, %v1657_v19  ;;  %v1761_v49 = vrot.slane %v1689_v22, 1  ;;  %v985_v51 = vrot.slane %v924_v29, 6  ;;  %v1111_v35 = vmul.f32 2.0, %v924_v29  ;;  %5843 = vmatprep.subr.bf16.mxu1 %v6489_v0 }
  0xc7   : > { %v1763_v58 = vrot.slane %v1690_v39, 1  ;;  %v1852_v25 = vrot.slane %v1690_v39, 7  ;;  %v860_v52 = vsel %vm830_vm0, %v858_v44, %v859_v31  ;;  %v938_v62 = vsel %vm830_vm0, %v859_v31, 0.0  ;;  %5844 = vmatpush3.bf16.msra.mxu1 %v6489_v0 }
  0xc8   : > { %v1762_v16 = vsel %vm1754_vm2, %v1760_v15, %v1761_v49  ;;  %v7435_v13 = vrot.slane %v860_v52, 6  ;;  %v1112_v45 = vmul.f32 2.0, %v860_v52  ;;  %v7456_v31 = vsub.f32 %v924_v29, %v985_v51  ;;  %5845 = vmatprep.subr.bf16.mxu1 %v6490_v5 }
  0xc9   : > { %v7438_v50 = vsel %vm1754_vm2, %v1761_v49, %v1763_v58  ;;  %v7441_v28 = vsel %vm830_vm0, %v1707_v10, %v1762_v16  ;;  %v1888_v30 = vsel %vm830_vm0, %v1763_v58, %v1852_v25  ;;  %v1113_v9 = vmul.f32 2.0, %v938_v62 }
  0xca   : > { %9550 = vst [vmem:[#allocation24_spill] sm:$0xff] %v7438_v50  ;;  %9551 = vst [vmem:[#allocation25_spill] sm:$0xff] %v7441_v28  ;;  %v2036_v36 = vrot.slane %v7441_v28, 2  ;;  %v2037_v44 = vrot.slane %v7438_v50, 2  ;;  %v2039_v19 = vrot.slane %v1888_v30, 2  ;;  %v1925_v15 = vrot.slane %v7441_v28, 1 }
  0xcb   : > { %v1926_v10 = vrot.slane %v7438_v50, 1  ;;  %v1928_v59 = vrot.slane %v1888_v30, 1  ;;  %v987_v22 = vsel %vm957_vm4, %v985_v51, %v7435_v13  ;;  %v7463_v58 = vsub.f32 %v938_v62, %v7435_v13  ;;  %5846 = vmatpush3.bf16.msra.mxu1 %v6490_v5 }
  0xcc   : > { %v2038_v56 = vsel %vm2030_vm1, %v2036_v36, %v2037_v44  ;;  %v2040_v39 = vsel %vm2030_vm1, %v2037_v44, %v2039_v19  ;;  %v7460_v49 = vsub.f32 %v860_v52, %v987_v22  ;;  %v6495_v36 = vld [vmem:[%s9428_s6 + $0x30] sm:$0xff]   ;;  %v1213_v19 = vrot.slane %v1111_v35, 7  ;;  %5847 = vmatprep.subr.bf16.mxu1 %v6491_v26 }
  0xcd   : > { %v6239_v25 = vpack.i.bf16 %v2040_v39, %v2038_v56  ;;  %v1927_v16 = vsel %vm1754_vm2, %v1925_v15, %v1926_v10  ;;  %v1929_v30 = vsel %vm1754_vm2, %v1926_v10, %v1928_v59  ;;  %v1214_v42 = vrot.slane %v1112_v45, 7  ;;  %5747 = vmatprep.subr.bf16.mxu0 %v6495_v36 }
  0xce   : > { %v6219_v44 = vpack.i.bf16 %v1929_v30, %v1927_v16  ;;  %v1385_v0 = vmul.f32 2.0, %v7287_v46  ;;  %v1216_v15 = vrot.slane %v1113_v9, 7  ;;  %v1386_v10 = vmul.f32 2.0, %v7292_v60  ;;  %5748 = vmatpush3.bf16.msra.mxu0 %v6495_v36 }
  0xcf   : > { %6240 = vrot.lane.b32.xlu1 %v6239_v25, %s9524_s3  ;;  %v1387_v59 = vmul.f32 2.0, %v7290_v27  ;;  %v3181_v56 = vrot.slane %v7393_v63, 2  ;;  %v1215_v39 = vsel %vm830_vm0, %v1213_v19, %v1214_v42  ;;  %v1307_v16 = vadd.f32 %v1213_v19, %v924_v29  ;;  %5848 = vmatpush3.bf16.msra.mxu1 %v6491_v26 }
  0xd0   : > { %6220 = vrot.lane.b32.xlu0 %v6219_v44, %s9521_s15  ;;  %v1421_v35 = vadd.f32 %v1385_v0, %v7182_v3  ;;  %v3182_v45 = vrot.slane %v7389_v38, 2  ;;  %v1217_v25 = vsel %vm830_vm0, %v1214_v42, %v1216_v15  ;;  %v1308_v9 = vadd.f32 %v1215_v39, %v860_v52  ;;  %v6492_v44 = vld [vmem:[%s9430_s8 + $0x48] sm:$0xff]  }
  0xd1   : > { %v1422_v30 = vadd.f32 %v1386_v10, %v7188_v54  ;;  %v1423_v48 = vadd.f32 %v1387_v59, %v7185_v11  ;;  %v1309_v29 = vadd.f32 %v1217_v25, %v938_v62  ;;  %v7489_v19 = vadd.f32 %v1307_v16, %v985_v51  ;;  %5849 = vmatprep.subr.bf16.mxu1 %v6492_v44 }
  0xd2   : > { %v1457_v3 = vadd.f32 %v1421_v35, %v7456_v31  ;;  %v7493_v5 = vsel %vm2030_vm1, %v3181_v56, %v3182_v45  ;;  %v9552_v11 = vpack.i.bf16 %v7413_v21, %v7404_v34  ;;  %v7499_v54 = vadd.f32 %v1308_v9, %v987_v22  ;;  %v771_v22 = vld [vmem:[%s6936_s19 + $0x78] sm:$0xff]  ;;  %s9473_s19 = sshll.u32 %s6907_s20, 3 }
  0xd3   : > { %v1458_v42 = vadd.f32 %v1422_v30, %v7460_v49  ;;  %v1459_v52 = vadd.f32 %v1423_v48, %v7463_v58  ;;  %v3184_v62 = vrot.slane %v7396_v32, 2  ;;  %v9553_v51 = vpack.i.bf16 %v7424_v43, %v7421_v7  ;;  %v6493_v48 = vld [vmem:[%s9430_s8 + $0x50] sm:$0xff]   ;;  %5850 = vmatpush3.bf16.msra.mxu1 %v6492_v44  ;;  %s7636_s13 = scalar_lea.vmem %s9424_s2, %s9473_s19 }
  0xd4   : > { %6245 = vrot.lane.b32.xlu1 %v9552_v11, %s9521_s15  ;;  %v7509_v36 = vadd.f32 %v1309_v29, %v7435_v13  ;;  %v1493_v34 = vsub.f32 %v7489_v19, %v7211_v17  ;;  %v1529_v21 = vand.u32 2147483647, %v1457_v3  ;;  %v861_v0 = vrot.slane %v770_v14, 7  ;;  %v6496_v17 = vld [vmem:[%s9428_s6 + $0x38] sm:$0xff]   ;;  %v6497_v14 = vld [vmem:[%s9428_s6 + $0x40] sm:$0xff]   ;;  %5851 = vmatprep.subr.bf16.mxu1 %v6493_v48 }
  0xd5   : > { %6225 = vrot.lane.b32.xlu0 %v9553_v51, %s9524_s3  ;;  %v1494_v32 = vsub.f32 %v7499_v54, %v7213_v57  ;;  %v1530_v15 = vand.u32 2147483647, %v1458_v42  ;;  %v1531_v7 = vand.u32 2147483647, %v1459_v52  ;;  %v7520_v43 = vsel %vm2030_vm1, %v3182_v45, %v3184_v62  ;;  %5749 = vmatprep.subr.bf16.mxu0 %v6496_v17  ;;  %v6494_v11 = vld [vmem:[%s9430_s8 + $0x58] sm:$0xff]   ;;  %v6498_v42 = vld [vmem:[%s9428_s6 + $0x48] sm:$0xff]  }
  0xd6   : > { %v1495_v26 = vsub.f32 %v7509_v36, %v7219_v41  ;;  %v1565_v13 = vmul.f32 0.5, %v1529_v21  ;;  %v1601_v10 = vand.u32 2147483647, %v1493_v34  ;;  %v862_v16 = vrot.slane %v771_v22, 7  ;;  %5750 = vmatpush3.bf16.msra.mxu0 %v6496_v17  ;;  %v7572_v57 = vld [vmem:[%s6821_s23 + $0x60] sm:$0xff] }
  0xd7   : > { %v1566_v59 = vmul.f32 0.5, %v1530_v15  ;;  %v1567_v56 = vmul.f32 0.5, %v1531_v7  ;;  %v1602_v39 = vand.u32 2147483647, %v1494_v32  ;;  %v925_v25 = vsel %vm830_vm0, 0.0, %v861_v0  ;;  %5751 = vmatprep.subr.bf16.mxu0 %v6497_v14  ;;  %5852 = vmatpush3.bf16.msra.mxu1 %v6493_v48 }
  0xd8   : > { %v1603_v35 = vand.u32 2147483647, %v1495_v26  ;;  %v1637_v45 = vmul.f32 0.5, %v1601_v10  ;;  %v7534_v9 = vmul.f32 2.0, %v7456_v31  ;;  %v863_v30 = vsel %vm830_vm0, %v861_v0, %v862_v16  ;;  %5853 = vmatprep.subr.bf16.mxu1 %v6494_v11 }
  0xd9   : > { %v1638_v41 = vmul.f32 0.5, %v1602_v39  ;;  %v939_v29 = vsel %vm830_vm0, %v862_v16, 0.0  ;;  %v988_v3 = vrot.slane %v925_v25, 6  ;;  %v989_v44 = vrot.slane %v863_v30, 6 }
  0xda   : > { %v1639_v52 = vmul.f32 0.5, %v1603_v35  ;;  %v1673_v62 = vadd.f32 %v1637_v45, %v1565_v13  ;;  %v1114_v51 = vmul.f32 2.0, %v925_v25  ;;  %v1115_v22 = vmul.f32 2.0, %v863_v30  ;;  %5752 = vmatpush3.bf16.msra.mxu0 %v6497_v14 }
  0xdb   : > { %v1674_v34 = vadd.f32 %v1638_v41, %v1566_v59  ;;  %v7544_v21 = vsub.f32 %v925_v25, %v988_v3  ;;  %v1116_v0 = vmul.f32 2.0, %v939_v29  ;;  %v990_v17 = vsel %vm957_vm4, %v988_v3, %v989_v44  ;;  %5753 = vmatprep.subr.bf16.mxu0 %v6498_v42  ;;  %5854 = vmatpush3.bf16.msra.mxu1 %v6494_v11 }
  0xdc   : > { %v1675_v32 = vadd.f32 %v1639_v52, %v1567_v56  ;;  %v1713_v15 = vrot.slane %v1673_v62, 3  ;;  %v1790_v7 = vrot.slane %v1673_v62, 1  ;;  %v7547_v10 = vsub.f32 %v863_v30, %v990_v17 }
  0xdd   : > { %v1791_v26 = vrot.slane %v1674_v34, 1  ;;  %v7549_v39 = vsub.f32 %v939_v29, %v989_v44  ;;  %v1218_v13 = vrot.slane %v1114_v51, 7  ;;  %v1219_v35 = vrot.slane %v1115_v22, 7 }
  0xde   : > { %v1793_v59 = vrot.slane %v1675_v32, 1  ;;  %v1858_v16 = vrot.slane %v1675_v32, 7  ;;  %v1221_v45 = vrot.slane %v1116_v0, 7  ;;  %v1389_v52 = vmul.f32 2.0, %v7460_v49  ;;  %5754 = vmatpush3.bf16.msra.mxu0 %v6498_v42 }
  0xdf   : > { %v1792_v56 = vsel %vm1754_vm2, %v1790_v7, %v1791_v26  ;;  %v1310_v41 = vadd.f32 %v1218_v13, %v925_v25  ;;  %v1390_v48 = vmul.f32 2.0, %v7463_v58  ;;  %v1220_v34 = vsel %vm830_vm0, %v1218_v13, %v1219_v35 }
  0xe0   : > { %v7555_v14 = vsel %vm1754_vm2, %v1791_v26, %v1793_v59  ;;  %v7558_v62 = vsel %vm830_vm0, %v1713_v15, %v1792_v56  ;;  %v1894_v51 = vsel %vm830_vm0, %v1793_v59, %v1858_v16  ;;  %v1222_v15 = vsel %vm830_vm0, %v1219_v35, %v1221_v45 }
  0xe1   : > { %9554 = vst [vmem:[#allocation26_spill] sm:$0xff] %v7555_v14  ;;  %9555 = vst [vmem:[#allocation38_spill] sm:$0xff] %v7558_v62  ;;  %v2066_v22 = vrot.slane %v7558_v62, 2  ;;  %v2067_v25 = vrot.slane %v7555_v14, 2  ;;  %v2069_v0 = vrot.slane %v1894_v51, 2  ;;  %v1955_v32 = vrot.slane %v7558_v62, 1 }
  0xe2   : > { %v1956_v7 = vrot.slane %v7555_v14, 1  ;;  %v1958_v26 = vrot.slane %v1894_v51, 1  ;;  %v1311_v59 = vadd.f32 %v1220_v34, %v863_v30  ;;  %v1312_v11 = vadd.f32 %v1222_v15, %v939_v29 }
  0xe3   : > { %v2068_v16 = vsel %vm2030_vm1, %v2066_v22, %v2067_v25  ;;  %v2070_v13 = vsel %vm2030_vm1, %v2067_v25, %v2069_v0  ;;  %v7569_v56 = vadd.f32 %v1310_v41, %v988_v3  ;;  %v1424_v45 = vadd.f32 %v7534_v9, %v7287_v46  ;;  %v7585_v3 = vld [vmem:[%s6821_s23 + $0x68] sm:$0xff] }
  0xe4   : > { %v6254_v63 = vpack.i.bf16 %v2070_v13, %v2068_v16  ;;  %v1957_v42 = vsel %vm1754_vm2, %v1955_v32, %v1956_v7  ;;  %v1959_v62 = vsel %vm1754_vm2, %v1956_v7, %v1958_v26  ;;  %v7577_v51 = vadd.f32 %v1311_v59, %v990_v17 }
  0xe5   : > { %v6234_v35 = vpack.i.bf16 %v1959_v62, %v1957_v42  ;;  %v7579_v30 = vadd.f32 %v1312_v11, %v989_v44  ;;  %v1425_v29 = vadd.f32 %v1389_v52, %v7292_v60  ;;  %v1426_v41 = vadd.f32 %v1390_v48, %v7290_v27 }
  0xe6   : > { %6255 = vrot.lane.b32.xlu1 %v6254_v63, %s9524_s3  ;;  %v1496_v34 = vsub.f32 %v7569_v56, %v7299_v55  ;;  %v1497_v17 = vsub.f32 %v7577_v51, %v7310_v37  ;;  %v2867_v44 = vrot.slane %v7572_v57, 1  ;;  %v1460_v46 = vadd.f32 %v1424_v45, %v7544_v21 }
  0xe7   : > { %6235 = vrot.lane.b32.xlu0 %v6234_v35, %s9521_s15  ;;  %v1461_v60 = vadd.f32 %v1425_v29, %v7547_v10  ;;  %v1498_v9 = vsub.f32 %v7579_v30, %v7317_v4  ;;  %v2919_v63 = vrot.slane %v7572_v57, 7  ;;  %v1462_v27 = vadd.f32 %v1426_v41, %v7549_v39 }
  0xe8   : > { %v1604_v55 = vand.u32 2147483647, %v1496_v34  ;;  %v1605_v37 = vand.u32 2147483647, %v1497_v17  ;;  %v2920_v52 = vrot.slane %v7585_v3, 7  ;;  %v9557_v4 = vpack.i.bf16 %v7520_v43, %v7493_v5 }
  0xe9   : > { %v1532_v48 = vand.u32 2147483647, %v1460_v46  ;;  %v1533_v62 = vand.u32 2147483647, %v1461_v60  ;;  %v1606_v22 = vand.u32 2147483647, %v1498_v9  ;;  %v7607_v25 = vsel %vm830_vm0, %v2867_v44, %v2919_v63 }
  0xea   : > { %9556 = vst [vmem:[#allocation39_spill] sm:$0xff] %v7607_v25  ;;  %6265 = vrot.lane.b32.xlu1 %v9557_v4, %s9524_s3  ;;  %v1534_v0 = vand.u32 2147483647, %v1462_v27  ;;  %v1640_v32 = vmul.f32 0.5, %v1604_v55  ;;  %v1641_v7 = vmul.f32 0.5, %v1605_v37  ;;  %v7614_v26 = vsel %vm830_vm0, %v2919_v63, %v2920_v52  ;;  %v2837_v46 = vld [vmem:[%s6821_s23 + $0x70] sm:$0xff] }
  0xeb   : > { %9558 = vst [vmem:[#allocation40_spill] sm:$0xff] %v7614_v26  ;;  %v1568_v15 = vmul.f32 0.5, %v1532_v48  ;;  %v1569_v59 = vmul.f32 0.5, %v1533_v62  ;;  %v1642_v16 = vmul.f32 0.5, %v1606_v22  ;;  %v2975_v13 = vrot.slane %v7585_v3, 5 }
  0xec   : > { %v1570_v11 = vmul.f32 0.5, %v1534_v0  ;;  %v3076_v42 = vrot.slane %v7607_v25, 1  ;;  %v3077_v5 = vrot.slane %v7614_v26, 1  ;;  %v3186_v43 = vrot.slane %v7607_v25, 2 }
  0xed   : > { %v7621_v35 = vadd.f32 %v1640_v32, %v1568_v15  ;;  %v7623_v45 = vadd.f32 %v1641_v7, %v1569_v59  ;;  %v3011_v29 = vsel %vm830_vm0, %v2920_v52, %v2975_v13  ;;  %v3187_v41 = vrot.slane %v7614_v26, 2  ;;  %v2838_v32 = vld [vmem:[%s6821_s23 + $0x78] sm:$0xff] }
  0xee   : > { %v7627_v34 = vadd.f32 %v1642_v16, %v1570_v11  ;;  %v3079_v17 = vrot.slane %v3011_v29, 1  ;;  %v3189_v44 = vrot.slane %v3011_v29, 2  ;;  %v7645_v48 = vsel %vm1754_vm2, %v3076_v42, %v3077_v5  ;;  %v6505_v29 = vld [vmem:[%s9428_s6 + $0x50] sm:$0xff]  }
  0xef   : > { %v1714_v9 = vrot.slane %v7621_v35, 3  ;;  %v1795_v63 = vrot.slane %v7621_v35, 1  ;;  %v1796_v27 = vrot.slane %v7623_v45, 1  ;;  %v3188_v55 = vsel %vm2030_vm1, %v3186_v43, %v3187_v41  ;;  %5755 = vmatprep.subr.bf16.mxu0 %v6505_v29 }
  0xf0   : > { %v1798_v37 = vrot.slane %v7627_v34, 1  ;;  %v1859_v52 = vrot.slane %v7627_v34, 7  ;;  %v3190_v62 = vsel %vm2030_vm1, %v3187_v41, %v3189_v44  ;;  %v3080_v4 = vsel %vm1754_vm2, %v3077_v5, %v3079_v17  ;;  %5756 = vmatpush3.bf16.msra.mxu0 %v6505_v29 }
  0xf1   : > { %v1797_v22 = vsel %vm1754_vm2, %v1795_v63, %v1796_v27  ;;  %v6274_v0 = vpack.i.bf16 %v3190_v62, %v3188_v55  ;;  %v2868_v7 = vrot.slane %v2837_v46, 1  ;;  %v2922_v13 = vrot.slane %v2837_v46, 7 }
  0xf2   : > { %v7656_v15 = vsel %vm1754_vm2, %v1796_v27, %v1798_v37  ;;  %v7659_v59 = vsel %vm830_vm0, %v1714_v9, %v1797_v22  ;;  %v1895_v16 = vsel %vm830_vm0, %v1798_v37, %v1859_v52  ;;  %v2923_v44 = vrot.slane %v2838_v32, 7  ;;  %v6473_v37 = vld [vmem:[%s7636_s13] sm:%s7650_s14]  ;;  %v6476_v52 = vld [vmem:[%s7636_s13 + $0x8] sm:%s7650_s14] }
  0xf3   : > { %9559 = vst [vmem:[#allocation41_spill] sm:$0xff] %v7656_v15  ;;  %9560 = vst [vmem:[#allocation42_spill] sm:$0xff] %v7659_v59  ;;  %v1960_v11 = vrot.slane %v7659_v59, 1  ;;  %v1961_v42 = vrot.slane %v7656_v15, 1  ;;  %v1963_v5 = vrot.slane %v1895_v16, 1  ;;  %6275 = vrot.lane.b32.xlu1 %v6274_v0, %s9524_s3  ;;  %v2071_v43 = vrot.slane %v7659_v59, 2 }
  0xf4   : > { %v2072_v41 = vrot.slane %v7656_v15, 2  ;;  %v2074_v17 = vrot.slane %v1895_v16, 2  ;;  %v2976_v46 = vrot.slane %v2838_v32, 5  ;;  %v6259_v27 = vpack.i.bf16 %v3080_v4, %v7645_v48  ;;  %v6479_v32 = vld [vmem:[%s7636_s13 + $0x10] sm:%s7650_s14] }
  0xf5   : > { %v1962_v9 = vsel %vm1754_vm2, %v1960_v11, %v1961_v42  ;;  %v1964_v63 = vsel %vm1754_vm2, %v1961_v42, %v1963_v5  ;;  %v7674_v55 = vsel %vm830_vm0, %v2868_v7, %v2922_v13  ;;  %v7683_v16 = vsel %vm830_vm0, %v2922_v13, %v2923_v44  ;;  %v6506_v7 = vld [vmem:[%s9428_s6 + $0x58] sm:$0xff]   ;;  %v6507_v5 = vld [vmem:[%s9428_s6] sm:$0xff]  }
  0xf6   : > { %v6249_v62 = vpack.i.bf16 %v1964_v63, %v1962_v9  ;;  %v2073_v22 = vsel %vm2030_vm1, %v2071_v43, %v2072_v41  ;;  %v2075_v0 = vsel %vm2030_vm1, %v2072_v41, %v2074_v17  ;;  %v7688_v42 = vsel %vm830_vm0, %v2923_v44, %v2976_v46  ;;  %v7701_v13 = vld [vmem:[%s9430_s8] sm:$0xff]   ;;  %5757 = vmatprep.subr.bf16.mxu0 %v6506_v7 }
  0xf7   : > { %v6269_v11 = vpack.i.bf16 %v2075_v0, %v2073_v22  ;;  %v3081_v48 = vrot.slane %v7674_v55, 1  ;;  %v3082_v4 = vrot.slane %v7683_v16, 1  ;;  %v3084_v43 = vrot.slane %v7688_v42, 1  ;;  %5875 = vmatprep.subr.bf16.mxu1 %v7701_v13  ;;  %5758 = vmatpush3.bf16.msra.mxu0 %v6506_v7 }
  0xf8   : > { %6250 = vrot.lane.b32.xlu0 %v6249_v62, %s9521_s15  ;;  %v864_v29 = vrot.slane %v6473_v37, 7  ;;  %v865_v41 = vrot.slane %v6476_v52, 7  ;;  %v1391_v17 = vmul.f32 2.0, %v7544_v21  ;;  %v1392_v46 = vmul.f32 2.0, %v7547_v10  ;;  %5779 = vmatprep.subr.bf16.mxu0 %v6507_v5 }
  0xf9   : > { %v3083_v44 = vsel %vm1754_vm2, %v3081_v48, %v3082_v4  ;;  %v1393_v9 = vmul.f32 2.0, %v7549_v39  ;;  %v867_v63 = vrot.slane %v6479_v32, 7  ;;  %v3085_v62 = vsel %vm1754_vm2, %v3082_v4, %v3084_v43  ;;  %v6482_v43 = vld [vmem:[%s7636_s13 + $0x18] sm:%s7650_s14] }
  0xfa   : > { %v866_v22 = vsel %vm830_vm0, %v864_v29, %v865_v41  ;;  %v926_v37 = vsel %vm830_vm0, 0.0, %v864_v29  ;;  %v940_v52 = vsel %vm830_vm0, %v865_v41, 0.0  ;;  %v6284_v0 = vpack.i.bf16 %v3085_v62, %v3083_v44 }
  0xfb   : > { %v991_v48 = vrot.slane %v926_v37, 6  ;;  %v992_v60 = vrot.slane %v866_v22, 6  ;;  %v1117_v59 = vmul.f32 2.0, %v926_v37  ;;  %v1118_v32 = vmul.f32 2.0, %v866_v22 }
  0xfc   : > { %6260 = vrot.lane.b32.xlu0 %v6259_v27, %s9521_s15  ;;  %v1119_v15 = vmul.f32 2.0, %v940_v52  ;;  %v1427_v14 = vadd.f32 %v1391_v17, %v7456_v31  ;;  %v1428_v4 = vadd.f32 %v1392_v46, %v7460_v49  ;;  %6285 = vrot.lane.b32.xlu1 %v6284_v0, %s9521_s15  ;;  %v1429_v25 = vadd.f32 %v1393_v9, %v7463_v58 }
  0xfd   : > { %v993_v29 = vsel %vm957_vm4, %v991_v48, %v992_v60  ;;  %v7721_v41 = vsub.f32 %v926_v37, %v991_v48  ;;  %v7723_v7 = vsub.f32 %v940_v52, %v992_v60  ;;  %v1223_v44 = vrot.slane %v1117_v59, 7 }
  0xfe   : > { %v7725_v62 = vsub.f32 %v866_v22, %v993_v29  ;;  %v1224_v5 = vrot.slane %v1118_v32, 7  ;;  %v1226_v27 = vrot.slane %v1119_v15, 7  ;;  %v868_v49 = vrot.slane %v6482_v43, 7 }
  0xff   : > { %v1313_v26 = vadd.f32 %v1223_v44, %v926_v37  ;;  %v1463_v31 = vadd.f32 %v1427_v14, %v7721_v41  ;;  %v927_v17 = vsel %vm830_vm0, 0.0, %v867_v63  ;;  %v1465_v38 = vadd.f32 %v1429_v25, %v7723_v7 }
 0x100   : > { %6270 = vrot.lane.b32.xlu0 %v6269_v11, %s9524_s3  ;;  %v1225_v46 = vsel %vm830_vm0, %v1223_v44, %v1224_v5  ;;  %v1227_v0 = vsel %vm830_vm0, %v1224_v5, %v1226_v27  ;;  %v1464_v59 = vadd.f32 %v1428_v4, %v7725_v62  ;;  %v869_v37 = vsel %vm830_vm0, %v867_v63, %v868_v49 }
 0x101   : > { %v1314_v32 = vadd.f32 %v1225_v46, %v866_v22  ;;  %v1315_v15 = vadd.f32 %v1227_v0, %v940_v52  ;;  %v7735_v50 = vadd.f32 %v1313_v26, %v991_v48  ;;  %v1535_v58 = vand.u32 2147483647, %v1463_v31 }
 0x102   : > { %v1536_v9 = vand.u32 2147483647, %v1464_v59  ;;  %v1537_v14 = vand.u32 2147483647, %v1465_v38  ;;  %v941_v43 = vsel %vm830_vm0, %v868_v49, 0.0  ;;  %v994_v52 = vrot.slane %v927_v17, 6 }
 0x103   : > { %v7739_v11 = vadd.f32 %v1314_v32, %v993_v29  ;;  %v7741_v44 = vadd.f32 %v1315_v15, %v992_v60  ;;  %v1499_v4 = vsub.f32 %v7735_v50, %v7489_v19  ;;  %v1571_v5 = vmul.f32 0.5, %v1535_v58 }
 0x104   : > { %v1572_v25 = vmul.f32 0.5, %v1536_v9  ;;  %v1573_v22 = vmul.f32 0.5, %v1537_v14  ;;  %v995_v26 = vrot.slane %v869_v37, 6  ;;  %v1120_v27 = vmul.f32 2.0, %v927_v17 }
 0x105   : > { %9561 = vst [vmem:[#allocation43_spill] sm:$0xff] %v7739_v11  ;;  %9562 = vst [vmem:[#allocation44_spill] sm:$0xff] %v7741_v44  ;;  %v1500_v48 = vsub.f32 %v7739_v11, %v7499_v54  ;;  %v1501_v38 = vsub.f32 %v7741_v44, %v7509_v36  ;;  %v1607_v63 = vand.u32 2147483647, %v1499_v4  ;;  %v7750_v60 = vsub.f32 %v927_v17, %v994_v52 }
 0x106   : > { %v996_v29 = vsel %vm957_vm4, %v994_v52, %v995_v26  ;;  %v7752_v31 = vsub.f32 %v941_v43, %v995_v26  ;;  %v1121_v19 = vmul.f32 2.0, %v869_v37  ;;  %v1122_v32 = vmul.f32 2.0, %v941_v43 }
 0x107   : > { %v1608_v49 = vand.u32 2147483647, %v1500_v48  ;;  %v1609_v46 = vand.u32 2147483647, %v1501_v38  ;;  %v1643_v0 = vmul.f32 0.5, %v1607_v63  ;;  %v7754_v59 = vsub.f32 %v869_v37, %v996_v29 }
 0x108   : > { %v1228_v15 = vrot.slane %v1120_v27, 7  ;;  %v1229_v54 = vrot.slane %v1121_v19, 7  ;;  %v1394_v58 = vmul.f32 2.0, %v7721_v41  ;;  %v1395_v4 = vmul.f32 2.0, %v7725_v62 }
 0x109   : > { %v1644_v36 = vmul.f32 0.5, %v1608_v49  ;;  %v1645_v9 = vmul.f32 0.5, %v1609_v46  ;;  %v1679_v14 = vadd.f32 %v1643_v0, %v1571_v5  ;;  %v1231_v33 = vrot.slane %v1122_v32, 7 }
 0x10a   : > { %v1230_v28 = vsel %vm830_vm0, %v1228_v15, %v1229_v54  ;;  %v1316_v24 = vadd.f32 %v1228_v15, %v927_v17  ;;  %v1396_v48 = vmul.f32 2.0, %v7723_v7  ;;  %v1430_v46 = vadd.f32 %v1394_v58, %v7544_v21 }
 0x10b   : > { %v1680_v38 = vadd.f32 %v1644_v36, %v1572_v25  ;;  %v1681_v63 = vadd.f32 %v1645_v9, %v1573_v22  ;;  %v1715_v44 = vrot.slane %v1679_v14, 3  ;;  %v1800_v11 = vrot.slane %v1679_v14, 1  ;;  %v2839_v14 = vld [vmem:[%s7781_s29] sm:$0xff] }
 0x10c   : > { %v1232_v27 = vsel %vm830_vm0, %v1229_v54, %v1231_v33  ;;  %v1317_v19 = vadd.f32 %v1230_v28, %v869_v37  ;;  %v1358_v49 = vadd.f32 %v1316_v24, %v994_v52  ;;  %v9563_v5 = vstv %s7602_s17 }
 0x10d   : > { %vm7764_vm5 = vcmp.eq.s32.totalorder %v9563_v5, 1  ;;  %v9564_v0 = vmov 0  ;;  %v1801_v32 = vrot.slane %v1680_v38, 1  ;;  %v1803_v17 = vrot.slane %v1681_v63, 1  ;;  %v2840_v5 = vld [vmem:[%s7781_s29 + $0x8] sm:$0xff] }
 0x10e   : > { %v9565_v0 = vsel %vm7764_vm5, 4294967295, %v9564_v0  ;;  %v1860_v15 = vrot.slane %v1681_v63, 7  ;;  %v1318_v61 = vadd.f32 %v1232_v27, %v941_v43  ;;  %v1359_v25 = vadd.f32 %v1317_v19, %v996_v29  ;;  %v7796_v27 = vpop.permute.xlu1 %6125 }
 0x10f   : > { %9566 = vst [vmem:[#allocation45_spill] sm:$0xff] %v9565_v0  ;;  %v1431_v22 = vadd.f32 %v1395_v4, %v7547_v10  ;;  %v1432_v36 = vadd.f32 %v1396_v48, %v7549_v39  ;;  %v1466_v33 = vadd.f32 %v1430_v46, %v7750_v60  ;;  %v1802_v24 = vsel %vm1754_vm2, %v1800_v11, %v1801_v32 }
 0x110   : > { %v7773_v28 = vsel %vm1754_vm2, %v1801_v32, %v1803_v17  ;;  %v1896_v21 = vsel %vm830_vm0, %v1803_v17, %v1860_v15  ;;  %v1360_v37 = vadd.f32 %v1318_v61, %v995_v26  ;;  %v7784_v10 = vsel %vm830_vm0, %v1715_v44, %v1802_v24 }
 0x111   : > { %v1966_v39 = vrot.slane %v7773_v28, 1  ;;  %v1968_v43 = vrot.slane %v1896_v21, 1  ;;  %v1467_v11 = vadd.f32 %v1431_v22, %v7754_v59  ;;  %v1965_v52 = vrot.slane %v7784_v10, 1 }
 0x112   : > { %v1468_v29 = vadd.f32 %v1432_v36, %v7752_v31  ;;  %v1502_v61 = vsub.f32 %v1358_v49, %v7569_v56  ;;  %v1503_v26 = vsub.f32 %v1359_v25, %v7577_v51  ;;  %v1504_v58 = vsub.f32 %v1360_v37, %v7579_v30 }
 0x113   : > { %v1969_v54 = vsel %vm1754_vm2, %v1966_v39, %v1968_v43  ;;  %v1538_v44 = vand.u32 2147483647, %v1466_v33  ;;  %v1539_v9 = vand.u32 2147483647, %v1467_v11  ;;  %v1967_v4 = vsel %vm1754_vm2, %v1965_v52, %v1966_v39 }
 0x114   : > { %v1540_v48 = vand.u32 2147483647, %v1468_v29  ;;  %v1610_v38 = vand.u32 2147483647, %v1502_v61  ;;  %v1611_v63 = vand.u32 2147483647, %v1503_v26  ;;  %v6279_v19 = vpack.i.bf16 %v1969_v54, %v1967_v4  ;;  %v7816_v54 = vpop.permute.xlu1 %6130 }
 0x115   : > { %v1574_v46 = vmul.f32 0.5, %v1538_v44  ;;  %v1575_v56 = vmul.f32 0.5, %v1539_v9  ;;  %v1612_v49 = vand.u32 2147483647, %v1504_v58  ;;  %v2076_v30 = vrot.slane %v7784_v10, 2 }
 0x116   : > { %v1576_v51 = vmul.f32 0.5, %v1540_v48  ;;  %v1646_v32 = vmul.f32 0.5, %v1610_v38  ;;  %v1647_v17 = vmul.f32 0.5, %v1611_v63  ;;  %6280 = vrot.lane.b32.xlu0 %v6279_v19, %s9521_s15  ;;  %v2077_v25 = vrot.slane %v7773_v28, 2  ;;  %v7831_v19 = vpop.permute.xlu0 %6120 }
 0x117   : > { %v1648_v15 = vmul.f32 0.5, %v1612_v49  ;;  %v2079_v22 = vrot.slane %v1896_v21, 2  ;;  %v2845_v36 = vsel %vm7764_vm5, %v7572_v57, %v2839_v14  ;;  %v2846_v37 = vsel %vm7764_vm5, %v7585_v3, %v2840_v5 }
 0x118   : > { %v1682_v33 = vadd.f32 %v1646_v32, %v1574_v46  ;;  %v1683_v24 = vadd.f32 %v1647_v17, %v1575_v56  ;;  %v2869_v39 = vrot.slane %v2845_v36, 1  ;;  %v2078_v11 = vsel %vm2030_vm1, %v2076_v30, %v2077_v25 }
 0x119   : > { %v1684_v43 = vadd.f32 %v1648_v15, %v1576_v51  ;;  %v2080_v52 = vsel %vm2030_vm1, %v2077_v25, %v2079_v22  ;;  %v2925_v29 = vrot.slane %v2845_v36, 7  ;;  %v2926_v26 = vrot.slane %v2846_v37, 7 }
 0x11a   : > { %v1691_v21 = vsel %vm7764_vm5, %v7621_v35, %v1682_v33  ;;  %v1692_v57 = vsel %vm7764_vm5, %v7623_v45, %v1683_v24  ;;  %v6289_v61 = vpack.i.bf16 %v2080_v52, %v2078_v11  ;;  %v2977_v48 = vrot.slane %v2846_v37, 5  ;;  %v7847_v33 = vpop.permute.xlu1 %6140  ;;  %v2819_v11 = vld [vmem:[%s6886_s27 + $0x20] sm:$0xff] }
 0x11b   : > { %v1693_v3 = vsel %vm7764_vm5, %v7627_v34, %v1684_v43  ;;  %v1716_v58 = vrot.slane %v1691_v21, 3  ;;  %v1805_v44 = vrot.slane %v1691_v21, 1  ;;  %v1806_v9 = vrot.slane %v1692_v57, 1  ;;  %v2820_v57 = vld [vmem:[%s6886_s27 + $0x28] sm:$0xff]  ;;  %s651_s27 = sand.u32 1, %s6638_s22  }
 0x11c   : > { %v1808_v14 = vrot.slane %v1693_v3, 1  ;;  %v1861_v4 = vrot.slane %v1693_v3, 7  ;;  %6290 = vrot.lane.b32.xlu0 %v6289_v61, %s9524_s3  ;;  %v7823_v35 = vsel %vm830_vm0, %v2925_v29, %v2926_v26  ;;  %v7827_v38 = vsel %vm830_vm0, %v2869_v39, %v2925_v29  ;;  %s5345_s23 = sshll.u32 %s651_s27, 7  ;;  %s9370_s19 = scalar_lea.sflag [#allocation3], %s651_s27 }
 0x11d   : > { %v1807_v45 = vsel %vm1754_vm2, %v1805_v44, %v1806_v9  ;;  %9568 = vst [vmem:[#allocation46_spill] sm:$0xff] %v7827_v38  ;;  %v3321_v63 = vrot.slane %v7823_v35, 1  ;;  %v3191_v34 = vrot.slane %v7674_v55, 2  ;;  %v3013_v5 = vsel %vm830_vm0, %v2926_v26, %v2977_v48  ;;  %v6485_v44 = vld [vmem:[%s6943_s18 + $0x10] sm:%s6929_s26] }
 0x11e   : > { %v7834_v46 = vsel %vm1754_vm2, %v1806_v9, %v1808_v14  ;;  %v7837_v56 = vsel %vm830_vm0, %v1716_v58, %v1807_v45  ;;  %v1897_v49 = vsel %vm830_vm0, %v1808_v14, %v1861_v4  ;;  %v3320_v30 = vrot.slane %v7827_v38, 1  ;;  %v7861_v9 = vpop.permute.xlu0 %6135 }
 0x11f   : > { %v2207_v51 = vrot.slane %v7837_v56, 1  ;;  %v2208_v32 = vrot.slane %v7834_v46, 1  ;;  %v2210_v17 = vrot.slane %v1897_v49, 1  ;;  %v3323_v15 = vrot.slane %v3013_v5, 1 }
 0x120   : > { %v3192_v25 = vrot.slane %v7683_v16, 2  ;;  %v3194_v22 = vrot.slane %v7688_v42, 2  ;;  %v3331_v36 = vrot.slane %v7827_v38, 2  ;;  %v3322_v39 = vsel %vm1754_vm2, %v3320_v30, %v3321_v63 }
 0x121   : > { %v2209_v24 = vsel %vm1754_vm2, %v2207_v51, %v2208_v32  ;;  %v2211_v37 = vsel %vm1754_vm2, %v2208_v32, %v2210_v17  ;;  %v3332_v43 = vrot.slane %v7823_v35, 2  ;;  %v3324_v29 = vsel %vm1754_vm2, %v3321_v63, %v3323_v15  ;;  %v6488_v17 = vld [vmem:[%s6943_s18 + $0x18] sm:%s6929_s26]  ;;  %s6667_s18 = smov [#allocation2]  }
 0x122   : > { %v6294_v52 = vpack.i.bf16 %v2211_v37, %v2209_v24  ;;  %v3193_v42 = vsel %vm2030_vm1, %v3191_v34, %v3192_v25  ;;  %v3195_v21 = vsel %vm2030_vm1, %v3192_v25, %v3194_v22  ;;  %v6304_v61 = vpack.i.bf16 %v3324_v29, %v3322_v39  ;;  %v7872_v22 = vpop.permute.xlu1 %6145  ;;  %s6572_s20 = sshll.u32 %s6667_s18, 4  ;;  %s6573_s20 = int_to_ptr.vmem [resolvable:$false] %s6572_s20 }
 0x123   : > { %v6299_v26 = vpack.i.bf16 %v3195_v21, %v3193_v42  ;;  %v3333_v3 = vsel %vm2030_vm1, %v3331_v36, %v3332_v43  ;;  %v3334_v58 = vrot.slane %v3013_v5, 2  ;;  %v2218_v14 = vrot.slane %v7837_v56, 2  ;;  %s6574_s26 = scalar_lea.vmem %s6573_s20, 4096 }
 0x124   : > { %6295 = vrot.lane.b32.xlu1 %v6294_v52, %s9521_s15  ;;  %v2219_v4 = vrot.slane %v7834_v46, 2  ;;  %v2221_v48 = vrot.slane %v1897_v49, 2  ;;  %v2859_v45 = vrot.slane %v2819_v11, 1  ;;  %v2895_v34 = vrot.slane %v2819_v11, 7 }
 0x125   : > { %6300 = vrot.lane.b32.xlu0 %v6299_v26, %s9524_s3  ;;  %v3335_v63 = vsel %vm2030_vm1, %v3332_v43, %v3334_v58  ;;  %v2896_v51 = vrot.slane %v2820_v57, 7  ;;  %v2967_v32 = vrot.slane %v2820_v57, 5  ;;  %v831_v25 = vrot.slane %v6485_v44, 7  ;;  %v7889_v26 = vpop.permute.xlu0 %6150 }
 0x126   : > { %v6314_v5 = vpack.i.bf16 %v3335_v63, %v3333_v3  ;;  %v2220_v30 = vsel %vm2030_vm1, %v2218_v14, %v2219_v4  ;;  %v2222_v15 = vsel %vm2030_vm1, %v2219_v4, %v2221_v48  ;;  %v7878_v24 = vsel %vm830_vm0, %v2859_v45, %v2895_v34 }
 0x127   : > { %v6309_v36 = vpack.i.bf16 %v2222_v15, %v2220_v30  ;;  %v7875_v49 = vsel %vm830_vm0, %v2895_v34, %v2896_v51  ;;  %9570 = vst [vmem:[#allocation48_spill] sm:$0xff] %v7878_v24  ;;  %v3003_v37 = vsel %vm830_vm0, %v2896_v51, %v2967_v32  ;;  %v3036_v39 = vrot.slane %v7878_v24, 1  ;;  %v7898_v34 = vpop.permute.xlu1 %6155 }
 0x128   : > { %9569 = vst [vmem:[#allocation47_spill] sm:$0xff] %v7875_v49  ;;  %6305 = vrot.lane.b32.xlu1 %v6304_v61, %s9521_s15  ;;  %v3037_v43 = vrot.slane %v7875_v49, 1  ;;  %v3039_v11 = vrot.slane %v3003_v37, 1  ;;  %v832_v52 = vrot.slane %v6488_v17, 7  ;;  %v915_v29 = vsel %vm830_vm0, 0.0, %v831_v25 }
 0x129   : > { %6310 = vrot.lane.b32.xlu0 %v6309_v36, %s9524_s3  ;;  %v1364_v42 = vmul.f32 2.0, %v7359_v53  ;;  %v1365_v21 = vmul.f32 2.0, %v7365_v40  ;;  %v1366_v57 = vmul.f32 2.0, %v7367_v2  ;;  %v958_v4 = vrot.slane %v915_v29, 6 }
 0x12a   : > { %v3038_v61 = vsel %vm1754_vm2, %v3036_v39, %v3037_v43  ;;  %v3040_v3 = vsel %vm1754_vm2, %v3037_v43, %v3039_v11  ;;  %v833_v58 = vsel %vm830_vm0, %v831_v25, %v832_v52  ;;  %v929_v44 = vsel %vm830_vm0, %v832_v52, 0.0  ;;  %v7901_v52 = vpop.permute.xlu0 %6165 }
 0x12b   : > { %v6324_v14 = vpack.i.bf16 %v3040_v3, %v3038_v61  ;;  %v959_v48 = vrot.slane %v833_v58, 6  ;;  %v1084_v45 = vmul.f32 2.0, %v915_v29  ;;  %v1085_v53 = vmul.f32 2.0, %v833_v58 }
 0x12c   : > { %6315 = vrot.lane.b32.xlu1 %v6314_v5, %s9524_s3  ;;  %v1086_v40 = vmul.f32 2.0, %v929_v44  ;;  %v3146_v2 = vrot.slane %v7878_v24, 2  ;;  %v3147_v63 = vrot.slane %v7875_v49, 2  ;;  %v1042_v32 = vsub.f32 %v915_v29, %v958_v4 }
 0x12d   : > { %v960_v51 = vsel %vm957_vm4, %v958_v4, %v959_v48  ;;  %v1044_v17 = vsub.f32 %v929_v44, %v959_v48  ;;  %v1168_v30 = vrot.slane %v1084_v45, 7  ;;  %v1169_v25 = vrot.slane %v1085_v53, 7 }
 0x12e   : > { %v1043_v15 = vsub.f32 %v833_v58, %v960_v51  ;;  %v1171_v36 = vrot.slane %v1086_v40, 7  ;;  %v1400_v43 = vadd.f32 %v1364_v42, %v1042_v32  ;;  %v3149_v5 = vrot.slane %v3003_v37, 2 }
 0x12f   : > { %v1280_v39 = vadd.f32 %v1168_v30, %v915_v29  ;;  %v1402_v11 = vadd.f32 %v1366_v57, %v1044_v17  ;;  %v1170_v61 = vsel %vm830_vm0, %v1168_v30, %v1169_v25  ;;  %v3148_v24 = vsel %vm2030_vm1, %v3146_v2, %v3147_v63  ;;  %v7911_v57 = vpop.permute.xlu1 %6160 }
 0x130   : > { %6325 = vrot.lane.b32.xlu1 %v6324_v14, %s9521_s15  ;;  %v1172_v3 = vsel %vm830_vm0, %v1169_v25, %v1171_v36  ;;  %v1401_v0 = vadd.f32 %v1365_v21, %v1043_v15  ;;  %v1281_v49 = vadd.f32 %v1170_v61, %v833_v58  ;;  %v1436_v53 = vadd.f32 %v1400_v43, %v7234_v8 }
 0x131   : > { %v1282_v45 = vadd.f32 %v1172_v3, %v929_v44  ;;  %v1322_v38 = vadd.f32 %v1280_v39, %v958_v4  ;;  %v1438_v37 = vadd.f32 %v1402_v11, %v7237_v12  ;;  %v3150_v42 = vsel %vm2030_vm1, %v3147_v63, %v3149_v5 }
 0x132   : > { %v1437_v29 = vadd.f32 %v1401_v0, %v7239_v20  ;;  %v1323_v14 = vadd.f32 %v1281_v49, %v960_v51  ;;  %v1508_v21 = vand.u32 2147483647, %v1436_v53  ;;  %v6334_v58 = vpack.i.bf16 %v3150_v42, %v3148_v24  ;;  %v7916_v0 = vpop.permute.xlu0 %6175 }
 0x133   : > { %v1324_v40 = vadd.f32 %v1282_v45, %v959_v48  ;;  %v1472_v32 = vsub.f32 %v7259_v1, %v1322_v38  ;;  %v1510_v2 = vand.u32 2147483647, %v1438_v37  ;;  %v7919_v1 = vpop.permute.xlu1 %6170  ;;  %v6128_v39 = vunpack.i.h.bf16 %v7796_v27 }
 0x134   : > { %v1509_v17 = vand.u32 2147483647, %v1437_v29  ;;  %v1473_v44 = vsub.f32 %v7264_v23, %v1323_v14  ;;  %v1544_v4 = vmul.f32 0.5, %v1508_v21  ;;  %6335 = vrot.lane.b32.xlu1 %v6334_v58, %s9524_s3  ;;  %v6133_v23 = vunpack.i.h.bf16 %v7816_v54  ;;  %v9571_v29 = vld [vmem:[#allocation14_spill] sm:$0xff] }
 0x135   : > { %v1474_v8 = vsub.f32 %v7267_v47, %v1324_v40  ;;  %v1580_v20 = vand.u32 2147483647, %v1472_v32  ;;  %v1546_v63 = vmul.f32 0.5, %v1510_v2  ;;  %v6132_v47 = vunpack.i.l.bf16 %v7816_v54  ;;  %v9572_v54 = vld [vmem:[#allocation15_spill] sm:$0xff] }
 0x136   : > { %v1545_v12 = vmul.f32 0.5, %v1509_v17  ;;  %v1581_v49 = vand.u32 2147483647, %v1473_v44  ;;  %v7924_v43 = vpop.permute.xlu0 %6180  ;;  %v6127_v5 = vunpack.i.l.bf16 %v7796_v27  ;;  %v6123_v61 = vunpack.i.h.bf16 %v7831_v19 }
 0x137   : > { %v1582_v48 = vand.u32 2147483647, %v1474_v8  ;;  %v1616_v51 = vmul.f32 0.5, %v1580_v20  ;;  %v3263_v37 = vsel %vm2141_vm6, %v9571_v29, %v6133_v23  ;;  %v3262_v42 = vsel %vm2141_vm6, %v9572_v54, %v6132_v47  ;;  %v7935_v21 = vpop.permute.xlu1 %6185 }
 0x138   : > { %v1617_v38 = vmul.f32 0.5, %v1581_v49  ;;  %v6122_v14 = vunpack.i.l.bf16 %v7831_v19  ;;  %v6143_v40 = vunpack.i.h.bf16 %v7847_v33  ;;  %v6142_v32 = vunpack.i.l.bf16 %v7847_v33 }
 0x139   : > { %v1618_v30 = vmul.f32 0.5, %v1582_v48  ;;  %v1652_v24 = vadd.f32 %v1616_v51, %v1544_v4  ;;  %v6152_v47 = vunpack.i.l.bf16 %v7889_v26  ;;  %v6148_v29 = vunpack.i.h.bf16 %v7872_v22 }
 0x13a   : > { %v1653_v15 = vadd.f32 %v1617_v38, %v1545_v12  ;;  %v6138_v12 = vunpack.i.h.bf16 %v7861_v9  ;;  %v3282_v48 = vsel %vm2162_vm7, %v3262_v42, %v6142_v32  ;;  %v3283_v51 = vsel %vm2162_vm7, %v3263_v37, %v6143_v40  ;;  %v9576_v32 = vld [vmem:[#allocation16_spill] sm:$0xff] }
 0x13b   : > { %v1654_v25 = vadd.f32 %v1618_v30, %v1546_v63  ;;  %v1755_v36 = vrot.slane %v1652_v24, 1  ;;  %v1706_v11 = vrot.slane %v1652_v24, 3  ;;  %v7950_v63 = vpop.permute.xlu0 %6190  ;;  %v6137_v38 = vunpack.i.l.bf16 %v7861_v9 }
 0x13c   : > { %v1756_v3 = vrot.slane %v1653_v15, 1  ;;  %v6147_v37 = vunpack.i.l.bf16 %v7872_v22  ;;  %v6158_v54 = vunpack.i.h.bf16 %v7898_v34  ;;  %v7972_v40 = vpack.c.bf16 %v3283_v51, %v3282_v48 }
 0x13d   : > { %v1758_v45 = vrot.slane %v1654_v25, 1  ;;  %v1851_v53 = vrot.slane %v1654_v25, 7  ;;  %v9573_v25 = vld [vmem:[#allocation12_spill] sm:$0xff]  ;;  %v6178_v48 = vunpack.i.h.bf16 %v7916_v0 }
 0x13e   : > { %v1757_v27 = vsel %vm1754_vm2, %v1755_v36, %v1756_v3  ;;  %v3261_v36 = vsel %vm2141_vm6, %v9573_v25, %v6123_v61  ;;  %v9575_v61 = vld [vmem:[#allocation17_spill] sm:$0xff] }
 0x13f   : > { %v7939_v17 = vsel %vm1754_vm2, %v1756_v3, %v1758_v45  ;;  %v1887_v2 = vsel %vm830_vm0, %v1758_v45, %v1851_v53  ;;  %v7943_v58 = vsel %vm830_vm0, %v1706_v11, %v1757_v27  ;;  %v6153_v11 = vunpack.i.h.bf16 %v7889_v26  ;;  %v7964_v45 = vpop.permute.xlu1 %6205  ;;  %v9574_v53 = vld [vmem:[#allocation13_spill] sm:$0xff] }
 0x140   : > { %v1921_v44 = vrot.slane %v7939_v17, 1  ;;  %v1923_v19 = vrot.slane %v1887_v2, 1  ;;  %v2032_v8 = vrot.slane %v7939_v17, 2  ;;  %v1920_v33 = vrot.slane %v7943_v58, 1 }
 0x141   : > { %v2031_v4 = vrot.slane %v7943_v58, 2  ;;  %v2034_v20 = vrot.slane %v1887_v2, 2  ;;  %v6157_v3 = vunpack.i.l.bf16 %v7898_v34  ;;  %v3260_v9 = vsel %vm2141_vm6, %v9574_v53, %v6122_v14  ;;  %v9578_v34 = vld [vmem:[#allocation20_spill] sm:$0xff] }
 0x142   : > { %v1924_v49 = vsel %vm1754_vm2, %v1921_v44, %v1923_v19  ;;  %v1922_v30 = vsel %vm1754_vm2, %v1920_v33, %v1921_v44  ;;  %v3265_v26 = vsel %vm2141_vm6, %v9575_v61, %v6138_v12  ;;  %v3264_v27 = vsel %vm2141_vm6, %v9576_v32, %v6137_v38  ;;  %v9577_v44 = vld [vmem:[#allocation19_spill] sm:$0xff]  ;;  %v7982_v19 = vpop.permute.xlu0 %6195 }
 0x143   : > { %v2033_v24 = vsel %vm2030_vm1, %v2031_v4, %v2032_v8  ;;  %v2035_v23 = vsel %vm2030_vm1, %v2032_v8, %v2034_v20  ;;  %v6319_v15 = vpack.i.bf16 %v1924_v49, %v1922_v30  ;;  %v6163_v2 = vunpack.i.h.bf16 %v7911_v57 }
 0x144   : > { %v6329_v42 = vpack.i.bf16 %v2035_v23, %v2033_v24  ;;  %v6162_v14 = vunpack.i.l.bf16 %v7911_v57  ;;  %v3258_v22 = vsel %vm2141_vm6, %v9577_v44, %v6152_v47  ;;  %v3259_v8 = vsel %vm2141_vm6, %v9578_v34, %v6153_v11  ;;  %v9580_v23 = vld [vmem:[#allocation22_spill] sm:$0xff] }
 0x145   : > { %6320 = vrot.lane.b32.xlu0 %v6319_v15, %s9521_s15  ;;  %v3278_v33 = vsel %vm2162_vm7, %v3258_v22, %v6157_v3  ;;  %v3280_v4 = vsel %vm2162_vm7, %v3260_v9, %v6127_v5  ;;  %v3281_v20 = vsel %vm2162_vm7, %v3261_v36, %v6128_v39  ;;  %v3284_v12 = vsel %vm2162_vm7, %v3264_v27, %v6147_v37  ;;  %v7998_v5 = vpop.permute.xlu1 %6210  ;;  %v9579_v39 = vld [vmem:[#allocation21_spill] sm:$0xff]  ;;  %v2842_v27 = vld [vmem:[%s7781_s29 + $0x18] sm:$0xff] }
 0x146   : > { %v3285_v49 = vsel %vm2162_vm7, %v3265_v26, %v6148_v29  ;;  %v3279_v57 = vsel %vm2162_vm7, %v3259_v8, %v6158_v54  ;;  %v6173_v38 = vunpack.i.h.bf16 %v7919_v1  ;;  %v6172_v30 = vunpack.i.l.bf16 %v7919_v1  ;;  %v6510_v36 = vld [vmem:[%s9430_s8 + $0x8] sm:$0xff]   ;;  %v8020_v29 = vpop.permute.xlu0 %6200  ;;  %v2841_v54 = vld [vmem:[%s7781_s29 + $0x10] sm:$0xff] }
 0x147   : > { %v7994_v51 = vpack.c.bf16 %v3279_v57, %v3278_v33  ;;  %v3267_v24 = vsel %vm2141_vm6, %v9579_v39, %v6163_v2  ;;  %v3266_v47 = vsel %vm2141_vm6, %v9580_v23, %v6162_v14  ;;  %v6177_v15 = vunpack.i.l.bf16 %v7916_v0  ;;  %v6511_v2 = vld [vmem:[%s9430_s8 + $0x10] sm:$0xff]   ;;  %v9583_v33 = vld [vmem:[#allocation29_spill] sm:$0xff] }
 0x148   : > { %v8005_v25 = vpack.c.bf16 %v3281_v20, %v3280_v4  ;;  %v6168_v11 = vunpack.i.h.bf16 %v7901_v52  ;;  %v6167_v1 = vunpack.i.l.bf16 %v7901_v52  ;;  %v6188_v3 = vunpack.i.h.bf16 %v7935_v21  ;;  %v9584_v20 = vld [vmem:[#allocation30_spill] sm:$0xff] }
 0x149   : > { %6330 = vrot.lane.b32.xlu0 %v6329_v42, %s9524_s3  ;;  %5855 = vmatprep.mubr.msk.bf16.mxu1 %vm2283_vm8, %v7994_v51  ;;  %v6187_v53 = vunpack.i.l.bf16 %v7935_v21  ;;  %v6183_v0 = vunpack.i.h.bf16 %v7924_v43  ;;  %v6182_v9 = vunpack.i.l.bf16 %v7924_v43  ;;  %v3286_v37 = vsel %vm2162_vm7, %v3266_v47, %v6172_v30  ;;  %v9581_v42 = vld [vmem:[#allocation27_spill] sm:$0xff]  ;;  %v9582_v43 = vld [vmem:[#allocation28_spill] sm:$0xff]  ;;  %v6231_v34 = vpop.permute.xlu1 %6230 }
 0x14a   : > { %5856 = vmatmul.mubr.msk.bf16.vlgmr.msra.gmra.mrb[0].mxu1 %vm2283_vm8, %v8005_v25  ;;  %v3287_v52 = vsel %vm2162_vm7, %v3267_v24, %v6173_v38  ;;  %v8028_v21 = vpack.c.bf16 %v3285_v49, %v3284_v12  ;;  %v2149_v61 = vsel %vm2141_vm6, %v9581_v42, %v6178_v48  ;;  %v2148_v26 = vsel %vm2141_vm6, %v9582_v43, %v6177_v15  ;;  %v6501_v49 = vld [vmem:[%s7636_s13 + $0x20] sm:%s7650_s14]  ;;  %v8061_v47 = vpop.permute.xlu0 %6215  ;;  %v6504_v15 = vld [vmem:[%s7636_s13 + $0x28] sm:%s7650_s14]  ;;  %s9288_s13 = scalar_lea.vmem [#allocation2], %s5345_s23  ;;  %s5634_s14 = sshll.u32 %s6650_s25, 5 }
 0x14b   : > { %5859 = vmatprep.mubr.msk.bf16.mxu1 %vm2283_vm8, %v7972_v40  ;;  %5876 = vmatpush3.bf16.msra.mxu1 %v7701_v13  ;;  %v6193_v32 = vunpack.i.h.bf16 %v7950_v63  ;;  %v3269_v13 = vsel %vm2141_vm6, %v6916_v6, %v6168_v11  ;;  %v3268_v14 = vsel %vm2141_vm6, %v6946_v18, %v6167_v1  ;;  %v2169_v44 = vsel %vm2162_vm7, %v2148_v26, %v6187_v53  ;;  %v6514_v11 = vld [vmem:[%s9430_s8 + $0x18] sm:$0xff]  }
 0x14c   : > { %5877 = vmatprep.subr.bf16.mxu1 %v6510_v36  ;;  %v2170_v22 = vsel %vm2162_vm7, %v2149_v61, %v6188_v3  ;;  %v8045_v8 = vpack.c.bf16 %v3287_v52, %v3286_v37  ;;  %v2151_v4 = vsel %vm2141_vm6, %v9583_v33, %v6183_v0  ;;  %v8051_v12 = vsel %vm2141_vm6, %v9584_v20, %v6182_v9 }
 0x14d   : > { %v2870_v6 = vrot.slane %v2841_v54, 1  ;;  %v6192_v18 = vunpack.i.l.bf16 %v7950_v63  ;;  %v2928_v57 = vrot.slane %v2841_v54, 7  ;;  %v2929_v48 = vrot.slane %v2842_v27, 7 }
 0x14e   : > { %v2978_v38 = vrot.slane %v2842_v27, 5  ;;  %v8056_v30 = vpack.c.bf16 %v2170_v22, %v2169_v44  ;;  %v8059_v39 = vsel %vm2162_vm7, %v2151_v4, %v6193_v32  ;;  %v6233_v24 = vunpack.i.h.bf16 %v6231_v34  ;;  %v6516_v22 = vld [vmem:[%s9430_s8 + $0x20] sm:$0xff]  }
 0x14f   : > { %5878 = vmatpush3.bf16.msra.mxu1 %v6510_v36  ;;  %v6232_v23 = vunpack.i.l.bf16 %v6231_v34  ;;  %v8069_v1 = vsel %vm830_vm0, %v2928_v57, %v2929_v48  ;;  %v8072_v36 = vsel %vm830_vm0, %v2870_v6, %v2928_v57  ;;  %v870_v53 = vrot.slane %v6501_v49, 7  ;;  %v8101_v57 = vpop.permute.xlu0 %6220 }
 0x150   : > { %5879 = vmatprep.subr.bf16.mxu1 %v6511_v2  ;;  %v8075_v3 = vsel %vm830_vm0, %v2929_v48, %v2978_v38  ;;  %v3693_v0 = vrot.slane %v8072_v36, 1  ;;  %v3694_v9 = vrot.slane %v8069_v1, 1  ;;  %v3289_v52 = vsel %vm2162_vm7, %v3269_v13, %v6233_v24  ;;  %v8093_v13 = vpop.permute.xlu1 %6240 }
 0x151   : > { %v3696_v37 = vrot.slane %v8075_v3, 1  ;;  %v6207_v54 = vunpack.i.l.bf16 %v7964_v45  ;;  %v6197_v42 = vunpack.i.l.bf16 %v7982_v19  ;;  %v3288_v61 = vsel %vm2162_vm7, %v3268_v14, %v6232_v23 }
 0x152   : > { %5860 = vmatmul.mubr.msk.bf16.gmra.mrb[4].mxu1 %vm2283_vm8, %v8028_v21  ;;  %v871_v43 = vrot.slane %v6504_v15, 7  ;;  %v6212_v26 = vunpack.i.l.bf16 %v7998_v5  ;;  %v3695_v32 = vsel %vm1754_vm2, %v3693_v0, %v3694_v9  ;;  %v8091_v44 = vpack.c.bf16 %v3289_v52, %v3288_v61 }
 0x153   : > { %5863 = vmatprep.mubr.msk.bf16.mxu1 %vm2283_vm8, %v8045_v8  ;;  %5880 = vmatpush3.bf16.msra.mxu1 %v6511_v2  ;;  %v3697_v27 = vsel %vm1754_vm2, %v3694_v9, %v3696_v37  ;;  %v928_v2 = vsel %vm830_vm0, 0.0, %v870_v53  ;;  %v1397_v38 = vmul.f32 2.0, %v7750_v60  ;;  %v1398_v24 = vmul.f32 2.0, %v7754_v59  ;;  %v6517_v37 = vld [vmem:[%s9430_s8 + $0x28] sm:$0xff]  }
 0x154   : > { %5881 = vmatprep.subr.bf16.mxu1 %v6514_v11  ;;  %v6344_v34 = vpack.i.bf16 %v3697_v27, %v3695_v32  ;;  %v872_v14 = vsel %vm830_vm0, %v870_v53, %v871_v43  ;;  %v942_v33 = vsel %vm830_vm0, %v871_v43, 0.0  ;;  %v997_v4 = vrot.slane %v928_v2, 6  ;;  %v8117_v27 = vpop.permute.xlu1 %6245 }
 0x155   : > { %v998_v20 = vrot.slane %v872_v14, 6  ;;  %v1123_v6 = vmul.f32 2.0, %v928_v2  ;;  %v1124_v49 = vmul.f32 2.0, %v872_v14  ;;  %v1125_v48 = vmul.f32 2.0, %v942_v33 }
 0x156   : > { %6345 = vrot.lane.b32.xlu1 %v6344_v34, %s9521_s15  ;;  %v1399_v23 = vmul.f32 2.0, %v7752_v31  ;;  %v1081_v53 = vsub.f32 %v928_v2, %v997_v4  ;;  %v1433_v60 = vadd.f32 %v1397_v38, %v7721_v41  ;;  %v1434_v59 = vadd.f32 %v1398_v24, %v7725_v62  ;;  %v8127_v24 = vld [vmem:[%s9430_s8 + $0x60] sm:$0xff]  }
 0x157   : > { %5882 = vmatpush3.bf16.msra.mxu1 %v6514_v11  ;;  %v999_v15 = vsel %vm957_vm4, %v997_v4, %v998_v20  ;;  %v1083_v0 = vsub.f32 %v942_v33, %v998_v20  ;;  %v1233_v9 = vrot.slane %v1123_v6, 7  ;;  %v1234_v61 = vrot.slane %v1124_v49, 7 }
 0x158   : > { %5883 = vmatprep.subr.bf16.mxu1 %v6516_v22  ;;  %v1082_v52 = vsub.f32 %v872_v14, %v999_v15  ;;  %v1236_v43 = vrot.slane %v1125_v48, 7  ;;  %v1435_v31 = vadd.f32 %v1399_v23, %v7723_v7  ;;  %v3704_v11 = vrot.slane %v8072_v36, 2  ;;  %v8122_v7 = vpop.permute.xlu0 %6225 }
 0x159   : > { %v1319_v32 = vadd.f32 %v1233_v9, %v928_v2  ;;  %v1235_v34 = vsel %vm830_vm0, %v1233_v9, %v1234_v61  ;;  %v1469_v49 = vadd.f32 %v1433_v60, %v1081_v53  ;;  %v3705_v48 = vrot.slane %v8069_v1, 2 }
 0x15a   : > { %5864 = vmatmul.mubr.msk.bf16.gmra.mrb[8].mxu1 %vm2283_vm8, %v8091_v44  ;;  %v1237_v6 = vsel %vm830_vm0, %v1234_v61, %v1236_v43  ;;  %v1320_v41 = vadd.f32 %v1235_v34, %v872_v14  ;;  %v1470_v38 = vadd.f32 %v1434_v59, %v1082_v52  ;;  %v1471_v23 = vadd.f32 %v1435_v31, %v1083_v0  ;;  %v9585_v52 = vld [vmem:[#allocation34_spill] sm:$0xff]  ;;  %v9586_v0 = vld [vmem:[#allocation43_spill] sm:$0xff]  ;;  %v9587_v34 = vld [vmem:[#allocation44_spill] sm:$0xff] }
 0x15b   : > { %5884 = vmatpush3.bf16.msra.mxu1 %v6516_v22  ;;  %v1321_v2 = vadd.f32 %v1237_v6, %v942_v33  ;;  %v1361_v62 = vadd.f32 %v1319_v32, %v997_v4  ;;  %v1541_v9 = vand.u32 2147483647, %v1469_v49  ;;  %v3706_v61 = vsel %vm2030_vm1, %v3704_v11, %v3705_v48 }
 0x15c   : > { %5885 = vmatprep.subr.bf16.mxu1 %v6517_v37  ;;  %v3707_v53 = vrot.slane %v8075_v3, 2  ;;  %v1362_v43 = vadd.f32 %v1320_v41, %v999_v15  ;;  %v1542_v33 = vand.u32 2147483647, %v1470_v38  ;;  %v6213_v4 = vunpack.i.h.bf16 %v7998_v5  ;;  %v8138_v15 = vpop.permute.xlu1 %6255  ;;  %v9588_v38 = vld [vmem:[#allocation33_spill] sm:$0xff] }
 0x15d   : > { %v1363_v22 = vadd.f32 %v1321_v2, %v998_v20  ;;  %v1505_v14 = vsub.f32 %v1361_v62, %v7735_v50  ;;  %v2146_v60 = vsel %vm2141_vm6, %v9585_v52, %v6212_v26  ;;  %v1543_v32 = vand.u32 2147483647, %v1471_v23  ;;  %v8143_v2 = vpop.permute.xlu0 %6235 }
 0x15e   : > { %v3708_v59 = vsel %vm2030_vm1, %v3705_v48, %v3707_v53  ;;  %v1506_v31 = vsub.f32 %v1362_v43, %v9586_v0  ;;  %v1577_v6 = vmul.f32 0.5, %v1541_v9  ;;  %v6218_v50 = vunpack.i.h.bf16 %v8061_v47 }
 0x15f   : > { %5886 = vmatpush3.bf16.msra.mxu1 %v6517_v37  ;;  %v1507_v11 = vsub.f32 %v1363_v22, %v9587_v34  ;;  %v1613_v3 = vand.u32 2147483647, %v1505_v14  ;;  %v6217_v5 = vunpack.i.l.bf16 %v8061_v47  ;;  %v1578_v20 = vmul.f32 0.5, %v1542_v33  ;;  %v9589_v33 = vld [vmem:[#allocation32_spill] sm:$0xff] }
 0x160   : > { %5907 = vmatprep.subr.bf16.mxu1 %v8127_v24  ;;  %v6354_v26 = vpack.i.bf16 %v3708_v59, %v3706_v61  ;;  %v1579_v49 = vmul.f32 0.5, %v1543_v32  ;;  %v1614_v41 = vand.u32 2147483647, %v1506_v31  ;;  %v6198_v62 = vunpack.i.h.bf16 %v7982_v19  ;;  %v6266_v63 = vpop.permute.xlu1 %6265 }
 0x161   : > { %v1615_v48 = vand.u32 2147483647, %v1507_v11  ;;  %v1649_v37 = vmul.f32 0.5, %v1613_v3  ;;  %v2147_v23 = vsel %vm2141_vm6, %v9588_v38, %v6213_v4  ;;  %v6223_v9 = vunpack.i.h.bf16 %v8101_v57  ;;  %v9591_v11 = vld [vmem:[#allocation24_spill] sm:$0xff] }
 0x162   : > { %6355 = vrot.lane.b32.xlu1 %v6354_v26, %s9524_s3  ;;  %v6222_v53 = vunpack.i.l.bf16 %v8101_v57  ;;  %v1650_v47 = vmul.f32 0.5, %v1614_v41  ;;  %v6242_v22 = vunpack.i.l.bf16 %v8093_v13  ;;  %v8156_v14 = vsel %vm2162_vm7, %v8051_v12, %v6192_v18  ;;  %v9590_v18 = vld [vmem:[#allocation25_spill] sm:$0xff] }
 0x163   : > { %v1651_v43 = vmul.f32 0.5, %v1615_v48  ;;  %v1685_v61 = vadd.f32 %v1649_v37, %v1577_v6  ;;  %v8162_v4 = vsel %vm2141_vm6, %v9589_v33, %v6197_v42  ;;  %v2167_v52 = vsel %vm2162_vm7, %v2146_v60, %v6217_v5  ;;  %v9592_v33 = vld [vmem:[#allocation37_spill] sm:$0xff] }
 0x164   : > { %v6243_v57 = vunpack.i.h.bf16 %v8093_v13  ;;  %v2168_v32 = vsel %vm2162_vm7, %v2147_v23, %v6218_v50  ;;  %v1686_v59 = vadd.f32 %v1650_v47, %v1578_v20  ;;  %v6248_v12 = vunpack.i.h.bf16 %v8117_v27  ;;  %v6509_v47 = vld [vmem:[%s9428_s6 + $0x8] sm:$0xff]  }
 0x165   : > { %v1687_v0 = vadd.f32 %v1651_v43, %v1579_v49  ;;  %v1810_v31 = vrot.slane %v1685_v61, 1  ;;  %v1717_v34 = vrot.slane %v1685_v61, 3  ;;  %v2144_v19 = vsel %vm2141_vm6, %v9590_v18, %v6222_v53 }
 0x166   : > { %v2145_v42 = vsel %vm2141_vm6, %v9591_v11, %v6223_v9  ;;  %v1811_v6 = vrot.slane %v1686_v59, 1  ;;  %v2165_v13 = vsel %vm2162_vm7, %v2144_v19, %v6242_v22  ;;  %v8175_v50 = vpack.c.bf16 %v2168_v32, %v2167_v52  ;;  %v9593_v32 = vld [vmem:[#allocation23_spill] sm:$0xff] }
 0x167   : > { %v1813_v3 = vrot.slane %v1687_v0, 1  ;;  %v1862_v60 = vrot.slane %v1687_v0, 7  ;;  %v6247_v20 = vunpack.i.l.bf16 %v8117_v27  ;;  %v2166_v26 = vsel %vm2162_vm7, %v2145_v42, %v6243_v57  ;;  %v6567_v42 = vld [vmem:[%s9428_s6] sm:$0xff]  }
 0x168   : > { %v6268_v49 = vunpack.i.h.bf16 %v6266_v63  ;;  %v1812_v41 = vsel %vm1754_vm2, %v1810_v31, %v1811_v6  ;;  %v8184_v38 = vpack.c.bf16 %v2166_v26, %v2165_v13  ;;  %v3271_v52 = vsel %vm2141_vm6, %v9592_v33, %v6248_v12  ;;  %v6512_v26 = vld [vmem:[%s9428_s6 + $0x10] sm:$0xff]  }
 0x169   : > { %v8181_v48 = vsel %vm1754_vm2, %v1811_v6, %v1813_v3  ;;  %v1898_v37 = vsel %vm830_vm0, %v1813_v3, %v1862_v60  ;;  %v8187_v23 = vsel %vm830_vm0, %v1717_v34, %v1812_v41  ;;  %v3270_v59 = vsel %vm2141_vm6, %v9593_v32, %v6247_v20  ;;  %v9594_v6 = vld [vmem:[#allocation31_spill] sm:$0xff] }
 0x16a   : > { %v8173_v5 = vpop.permute.xlu0 %6250  ;;  %v2582_v9 = vrot.slane %v8181_v48, 1  ;;  %v2584_v53 = vrot.slane %v1898_v37, 1  ;;  %v2593_v27 = vrot.slane %v8181_v48, 2  ;;  %v2581_v43 = vrot.slane %v8187_v23, 1  ;;  %5759 = vmatprep.mubr.msk.bf16.mxu0 %vm2283_vm8, %v8184_v38 }
 0x16b   : > { %v2592_v61 = vrot.slane %v8187_v23, 2  ;;  %v2595_v22 = vrot.slane %v1898_v37, 2  ;;  %5760 = vmatmul.mubr.msk.bf16.vlgmr.msra.gmra.mrb[0].mxu0 %vm2283_vm8, %v8175_v50  ;;  %v6267_v0 = vunpack.i.l.bf16 %v6266_v63  ;;  %v3291_v31 = vsel %vm2162_vm7, %v3271_v52, %v6268_v49  ;;  %v6276_v63 = vpop.permute.xlu1 %6275  ;;  %v9596_v52 = vld [vmem:[#allocation39_spill] sm:$0xff] }
 0x16c   : > { %v2585_v57 = vsel %vm1754_vm2, %v2582_v9, %v2584_v53  ;;  %v6208_v18 = vunpack.i.h.bf16 %v7964_v45  ;;  %v2583_v19 = vsel %vm1754_vm2, %v2581_v43, %v2582_v9  ;;  %5763 = vmatprep.mubr.msk.bf16.mxu0 %vm2283_vm8, %v8056_v30  ;;  %5780 = vmatpush3.bf16.msra.mxu0 %v6567_v42  ;;  %v2153_v3 = vsel %vm2141_vm6, %v9594_v6, %v6198_v62  ;;  %v9600_v42 = vld [vmem:[#allocation36_spill] sm:$0xff] }
 0x16d   : > { %v2594_v12 = vsel %vm2030_vm1, %v2592_v61, %v2593_v27  ;;  %v2596_v11 = vsel %vm2030_vm1, %v2593_v27, %v2595_v22  ;;  %v6203_v60 = vunpack.i.h.bf16 %v8020_v29  ;;  %v6339_v13 = vpack.i.bf16 %v2585_v57, %v2583_v19  ;;  %5781 = vmatprep.subr.bf16.mxu0 %v6509_v47  ;;  %v9595_v22 = vld [vmem:[#allocation40_spill] sm:$0xff] }
 0x16e   : > { %v6261_v34 = vpop.permute.xlu0 %6260  ;;  %v3290_v20 = vsel %vm2162_vm7, %v3270_v59, %v6267_v0  ;;  %v6238_v49 = vunpack.i.h.bf16 %v8143_v2  ;;  %v6349_v53 = vpack.i.bf16 %v2596_v11, %v2594_v12  ;;  %v6278_v62 = vunpack.i.h.bf16 %v6276_v63  ;;  %v9599_v12 = vld [vmem:[#allocation35_spill] sm:$0xff] }
 0x16f   : > { %v8223_v41 = vpack.c.bf16 %v3291_v31, %v3290_v20  ;;  %v6263_v37 = vunpack.i.h.bf16 %v6261_v34  ;;  %v6262_v9 = vunpack.i.l.bf16 %v6261_v34  ;;  %6340 = vrot.lane.b32.xlu0 %v6339_v13, %s9521_s15  ;;  %v6277_v27 = vunpack.i.l.bf16 %v6276_v63 }
 0x170   : > { %v2173_v43 = vsel %vm2162_vm7, %v8162_v4, %v6207_v54  ;;  %v6237_v61 = vunpack.i.l.bf16 %v8143_v2  ;;  %v2174_v32 = vsel %vm2162_vm7, %v2153_v3, %v6208_v18  ;;  %5782 = vmatpush3.bf16.msra.mxu0 %v6509_v47  ;;  %v8240_v45 = vpack.c.bf16 %v8059_v39, %v8156_v14  ;;  %v6513_v39 = vld [vmem:[%s9428_s6 + $0x18] sm:$0xff]   ;;  %v9597_v47 = vld [vmem:[#allocation26_spill] sm:$0xff]  ;;  %v6515_v3 = vld [vmem:[%s9428_s6 + $0x20] sm:$0xff]  }
 0x171   : > { %v3273_v33 = vsel %vm2141_vm6, %v9595_v22, %v6263_v37  ;;  %v3272_v57 = vsel %vm2141_vm6, %v9596_v52, %v6262_v9  ;;  %5867 = vmatprep.mubr.msk.bf16.mxu1 %vm2283_vm8, %v8223_v41  ;;  %v6202_v54 = vunpack.i.l.bf16 %v8020_v29  ;;  %5783 = vmatprep.subr.bf16.mxu0 %v6512_v26  ;;  %v6228_v59 = vunpack.i.h.bf16 %v8122_v7  ;;  %v9598_v18 = vld [vmem:[#allocation38_spill] sm:$0xff] }
 0x172   : > { %v3293_v2 = vsel %vm2162_vm7, %v3273_v33, %v6278_v62  ;;  %v3292_v4 = vsel %vm2162_vm7, %v3272_v57, %v6277_v27  ;;  %v6227_v0 = vunpack.i.l.bf16 %v8122_v7  ;;  %v8249_v34 = vpack.c.bf16 %v2174_v32, %v2173_v43  ;;  %v6271_v13 = vpop.permute.xlu0 %6270  ;;  %v6518_v27 = vld [vmem:[%s9428_s6 + $0x28] sm:$0xff]   ;;  %v8300_v57 = vld [vmem:[%s9428_s6 + $0x60] sm:$0xff]  }
 0x173   : > { %v8247_v31 = vpack.c.bf16 %v3293_v2, %v3292_v4  ;;  %6350 = vrot.lane.b32.xlu0 %v6349_v53, %s9524_s3  ;;  %v6258_v29 = vunpack.i.h.bf16 %v8138_v15  ;;  %v6257_v14 = vunpack.i.l.bf16 %v8138_v15  ;;  %5764 = vmatmul.mubr.msk.bf16.gmra.mrb[4].mxu0 %vm2283_vm8, %v8240_v45  ;;  %v2157_v7 = vsel %vm2141_vm6, %v9597_v47, %v6238_v49  ;;  %v9601_v43 = vld [vmem:[#allocation41_spill] sm:$0xff] }
 0x174   : > { %v2156_v19 = vsel %vm2141_vm6, %v9598_v18, %v6237_v61  ;;  %5767 = vmatprep.mubr.msk.bf16.mxu0 %vm2283_vm8, %v8249_v34  ;;  %v2155_v11 = vsel %vm2141_vm6, %v9599_v12, %v6203_v60  ;;  %v2154_v15 = vsel %vm2141_vm6, %v9600_v42, %v6202_v54  ;;  %5784 = vmatpush3.bf16.msra.mxu0 %v6512_v26  ;;  %v6253_v60 = vunpack.i.h.bf16 %v8173_v5 }
 0x175   : > { %5868 = vmatmul.mubr.msk.bf16.gmra.mrb[12].mxu1 %vm2283_vm8, %v8247_v31  ;;  %v2176_v63 = vsel %vm2162_vm7, %v2155_v11, %v6228_v59  ;;  %v2175_v6 = vsel %vm2162_vm7, %v2154_v15, %v6227_v0  ;;  %5785 = vmatprep.subr.bf16.mxu0 %v6513_v39  ;;  %v2177_v20 = vsel %vm2162_vm7, %v2156_v19, %v6257_v14  ;;  %v6252_v26 = vunpack.i.l.bf16 %v8173_v5  ;;  %v9602_v5 = vld [vmem:[#allocation42_spill] sm:$0xff] }
 0x176   : > { %v2178_v49 = vsel %vm2162_vm7, %v2157_v7, %v6258_v29  ;;  %v8278_v37 = vpack.c.bf16 %v2176_v63, %v2175_v6  ;;  %v6273_v9 = vunpack.i.h.bf16 %v6271_v13  ;;  %v6272_v53 = vunpack.i.l.bf16 %v6271_v13  ;;  %v6286_v29 = vpop.permute.xlu1 %6285 }
 0x177   : > { %v8282_v62 = vpack.c.bf16 %v2178_v49, %v2177_v20  ;;  %v2159_v61 = vsel %vm2141_vm6, %v9601_v43, %v6253_v60  ;;  %v2158_v22 = vsel %vm2141_vm6, %v9602_v5, %v6252_v26  ;;  %v6288_v12 = vunpack.i.h.bf16 %v6286_v29 }
 0x178   : > { %5786 = vmatpush3.bf16.msra.mxu0 %v6513_v39  ;;  %v2179_v33 = vsel %vm2162_vm7, %v2158_v22, %v6272_v53  ;;  %v2180_v52 = vsel %vm2162_vm7, %v2159_v61, %v6273_v9  ;;  %v6287_v11 = vunpack.i.l.bf16 %v6286_v29  ;;  %v9603_v22 = vld [vmem:[#allocation46_spill] sm:$0xff] }
 0x179   : > { %5787 = vmatprep.subr.bf16.mxu0 %v6515_v3  ;;  %v8302_v32 = vpack.c.bf16 %v2180_v52, %v2179_v33 }
 0x17b   : > { %5768 = vmatmul.mubr.msk.bf16.gmra.mrb[8].mxu0 %vm2283_vm8, %v8278_v37 }
 0x17c   : > { %5771 = vmatprep.mubr.msk.bf16.mxu0 %vm2283_vm8, %v8282_v62  ;;  %5788 = vmatpush3.bf16.msra.mxu0 %v6515_v3 }
 0x17d   : > { %5789 = vmatprep.subr.bf16.mxu0 %v6518_v27 }
 0x180   : > { %5790 = vmatpush3.bf16.msra.mxu0 %v6518_v27 }
 0x181   : > { %5811 = vmatprep.subr.bf16.mxu0 %v8300_v57 }
 0x183   : > { %5772 = vmatmul.mubr.msk.bf16.gmra.mrb[12].mxu0 %vm2283_vm8, %v8302_v32 }
 0x188   : > { %v6281_v54 = vpop.permute.xlu0 %6280 }
 0x189   : > { %v6283_v2 = vunpack.i.h.bf16 %v6281_v54  ;;  %v6282_v4 = vunpack.i.l.bf16 %v6281_v54 }
 0x18b   : > { %v2161_v14 = vsel %vm2141_vm6, %v7773_v28, %v6283_v2  ;;  %v2160_v47 = vsel %vm2141_vm6, %v7784_v10, %v6282_v4  ;;  %v3275_v28 = vsel %vm2141_vm6, %v7683_v16, %v6288_v12  ;;  %v3274_v10 = vsel %vm2141_vm6, %v7674_v55, %v6287_v11 }
 0x18e   : > { %v6291_v59 = vpop.permute.xlu0 %6290 }
 0x18f   : > { %v6293_v0 = vunpack.i.h.bf16 %v6291_v59  ;;  %v6292_v39 = vunpack.i.l.bf16 %v6291_v59 }
 0x191   : > { %v2181_v7 = vsel %vm2162_vm7, %v2160_v47, %v6292_v39  ;;  %v2182_v18 = vsel %vm2162_vm7, %v2161_v14, %v6293_v0  ;;  %v9604_v47 = vld [vmem:[#allocation47_spill] sm:$0xff] }
 0x192   : > { %v8313_v19 = vpack.c.bf16 %v2182_v18, %v2181_v7  ;;  %v9605_v18 = vld [vmem:[#allocation48_spill] sm:$0xff] }
 0x194   : > { %5775 = vmatprep.mubr.msk.bf16.mxu0 %vm2283_vm8, %v8313_v19 }
 0x196   : > { %v6296_v42 = vpop.permute.xlu1 %6295 }
 0x197   : > { %v6301_v15 = vpop.permute.xlu0 %6300  ;;  %v6298_v3 = vunpack.i.h.bf16 %v6296_v42  ;;  %v6297_v13 = vunpack.i.l.bf16 %v6296_v42 }
 0x198   : > { %v6303_v63 = vunpack.i.h.bf16 %v6301_v15  ;;  %v6302_v6 = vunpack.i.l.bf16 %v6301_v15 }
 0x199   : > { %v2230_v16 = vsel %vm2141_vm6, %v7834_v46, %v6298_v3  ;;  %v2229_v55 = vsel %vm2141_vm6, %v7837_v56, %v6297_v13  ;;  %v6524_v3 = vld [vmem:[%s9430_s8 + $0x70] sm:$0xff]   ;;  %v6526_v13 = vld [vmem:[%s9430_s8 + $0x78] sm:$0xff]  }
 0x19a   : > { %v6306_v20 = vpop.permute.xlu1 %6305  ;;  %v3294_v49 = vsel %vm2162_vm7, %v3274_v10, %v6302_v6  ;;  %v3295_v60 = vsel %vm2162_vm7, %v3275_v28, %v6303_v63  ;;  %v6522_v10 = vld [vmem:[%s9430_s8 + $0x68] sm:$0xff]  }
 0x19b   : > { %v6308_v26 = vunpack.i.h.bf16 %v6306_v20  ;;  %v6307_v9 = vunpack.i.l.bf16 %v6306_v20  ;;  %v8323_v53 = vpack.c.bf16 %v3295_v60, %v3294_v49  ;;  %v6311_v27 = vpop.permute.xlu0 %6310 }
 0x19c   : > { %v6313_v43 = vunpack.i.h.bf16 %v6311_v27  ;;  %v6312_v61 = vunpack.i.l.bf16 %v6311_v27  ;;  %v6529_v27 = vld [vmem:[%s9430_s8 + $0x88] sm:$0xff]  }
 0x19d   : > { %5871 = vmatprep.mubr.msk.bf16.mxu1 %vm2283_vm8, %v8323_v53  ;;  %v3343_v5 = vsel %vm2141_vm6, %v7823_v35, %v6308_v26  ;;  %v3342_v33 = vsel %vm2141_vm6, %v9603_v22, %v6307_v9  ;;  %v6521_v22 = vld [vmem:[%s9428_s6 + $0x68] sm:$0xff]  }
 0x19e   : > { %v6316_v52 = vpop.permute.xlu1 %6315  ;;  %v2231_v54 = vsel %vm2162_vm7, %v2229_v55, %v6312_v61  ;;  %v2232_v2 = vsel %vm2162_vm7, %v2230_v16, %v6313_v43 }
 0x19f   : > { %v6318_v4 = vunpack.i.h.bf16 %v6316_v52  ;;  %v6317_v59 = vunpack.i.l.bf16 %v6316_v52  ;;  %v8337_v46 = vpack.c.bf16 %v2232_v2, %v2231_v54 }
 0x1a1   : > { %v3344_v56 = vsel %vm2162_vm7, %v3342_v33, %v6317_v59  ;;  %v3345_v0 = vsel %vm2162_vm7, %v3343_v5, %v6318_v4  ;;  %5776 = vmatmul.mubr.msk.bf16.gmra.mrb[16].mxu0 %vm2283_vm8, %v8337_v46 }
 0x1a2   : > { %v8343_v35 = vpack.c.bf16 %v3345_v0, %v3344_v56  ;;  %v6326_v39 = vpop.permute.xlu1 %6325 }
 0x1a3   : > { %v6328_v29 = vunpack.i.h.bf16 %v6326_v39  ;;  %v6327_v14 = vunpack.i.l.bf16 %v6326_v39 }
 0x1a4   : > { %5872 = vmatmul.mubr.msk.bf16.gmra.mrb[16].mxu1 %vm2283_vm8, %v8343_v35 }
 0x1a5   : > { %v3257_v7 = vsel %vm2141_vm6, %v9604_v47, %v6328_v29  ;;  %v3256_v12 = vsel %vm2141_vm6, %v9605_v18, %v6327_v14  ;;  %v8491_v18 = vld [vmem:[%s9431_s9] ss:$0 sm:$0xff] }
 0x1a6   : > { %v6336_v11 = vpop.permute.xlu1 %6335 }
 0x1a7   : > { %v6338_v42 = vunpack.i.h.bf16 %v6336_v11  ;;  %v6337_v15 = vunpack.i.l.bf16 %v6336_v11 }
 0x1a9   : > { %v3276_v63 = vsel %vm2162_vm7, %v3256_v12, %v6337_v15  ;;  %v3277_v6 = vsel %vm2162_vm7, %v3257_v7, %v6338_v42 }
 0x1aa   : > { %v3296_v28 = vpack.c.bf16 %v3277_v6, %v3276_v63 }
 0x1ac   : > { %5887 = vmatprep.mubr.msk.bf16.mxu1 %vm2283_vm8, %v3296_v28 }
 0x1ad   : > { %5888 = vmatmul.mubr.msk.bf16.vlgmr.msra.gmra.mrb[0].mxu1 %vm2283_vm8, %v7994_v51 }
 0x1ae   : > { %5891 = vmatprep.mubr.msk.bf16.mxu1 %vm2283_vm8, %v8005_v25  ;;  %5908 = vmatpush3.bf16.msra.mxu1 %v8127_v24  ;;  %v6528_v24 = vld [vmem:[%s9430_s8 + $0x80] sm:$0xff]  }
 0x1af   : > { %5909 = vmatprep.subr.bf16.mxu1 %v6522_v10 }
 0x1b2   : > { %5910 = vmatpush3.bf16.msra.mxu1 %v6522_v10 }
 0x1b3   : > { %5911 = vmatprep.subr.bf16.mxu1 %v6524_v3 }
 0x1b5   : > { %5892 = vmatmul.mubr.msk.bf16.gmra.mrb[4].mxu1 %vm2283_vm8, %v7972_v40 }
 0x1b6   : > { %5895 = vmatprep.mubr.msk.bf16.mxu1 %vm2283_vm8, %v8028_v21  ;;  %5912 = vmatpush3.bf16.msra.mxu1 %v6524_v3 }
 0x1b7   : > { %v6321_v51 = vpop.permute.xlu0 %6320  ;;  %5913 = vmatprep.subr.bf16.mxu1 %v6526_v13 }
 0x1b8   : > { %v6323_v20 = vunpack.i.h.bf16 %v6321_v51  ;;  %v6322_v49 = vunpack.i.l.bf16 %v6321_v51 }
 0x1ba   : > { %5914 = vmatpush3.bf16.msra.mxu1 %v6526_v13  ;;  %v2143_v43 = vsel %vm2141_vm6, %v7939_v17, %v6323_v20  ;;  %v2142_v61 = vsel %vm2141_vm6, %v7943_v58, %v6322_v49  ;;  %v6523_v17 = vld [vmem:[%s9428_s6 + $0x70] sm:$0xff]   ;;  %v6525_v58 = vld [vmem:[%s9428_s6 + $0x78] sm:$0xff]  }
 0x1bb   : > { %v6331_v60 = vpop.permute.xlu0 %6330  ;;  %5915 = vmatprep.subr.bf16.mxu1 %v6528_v24 }
 0x1bc   : > { %v6333_v26 = vunpack.i.h.bf16 %v6331_v60  ;;  %v6332_v9 = vunpack.i.l.bf16 %v6331_v60 }
 0x1bd   : > { %5896 = vmatmul.mubr.msk.bf16.gmra.mrb[8].mxu1 %vm2283_vm8, %v8045_v8 }
 0x1be   : > { %v2163_v16 = vsel %vm2162_vm7, %v2142_v61, %v6332_v9  ;;  %v2164_v55 = vsel %vm2162_vm7, %v2143_v43, %v6333_v26  ;;  %5899 = vmatprep.mubr.msk.bf16.mxu1 %vm2283_vm8, %v8091_v44  ;;  %5916 = vmatpush3.bf16.msra.mxu1 %v6528_v24 }
 0x1bf   : > { %v2183_v5 = vpack.c.bf16 %v2164_v55, %v2163_v16  ;;  %5917 = vmatprep.subr.bf16.mxu1 %v6529_v27 }
 0x1c1   : > { %5791 = vmatprep.mubr.msk.bf16.mxu0 %vm2283_vm8, %v2183_v5 }
 0x1c2   : > { %5792 = vmatmul.mubr.msk.bf16.vlgmr.msra.gmra.mrb[0].mxu0 %vm2283_vm8, %v8184_v38  ;;  %5918 = vmatpush3.bf16.msra.mxu1 %v6529_v27  ;;  %v6527_v38 = vld [vmem:[%s9428_s6 + $0x80] sm:$0xff]  }
 0x1c3   : > { %5812 = vmatpush3.bf16.msra.mxu0 %v8300_v57  ;;  %5795 = vmatprep.mubr.msk.bf16.mxu0 %vm2283_vm8, %v8175_v50  ;;  %v6530_v57 = vld [vmem:[%s9428_s6 + $0x88] sm:$0xff]  }
 0x1c4   : > { %5813 = vmatprep.subr.bf16.mxu0 %v6521_v22 }
 0x1c5   : > { %5900 = vmatmul.mubr.msk.bf16.gmra.mrb[12].mxu1 %vm2283_vm8, %v8223_v41 }
 0x1c6   : > { %5903 = vmatprep.mubr.msk.bf16.mxu1 %vm2283_vm8, %v8247_v31 }
 0x1c7   : > { %5814 = vmatpush3.bf16.msra.mxu0 %v6521_v22 }
 0x1c8   : > { %5815 = vmatprep.subr.bf16.mxu0 %v6523_v17 }
 0x1ca   : > { %5796 = vmatmul.mubr.msk.bf16.gmra.mrb[4].mxu0 %vm2283_vm8, %v8056_v30 }
 0x1cb   : > { %5799 = vmatprep.mubr.msk.bf16.mxu0 %vm2283_vm8, %v8240_v45  ;;  %5816 = vmatpush3.bf16.msra.mxu0 %v6523_v17 }
 0x1cc   : > { %5817 = vmatprep.subr.bf16.mxu0 %v6525_v58 }
 0x1cd   : > { %5904 = vmatmul.mubr.msk.bf16.gmra.mrb[16].mxu1 %vm2283_vm8, %v8323_v53 }
 0x1ce   : > { %5919 = vmatprep.mubr.msk.bf16.mxu1 %vm2283_vm8, %v8005_v25 }
 0x1cf   : > { %5818 = vmatpush3.bf16.msra.mxu0 %v6525_v58 }
 0x1d0   : > { %5819 = vmatprep.subr.bf16.mxu0 %v6527_v38 }
 0x1d2   : > { %5800 = vmatmul.mubr.msk.bf16.gmra.mrb[8].mxu0 %vm2283_vm8, %v8249_v34 }
 0x1d3   : > { %5803 = vmatprep.mubr.msk.bf16.mxu0 %vm2283_vm8, %v8278_v37  ;;  %5820 = vmatpush3.bf16.msra.mxu0 %v6527_v38 }
 0x1d4   : > { %5821 = vmatprep.subr.bf16.mxu0 %v6530_v57 }
 0x1d5   : > { %5920 = vmatmul.mubr.msk.bf16.vlgmr.msra.gmra.mrb[0].mxu1 %vm2283_vm8, %v7972_v40  ;;  %v6346_v40 = vpop.permute.xlu1 %6345 }
 0x1d6   : > { %5923 = vmatprep.mubr.msk.bf16.mxu1 %vm2283_vm8, %v8028_v21  ;;  %v6348_v25 = vunpack.i.h.bf16 %v6346_v40  ;;  %v6347_v21 = vunpack.i.l.bf16 %v6346_v40 }
 0x1d7   : > { %5822 = vmatpush3.bf16.msra.mxu0 %v6530_v57 }
 0x1d9   : > { %v6356_v33 = vpop.permute.xlu1 %6355 }
 0x1da   : > { %5804 = vmatmul.mubr.msk.bf16.gmra.mrb[12].mxu0 %vm2283_vm8, %v8282_v62 }
 0x1db   : > { %5807 = vmatprep.mubr.msk.bf16.mxu0 %vm2283_vm8, %v8302_v32 }
 0x1dd   : > { %5924 = vmatmul.mubr.msk.bf16.gmra.mrb[4].mxu1 %vm2283_vm8, %v8045_v8  ;;  %v6358_v8 = vunpack.i.h.bf16 %v6356_v33 }
 0x1de   : > { %5927 = vmatprep.mubr.msk.bf16.mxu1 %vm2283_vm8, %v8091_v44  ;;  %v6357_v44 = vunpack.i.l.bf16 %v6356_v33 }
 0x1e2   : > { %5808 = vmatmul.mubr.msk.bf16.gmra.mrb[16].mxu0 %vm2283_vm8, %v8313_v19 }
 0x1e3   : > { %5823 = vmatprep.mubr.msk.bf16.mxu0 %vm2283_vm8, %v8175_v50  ;;  %v3716_v50 = vsel %vm2141_vm6, %v8069_v1, %v6348_v25  ;;  %v6341_v1 = vpop.permute.xlu0 %6340 }
 0x1e5   : > { %5928 = vmatmul.mubr.msk.bf16.gmra.mrb[8].mxu1 %vm2283_vm8, %v8223_v41  ;;  %v3715_v41 = vsel %vm2141_vm6, %v8072_v36, %v6347_v21  ;;  %v6343_v36 = vunpack.i.h.bf16 %v6341_v1 }
 0x1e6   : > { %5931 = vmatprep.mubr.msk.bf16.mxu1 %vm2283_vm8, %v8247_v31  ;;  %v3717_v31 = vsel %vm2162_vm7, %v3715_v41, %v6357_v44 }
 0x1e7   : > { %v6351_v52 = vpop.permute.xlu0 %6350 }
 0x1e8   : > { %v6353_v54 = vunpack.i.h.bf16 %v6351_v52  ;;  %v6352_v2 = vunpack.i.l.bf16 %v6351_v52 }
 0x1ea   : > { %5824 = vmatmul.mubr.msk.bf16.vlgmr.msra.gmra.mrb[0].mxu0 %vm2283_vm8, %v8056_v30  ;;  %v3718_v30 = vsel %vm2162_vm7, %v3716_v50, %v6358_v8 }
 0x1eb   : > { %5827 = vmatprep.mubr.msk.bf16.mxu0 %vm2283_vm8, %v8240_v45  ;;  %v3719_v45 = vpack.c.bf16 %v3718_v30, %v3717_v31 }
 0x1ed   : > { %5932 = vmatmul.mubr.msk.bf16.gmra.mrb[12].mxu1 %vm2283_vm8, %v8323_v53  ;;  %v6342_v53 = vunpack.i.l.bf16 %v6341_v1 }
 0x1ee   : > { %5935 = vmatprep.mubr.msk.bf16.mxu1 %vm2283_vm8, %v8343_v35 }
 0x1f2   : > { %5828 = vmatmul.mubr.msk.bf16.gmra.mrb[4].mxu0 %vm2283_vm8, %v8249_v34  ;;  %v2604_v34 = vsel %vm2141_vm6, %v8181_v48, %v6343_v36 }
 0x1f3   : > { %5831 = vmatprep.mubr.msk.bf16.mxu0 %vm2283_vm8, %v8278_v37  ;;  %v2603_v37 = vsel %vm2141_vm6, %v8187_v23, %v6342_v53 }
 0x1f5   : > { %5936 = vmatmul.mubr.msk.bf16.gmra.mrb[16].mxu1 %vm2283_vm8, %v3719_v45 }
 0x1fa   : > { %5832 = vmatmul.mubr.msk.bf16.gmra.mrb[8].mxu0 %vm2283_vm8, %v8282_v62  ;;  %v2605_v62 = vsel %vm2162_vm7, %v2603_v37, %v6352_v2 }
 0x1fb   : > { %5835 = vmatprep.mubr.msk.bf16.mxu0 %vm2283_vm8, %v8302_v32  ;;  %v2606_v32 = vsel %vm2162_vm7, %v2604_v34, %v6353_v54 }
 0x1fc   : > { %v2607_v4 = vpack.c.bf16 %v2606_v32, %v2605_v62 }
 0x202   : > { %5836 = vmatmul.mubr.msk.bf16.gmra.mrb[12].mxu0 %vm2283_vm8, %v8313_v19 }
 0x203   : > { %5839 = vmatprep.mubr.msk.bf16.mxu0 %vm2283_vm8, %v8337_v46  ;;  %v8484_v46 = vld [vmem:[%s9429_s7] ss:$0 sm:$0xff] }
 0x20a   : > { %5840 = vmatmul.mubr.msk.bf16.gmra.mrb[16].mxu0 %vm2283_vm8, %v2607_v4 }
 0x2a8   : > { %v5921_v59 = vpop.f32.mrb[0].mxu1 }
 0x2a9   : > { %v3806_v56 = vpop.f32.mrb[1].mxu1  ;;  %v8497_v63 = vadd.f32 %v5921_v59, %v8491_v18 }
 0x2aa   : > { %v5922_v0 = vpop.f32.mrb[2].mxu1  ;;  %v3911_v22 = vadd.f32 %v8491_v18, %v3806_v56 }
 0x2ab   : > { %v3809_v48 = vpop.f32.mrb[3].mxu1  ;;  %v8500_v6 = vadd.f32 %v5922_v0, %v8491_v18 }
 0x2ac   : > { %v3912_v40 = vadd.f32 %v8491_v18, %v3809_v48 }
 0x2b0   : > { %v5925_v35 = vpop.f32.mrb[4].mxu1 }
 0x2b1   : > { %v3822_v39 = vpop.f32.mrb[5].mxu1  ;;  %v8533_v17 = vadd.f32 %v5925_v35, %v8491_v18 }
 0x2b2   : > { %v5926_v23 = vpop.f32.mrb[6].mxu1  ;;  %v8523_v61 = vadd.f32 %v8491_v18, %v3822_v39 }
 0x2b3   : > { %v3825_v29 = vpop.f32.mrb[7].mxu1  ;;  %v8536_v58 = vadd.f32 %v5926_v23, %v8491_v18 }
 0x2b4   : > { %v8526_v16 = vadd.f32 %v8491_v18, %v3825_v29  ;;  %v8561_v45 = vsel %vm6911_vm3, %v8523_v61, %v3911_v22 }
 0x2b6   : > { %v8566_v1 = vsel %vm6911_vm3, %v8526_v16, %v3912_v40 }
 0x2b8   : > { %v5929_v14 = vpop.f32.mrb[8].mxu1 }
 0x2b9   : > { %v8479_v19 = vpop.f32.mrb[9].mxu1  ;;  %v8586_v39 = vadd.f32 %v5929_v14, %v8491_v18 }
 0x2ba   : > { %v5930_v47 = vpop.f32.mrb[10].mxu1 }
 0x2bb   : > { %v8486_v7 = vpop.f32.mrb[11].mxu1  ;;  %v8589_v23 = vadd.f32 %v5930_v47, %v8491_v18 }
 0x2bd   : > { %v5825_v12 = vpop.f32.mrb[0].mxu0 }
 0x2be   : > { %v8494_v11 = vadd.f32 %v5825_v12, %v8484_v46  ;;  %v2694_v42 = vpop.f32.mrb[1].mxu0 }
 0x2bf   : > { %v5826_v15 = vpop.f32.mrb[2].mxu0  ;;  %v2799_v43 = vadd.f32 %v8484_v46, %v2694_v42  ;;  %v8597_v42 = vadd.f32 %v8491_v18, %v8479_v19 }
 0x2c0   : > { %v8503_v28 = vadd.f32 %v5826_v15, %v8484_v46  ;;  %v2697_v10 = vpop.f32.mrb[3].mxu0  ;;  %v8505_v3 = vpop.f32.mrb[12].mxu1  ;;  %v3941_v13 = vmul.f32 %v8497_v63, %v8494_v11  ;;  %v8601_v15 = vadd.f32 %v8491_v18, %v8486_v7 }
 0x2c1   : > { %v8511_v24 = vpop.f32.mrb[13].mxu1  ;;  %v2800_v25 = vadd.f32 %v8484_v46, %v2697_v10 }
 0x2c2   : > { %v3942_v51 = vmul.f32 %v8500_v6, %v8503_v28  ;;  %v8513_v20 = vpop.f32.mrb[14].mxu1 }
 0x2c3   : > { %v8515_v60 = vpop.f32.mrb[15].mxu1  ;;  %v8628_v40 = vadd.f32 %v8513_v20, %v8491_v18 }
 0x2c4   : > { %v6364_v49 = vpack.i.bf16 %v3942_v51, %v3941_v13 }
 0x2c5   : > { %v5829_v26 = vpop.f32.mrb[4].mxu0 }
 0x2c6   : > { %v8518_v9 = vadd.f32 %v5829_v26, %v8484_v46  ;;  %6365 = vrot.lane.b32.xlu1 %v6364_v49, %s9521_s15  ;;  %v2710_v27 = vpop.f32.mrb[5].mxu0 }
 0x2c7   : > { %v8529_v55 = vadd.f32 %v8484_v46, %v2710_v27  ;;  %v5830_v5 = vpop.f32.mrb[6].mxu0 }
 0x2c8   : > { %v8539_v38 = vadd.f32 %v5830_v5, %v8484_v46  ;;  %v2713_v57 = vpop.f32.mrb[7].mxu0  ;;  %v5937_v44 = vpop.f32.mrb[16].mxu1  ;;  %v3945_v50 = vmul.f32 %v8533_v17, %v8518_v9 }
 0x2c9   : > { %v3931_v33 = vsel %vm6911_vm3, %v8529_v55, %v2799_v43  ;;  %v8547_v8 = vadd.f32 %v8484_v46, %v2713_v57  ;;  %v8554_v31 = vadd.f32 %v5937_v44, %v8491_v18  ;;  %v8556_v30 = vpop.f32.mrb[17].mxu1  ;;  %v3943_v35 = vmul.f32 %v8523_v61, %v8529_v55 }
 0x2ca   : > { %v3946_v41 = vmul.f32 %v8536_v58, %v8539_v38  ;;  %v5938_v53 = vpop.f32.mrb[18].mxu1  ;;  %v3939_v54 = vmul.f32 %v8561_v45, %v3931_v33  ;;  %v8624_v57 = vadd.f32 %v8505_v3, %v8491_v18  ;;  %v8636_v33 = vadd.f32 %v8491_v18, %v8511_v24 }
 0x2cb   : > { %v3932_v36 = vsel %vm6911_vm3, %v8547_v8, %v2800_v25  ;;  %v3930_v34 = vadd.f32 %v5938_v53, %v8491_v18  ;;  %v3873_v37 = vpop.f32.mrb[19].mxu1  ;;  %v3944_v32 = vmul.f32 %v8526_v16, %v8547_v8  ;;  %v8640_v44 = vadd.f32 %v8491_v18, %v8515_v60 }
 0x2cc   : > { %v6374_v52 = vpack.i.bf16 %v3946_v41, %v3945_v50  ;;  %v3940_v2 = vmul.f32 %v8566_v1, %v3932_v36 }
 0x2cd   : > { %v5833_v62 = vpop.f32.mrb[8].mxu0  ;;  %v6369_v13 = vpack.i.bf16 %v3944_v32, %v3943_v35  ;;  %v8665_v35 = vadd.f32 %v8491_v18, %v8556_v30  ;;  %v6545_v32 = vld [vmem:[%s9432_s10 + $0xa0] sm:$0xff]  }
 0x2ce   : > { %v8577_v4 = vadd.f32 %v5833_v62, %v8484_v46  ;;  %6375 = vrot.lane.b32.xlu1 %v6374_v52, %s9521_s15  ;;  %v2726_v59 = vpop.f32.mrb[9].mxu0  ;;  %v6359_v56 = vpack.i.bf16 %v3940_v2, %v3939_v54 }
 0x2cf   : > { %v8581_v0 = vadd.f32 %v8484_v46, %v2726_v59  ;;  %v5834_v48 = vpop.f32.mrb[10].mxu0 }
 0x2d0   : > { %v8592_v29 = vadd.f32 %v5834_v48, %v8484_v46  ;;  %6360 = vrot.lane.b32.xlu0 %v6359_v56, %s9521_s15  ;;  %v2729_v12 = vpop.f32.mrb[11].mxu0  ;;  %v3949_v47 = vmul.f32 %v8586_v39, %v8577_v4 }
 0x2d1   : > { %v8604_v14 = vadd.f32 %v8484_v46, %v2729_v12  ;;  %v3947_v51 = vmul.f32 %v8597_v42, %v8581_v0  ;;  %v8668_v12 = vadd.f32 %v8491_v18, %v3873_v37 }
 0x2d2   : > { %v3950_v10 = vmul.f32 %v8589_v23, %v8592_v29 }
 0x2d3   : > { %v3948_v19 = vmul.f32 %v8601_v15, %v8604_v14 }
 0x2d4   : > { %6370 = vrot.lane.b32.xlu0 %v6369_v13, %s9521_s15  ;;  %v6384_v7 = vpack.i.bf16 %v3950_v10, %v3949_v47  ;;  %v8677_v10 = vsel %vm7764_vm5, %v8624_v57, %v8554_v31  ;;  %v8682_v13 = vsel %vm7764_vm5, %v8628_v40, %v3930_v34 }
 0x2d5   : > { %v5837_v49 = vpop.f32.mrb[12].mxu0  ;;  %v6379_v26 = vpack.i.bf16 %v3948_v19, %v3947_v51  ;;  %v6531_v19 = vld [vmem:[%s9432_s10 + $0x60] sm:$0xff]  }
 0x2d6   : > { %v8616_v27 = vadd.f32 %v5837_v49, %v8484_v46  ;;  %6385 = vrot.lane.b32.xlu1 %v6384_v7, %s9521_s15  ;;  %v2742_v43 = vpop.f32.mrb[13].mxu0  ;;  %v9492_v7 = vmov 0   ;;  %v6534_v49 = vld [vmem:[%s9432_s10] sm:$0xff]  }
 0x2d7   : > { %v8620_v5 = vadd.f32 %v8484_v46, %v2742_v43  ;;  %v5838_v22 = vpop.f32.mrb[14].mxu0  ;;  %4561 = vmatprep.subr.bf16.mxu0 %v9492_v7  ;;  %4733 = vmatprep.subr.bf16.mxu1 %v9492_v7  ;;  %v6536_v43 = vld [vmem:[%s9432_s10 + $0x8] sm:$0xff]  }
 0x2d8   : > { %v8631_v25 = vadd.f32 %v5838_v22, %v8484_v46  ;;  %6380 = vrot.lane.b32.xlu0 %v6379_v26, %s9521_s15  ;;  %v2745_v21 = vpop.f32.mrb[15].mxu0  ;;  %v3953_v20 = vmul.f32 %v8624_v57, %v8616_v27  ;;  %4562 = vmatpush1.bf16.msra.mxu0 %v6531_v19  ;;  %v6532_v26 = vld [vmem:[%s9432_s10 + $0x68] sm:$0xff]   ;;  %v6533_v22 = vld [vmem:[%s9432_s10 + $0x70] sm:$0xff]  }
 0x2d9   : > { %v8643_v3 = vadd.f32 %v8484_v46, %v2745_v21  ;;  %v3951_v41 = vmul.f32 %v8636_v33, %v8620_v5  ;;  %4563 = vmatprep.subr.bf16.mxu0 %v9492_v7  ;;  %4734 = vmatpush1.bf16.msra.mxu1 %v6534_v49  ;;  %v6538_v21 = vld [vmem:[%s9432_s10 + $0x10] sm:$0xff]  }
 0x2da   : > { %v3954_v50 = vmul.f32 %v8628_v40, %v8631_v25  ;;  %4735 = vmatprep.subr.bf16.mxu1 %v9492_v7 }
 0x2db   : > { %v3952_v24 = vmul.f32 %v8640_v44, %v8643_v3 }
 0x2dc   : > { %v6394_v36 = vpack.i.bf16 %v3954_v50, %v3953_v20  ;;  %4564 = vmatpush1.bf16.msra.mxu0 %v6532_v26  ;;  %v6535_v20 = vld [vmem:[%s9432_s10 + $0x78] sm:$0xff]  }
 0x2dd   : > { %v5841_v53 = vpop.f32.mrb[16].mxu0  ;;  %v6389_v52 = vpack.i.bf16 %v3952_v24, %v3951_v41  ;;  %4565 = vmatprep.subr.bf16.mxu0 %v9492_v7  ;;  %4736 = vmatpush1.bf16.msra.mxu1 %v6536_v43  ;;  %v6540_v50 = vld [vmem:[%s9432_s10 + $0x18] sm:$0xff]   ;;  %v6537_v41 = vld [vmem:[%s9432_s10 + $0x80] sm:$0xff]  }
 0x2de   : > { %v2817_v60 = vadd.f32 %v5841_v53, %v8484_v46  ;;  %6395 = vrot.lane.b32.xlu1 %v6394_v36, %s9521_s15  ;;  %v2758_v54 = vpop.f32.mrb[17].mxu0  ;;  %4737 = vmatprep.subr.bf16.mxu1 %v9492_v7  ;;  %v6542_v24 = vld [vmem:[%s9432_s10 + $0x20] sm:$0xff]   ;;  %v6539_v36 = vld [vmem:[%s9432_s10 + $0x88] sm:$0xff]  }
 0x2df   : > { %v8656_v2 = vadd.f32 %v8484_v46, %v2758_v54  ;;  %6390 = vrot.lane.b32.xlu0 %v6389_v52, %s9521_s15  ;;  %v5842_v62 = vpop.f32.mrb[18].mxu0  ;;  %v6544_v53 = vld [vmem:[%s9432_s10 + $0x28] sm:$0xff]   ;;  %v6541_v52 = vld [vmem:[%s9432_s10 + $0x90] sm:$0xff]   ;;  %v6543_v54 = vld [vmem:[%s9432_s10 + $0x98] sm:$0xff]  }
 0x2e0   : > { %v3933_v59 = vsel %vm7764_vm5, %v8616_v27, %v2817_v60  ;;  %v2818_v56 = vadd.f32 %v5842_v62, %v8484_v46  ;;  %v2761_v48 = vpop.f32.mrb[19].mxu0  ;;  %4566 = vmatpush1.bf16.msra.mxu0 %v6533_v22  ;;  %v6546_v60 = vld [vmem:[%s9432_s10 + $0x30] sm:$0xff]   ;;  %v6548_v62 = vld [vmem:[%s9432_s10 + $0x38] sm:$0xff]   ;;  %v6550_v22 = vld [vmem:[%s9432_s10 + $0x40] sm:$0xff]  }
 0x2e1   : > { %v8671_v47 = vadd.f32 %v8484_v46, %v2761_v48  ;;  %v3955_v18 = vmul.f32 %v8665_v35, %v8656_v2  ;;  %v8692_v37 = vmul.f32 %v8677_v10, %v3933_v59  ;;  %4567 = vmatprep.subr.bf16.mxu0 %v9492_v7  ;;  %4738 = vmatpush1.bf16.msra.mxu1 %v6538_v21  ;;  %v6547_v59 = vld [vmem:[%s9432_s10 + $0xa8] sm:$0xff]   ;;  %v6551_v21 = vld [vmem:[%s9432_s10 + $0xb8] sm:$0xff]  }
 0x2e2   : > { %v3934_v30 = vsel %vm7764_vm5, %v8631_v25, %v2818_v56  ;;  %4739 = vmatprep.subr.bf16.mxu1 %v9492_v7  ;;  %v6549_v56 = vld [vmem:[%s9432_s10 + $0xb0] sm:$0xff]  }
 0x2e3   : > { %9608 = vst [vmem:[#allocation14_spill] sm:$0xff] %v8671_v47  ;;  %v3956_v46 = vmul.f32 %v8668_v12, %v8671_v47  ;;  %v8695_v31 = vmul.f32 %v8682_v13, %v3934_v30 }
 0x2e4   : > { %4568 = vmatpush1.bf16.msra.mxu0 %v6535_v20 }
 0x2e5   : > { %v6399_v51 = vpack.i.bf16 %v3956_v46, %v3955_v18  ;;  %4569 = vmatprep.subr.bf16.mxu0 %v9492_v7  ;;  %4740 = vmatpush1.bf16.msra.mxu1 %v6540_v50 }
 0x2e6   : > { %4741 = vmatprep.subr.bf16.mxu1 %v9492_v7 }
 0x2e7   : > { %6400 = vrot.lane.b32.xlu0 %v6399_v51, %s9521_s15 }
 0x2e8   : > { %4570 = vmatpush1.bf16.msra.mxu0 %v6537_v41 }
 0x2e9   : > { %4571 = vmatprep.subr.bf16.mxu0 %v9492_v7  ;;  %4742 = vmatpush1.bf16.msra.mxu1 %v6542_v24 }
 0x2ea   : > { %4743 = vmatprep.subr.bf16.mxu1 %v9492_v7 }
 0x2ec   : > { %4572 = vmatpush1.bf16.msra.mxu0 %v6539_v36 }
 0x2ed   : > { %4573 = vmatprep.subr.bf16.mxu0 %v9492_v7  ;;  %4744 = vmatpush1.bf16.msra.mxu1 %v6544_v53  ;;  %v6552_v53 = vld [vmem:[%s9432_s10 + $0x48] sm:$0xff]  }
 0x2ee   : > { %4745 = vmatprep.subr.bf16.mxu1 %v9492_v7 }
 0x2f0   : > { %4574 = vmatpush1.bf16.msra.mxu0 %v6541_v52 }
 0x2f1   : > { %4575 = vmatprep.subr.bf16.mxu0 %v9492_v7  ;;  %4746 = vmatpush1.bf16.msra.mxu1 %v6546_v60 }
 0x2f2   : > { %4747 = vmatprep.subr.bf16.mxu1 %v9492_v7 }
 0x2f4   : > { %4576 = vmatpush1.bf16.msra.mxu0 %v6543_v54 }
 0x2f5   : > { %4577 = vmatprep.subr.bf16.mxu0 %v9492_v7  ;;  %4748 = vmatpush1.bf16.msra.mxu1 %v6548_v62 }
 0x2f6   : > { %4749 = vmatprep.subr.bf16.mxu1 %v9492_v7 }
 0x2f8   : > { %4578 = vmatpush1.bf16.msra.mxu0 %v6545_v32 }
 0x2f9   : > { %4579 = vmatprep.subr.bf16.mxu0 %v9492_v7  ;;  %4750 = vmatpush1.bf16.msra.mxu1 %v6550_v22 }
 0x2fa   : > { %4751 = vmatprep.subr.bf16.mxu1 %v9492_v7 }
 0x2fc   : > { %4580 = vmatpush1.bf16.msra.mxu0 %v6547_v59 }
 0x2fd   : > { %4581 = vmatprep.subr.bf16.mxu0 %v9492_v7  ;;  %4752 = vmatpush1.bf16.msra.mxu1 %v6552_v53 }
 0x2fe   : > { %4753 = vmatprep.subr.bf16.mxu1 %v9492_v7 }
 0x300   : > { %4582 = vmatpush1.bf16.msra.mxu0 %v6549_v56 }
 0x301   : > { %4583 = vmatprep.subr.bf16.mxu0 %v9492_v7 }
 0x304   : > { %4584 = vmatpush1.bf16.msra.mxu0 %v6551_v21 }
 0x305   : > { %4954 = vmatprep.subr.bf16.mxu0 %v9492_v7 }
 0x338   : > { %v6366_v48 = vpop.permute.xlu1 %6365 }
 0x339   : > { %v6368_v30 = vunpack.i.h.bf16 %v6366_v48  ;;  %v6367_v18 = vunpack.i.l.bf16 %v6366_v48 }
 0x33b   : > { %v4042_v46 = vsel %vm2141_vm6, %v8500_v6, %v6368_v30  ;;  %v4041_v51 = vsel %vm2141_vm6, %v8497_v63, %v6367_v18 }
 0x33c   : > { %v4103_v19 = vrot.slane %v4042_v46, 7  ;;  %v4160_v49 = vrot.slane %v4042_v46, 5  ;;  %v4070_v26 = vrot.slane %v4041_v51, 1  ;;  %v4102_v43 = vrot.slane %v4041_v51, 7 }
 0x33e   : > { %v4190_v20 = vsel %vm830_vm0, %v4103_v19, %v4160_v49  ;;  %v8790_v50 = vsel %vm830_vm0, %v4102_v43, %v4103_v19  ;;  %v8793_v6 = vsel %vm830_vm0, %v4070_v26, %v4102_v43 }
 0x33f   : > { %v4312_v63 = vrot.slane %v4190_v20, 2  ;;  %v4309_v41 = vrot.slane %v8793_v6, 2  ;;  %v4310_v24 = vrot.slane %v8790_v50, 2  ;;  %v4221_v36 = vrot.slane %v8793_v6, 1 }
 0x340   : > { %v6376_v52 = vpop.permute.xlu1 %6375  ;;  %v4222_v60 = vrot.slane %v8790_v50, 1  ;;  %v4224_v54 = vrot.slane %v4190_v20, 1 }
 0x341   : > { %v6378_v62 = vunpack.i.h.bf16 %v6376_v52  ;;  %v6377_v32 = vunpack.i.l.bf16 %v6376_v52  ;;  %v4311_v59 = vsel %vm2030_vm1, %v4309_v41, %v4310_v24  ;;  %v4313_v56 = vsel %vm2030_vm1, %v4310_v24, %v4312_v63 }
 0x342   : > { %v6361_v48 = vpop.permute.xlu0 %6360  ;;  %v8806_v30 = vpack.c.bf16 %v4313_v56, %v4311_v59  ;;  %v4223_v18 = vsel %vm1754_vm2, %v4221_v36, %v4222_v60  ;;  %v4225_v46 = vsel %vm1754_vm2, %v4222_v60, %v4224_v54 }
 0x343   : > { %v4046_v51 = vsel %vm2141_vm6, %v8536_v58, %v6378_v62  ;;  %v4045_v19 = vsel %vm2141_vm6, %v8533_v17, %v6377_v32  ;;  %v6363_v49 = vunpack.i.h.bf16 %v6361_v48  ;;  %v6362_v26 = vunpack.i.l.bf16 %v6361_v48  ;;  %v6553_v17 = vld [vmem:[%s9432_s10 + $0x50] sm:$0xff]  }
 0x344   : > { %v4109_v43 = vrot.slane %v4046_v51, 7  ;;  %v4162_v22 = vrot.slane %v4046_v51, 5  ;;  %v4108_v21 = vrot.slane %v4045_v19, 7  ;;  %5558 = vmatprep.mubr.msk.bf16.mxu0 %vm2162_vm7, %v8806_v30  ;;  %v4072_v20 = vrot.slane %v4045_v19, 1  ;;  %4754 = vmatpush1.bf16.msra.mxu1 %v6553_v17 }
 0x345   : > { %v4040_v63 = vsel %vm2141_vm6, %v8566_v1, %v6363_v49  ;;  %v4039_v58 = vsel %vm2141_vm6, %v8561_v45, %v6362_v26  ;;  %v6409_v41 = vpack.i.bf16 %v4225_v46, %v4223_v18  ;;  %4755 = vmatprep.subr.bf16.mxu1 %v9492_v7 }
 0x346   : > { %v4100_v24 = vrot.slane %v4040_v63, 7  ;;  %v4159_v36 = vrot.slane %v4040_v63, 5  ;;  %v4069_v53 = vrot.slane %v4039_v58, 1  ;;  %v4099_v52 = vrot.slane %v4039_v58, 7  ;;  %v6371_v60 = vpop.permute.xlu0 %6370 }
 0x347   : > { %6410 = vrot.lane.b32.xlu0 %v6409_v41, %s9524_s3  ;;  %v6373_v54 = vunpack.i.h.bf16 %v6371_v60  ;;  %v6372_v62 = vunpack.i.l.bf16 %v6371_v60  ;;  %v8827_v45 = vsel %vm830_vm0, %v4108_v21, %v4109_v43  ;;  %v8838_v18 = vsel %vm830_vm0, %v4072_v20, %v4108_v21 }
 0x348   : > { %v4189_v1 = vsel %vm830_vm0, %v4100_v24, %v4159_v36  ;;  %v6386_v32 = vpop.permute.xlu1 %6385  ;;  %v8831_v59 = vsel %vm830_vm0, %v4099_v52, %v4100_v24  ;;  %v8841_v51 = vsel %vm830_vm0, %v4069_v53, %v4099_v52  ;;  %v8846_v26 = vsel %vm830_vm0, %v4109_v43, %v4162_v22 }
 0x349   : > { %v8835_v56 = vsel %vm2141_vm6, %v8526_v16, %v6373_v54  ;;  %v6388_v48 = vunpack.i.h.bf16 %v6386_v32  ;;  %v4307_v46 = vrot.slane %v4189_v1, 2  ;;  %v4043_v19 = vsel %vm2141_vm6, %v8523_v61, %v6372_v62  ;;  %v6554_v61 = vld [vmem:[%s9432_s10 + $0x58] sm:$0xff]  }
 0x34a   : > { %v6381_v49 = vpop.permute.xlu0 %6380  ;;  %v6387_v16 = vunpack.i.l.bf16 %v6386_v32  ;;  %v4106_v21 = vrot.slane %v8835_v56, 7  ;;  %v4161_v20 = vrot.slane %v8835_v56, 5  ;;  %v4231_v17 = vrot.slane %v8838_v18, 1  ;;  %4756 = vmatpush1.bf16.msra.mxu1 %v6554_v61 }
 0x34b   : > { %v8850_v63 = vsel %vm2141_vm6, %v8589_v23, %v6388_v48  ;;  %v6383_v58 = vunpack.i.h.bf16 %v6381_v49  ;;  %v6382_v41 = vunpack.i.l.bf16 %v6381_v49  ;;  %v4232_v24 = vrot.slane %v8827_v45, 1  ;;  %5939 = vmatprep.subr.bf16.mxu1 %v9492_v7 }
 0x34c   : > { %v4071_v43 = vrot.slane %v4043_v19, 1  ;;  %v8861_v23 = vsel %vm2141_vm6, %v8586_v39, %v6387_v16  ;;  %v4234_v36 = vrot.slane %v8846_v26, 1  ;;  %v4105_v53 = vrot.slane %v4043_v19, 7 }
 0x34d   : > { %v4048_v22 = vsel %vm2141_vm6, %v8601_v15, %v6383_v58  ;;  %v4047_v54 = vsel %vm2141_vm6, %v8597_v42, %v6382_v41  ;;  %v4114_v32 = vrot.slane %v8861_v23, 7  ;;  %v4233_v39 = vsel %vm1754_vm2, %v4231_v17, %v4232_v24 }
 0x34e   : > { %v4235_v56 = vsel %vm1754_vm2, %v4232_v24, %v4234_v36  ;;  %v4112_v15 = vrot.slane %v4048_v22, 7  ;;  %v4304_v19 = vrot.slane %v8841_v51, 2  ;;  %v4305_v49 = vrot.slane %v8831_v59, 2 }
 0x34f   : > { %v6419_v48 = vpack.i.bf16 %v4235_v56, %v4233_v39  ;;  %v4216_v42 = vrot.slane %v8841_v51, 1  ;;  %v4217_v58 = vrot.slane %v8831_v59, 1  ;;  %v4219_v41 = vrot.slane %v4189_v1, 1 }
 0x350   : > { %v6396_v16 = vpop.permute.xlu1 %6395  ;;  %v4306_v17 = vsel %vm2030_vm1, %v4304_v19, %v4305_v49  ;;  %v4308_v24 = vsel %vm2030_vm1, %v4305_v49, %v4307_v46  ;;  %v4163_v1 = vrot.slane %v4048_v22, 5  ;;  %v4073_v52 = vrot.slane %v4047_v54, 1 }
 0x351   : > { %v6398_v61 = vunpack.i.h.bf16 %v6396_v16  ;;  %v6391_v34 = vpop.permute.xlu0 %6390  ;;  %6420 = vrot.lane.b32.xlu0 %v6419_v48, %s9524_s3  ;;  %v6397_v36 = vunpack.i.l.bf16 %v6396_v16  ;;  %v4377_v56 = vpack.c.bf16 %v4308_v24, %v4306_v17  ;;  %v4218_v7 = vsel %vm1754_vm2, %v4216_v42, %v4217_v58 }
 0x352   : > { %v6393_v39 = vunpack.i.h.bf16 %v6391_v34  ;;  %v4220_v60 = vsel %vm1754_vm2, %v4217_v58, %v4219_v41  ;;  %v4111_v19 = vrot.slane %v4047_v54, 7  ;;  %v6392_v16 = vunpack.i.l.bf16 %v6391_v34 }
 0x353   : > { %v8886_v62 = vsel %vm2141_vm6, %v8628_v40, %v6398_v61  ;;  %v6404_v47 = vpack.i.bf16 %v4220_v60, %v4218_v7  ;;  %v8890_v48 = vsel %vm2141_vm6, %v8624_v57, %v6397_v36  ;;  %5578 = vmatprep.mubr.msk.bf16.mxu1 %vm2162_vm7, %v4377_v56  ;;  %v8900_v7 = vsel %vm830_vm0, %v4105_v53, %v4106_v21 }
 0x354   : > { %v4121_v46 = vrot.slane %v8886_v62, 7  ;;  %v4052_v49 = vsel %vm2141_vm6, %v8640_v44, %v6393_v39  ;;  %v4166_v40 = vrot.slane %v8886_v62, 5  ;;  %v4120_v22 = vrot.slane %v8890_v48, 7 }
 0x355   : > { %6405 = vrot.lane.b32.xlu1 %v6404_v47, %s9524_s3  ;;  %v8903_v57 = vsel %vm830_vm0, %v4071_v43, %v4105_v53  ;;  %v4051_v60 = vsel %vm2141_vm6, %v8636_v33, %v6392_v16  ;;  %v8908_v54 = vsel %vm830_vm0, %v4106_v21, %v4161_v20  ;;  %v4227_v47 = vrot.slane %v8900_v7, 1 }
 0x356   : > { %v4226_v44 = vrot.slane %v8903_v57, 1  ;;  %v4118_v34 = vrot.slane %v4052_v49, 7  ;;  %v4165_v62 = vrot.slane %v4052_v49, 5  ;;  %v4075_v42 = vrot.slane %v4051_v60, 1 }
 0x357   : > { %v4229_v58 = vrot.slane %v8908_v54, 1  ;;  %v8915_v43 = vsel %vm830_vm0, %v4111_v19, %v4112_v15  ;;  %v8918_v53 = vsel %vm830_vm0, %v4073_v52, %v4111_v19  ;;  %v8921_v33 = vsel %vm830_vm0, %v4112_v15, %v4163_v1 }
 0x358   : > { %v4228_v41 = vsel %vm1754_vm2, %v4226_v44, %v4227_v47  ;;  %v4236_v61 = vrot.slane %v8918_v53, 1  ;;  %v4237_v17 = vrot.slane %v8915_v43, 1  ;;  %v4239_v24 = vrot.slane %v8921_v33, 1 }
 0x359   : > { %v6401_v21 = vpop.permute.xlu0 %6400  ;;  %v4230_v20 = vsel %vm1754_vm2, %v4227_v47, %v4229_v58  ;;  %v4117_v36 = vrot.slane %v4051_v60, 7  ;;  %v9609_v15 = vrot.slane %v8850_v63, 7  ;;  %v9610_v19 = vrot.slane %v8861_v23, 1 }
 0x35a   : > { %v6414_v39 = vpack.i.bf16 %v4230_v20, %v4228_v41  ;;  %v6403_v56 = vunpack.i.h.bf16 %v6401_v21  ;;  %v6402_v49 = vunpack.i.l.bf16 %v6401_v21  ;;  %v4238_v16 = vsel %vm1754_vm2, %v4236_v61, %v4237_v17 }
 0x35b   : > { %v4240_v52 = vsel %vm1754_vm2, %v4237_v17, %v4239_v24  ;;  %v8932_v1 = vsel %vm830_vm0, %v4114_v32, %v9609_v15  ;;  %v8937_v44 = vsel %vm830_vm0, %v9610_v19, %v4114_v32  ;;  %v9611_v41 = vrot.slane %v8850_v63, 5 }
 0x35c   : > { %6415 = vrot.lane.b32.xlu1 %v6414_v39, %s9524_s3  ;;  %v6429_v60 = vpack.i.bf16 %v4240_v52, %v4238_v16  ;;  %v4056_v47 = vsel %vm2141_vm6, %v8668_v12, %v6403_v56  ;;  %v4055_v58 = vsel %vm2141_vm6, %v8665_v35, %v6402_v49  ;;  %v9612_v21 = vmov %v9609_v15 }
 0x35d   : > { %v8949_v20 = vsel %vm830_vm0, %v9612_v21, %v9611_v41  ;;  %v4076_v23 = vrot.slane %v8890_v48, 1  ;;  %v4124_v32 = vrot.slane %v4056_v47, 7  ;;  %v4167_v61 = vrot.slane %v4056_v47, 5 }
 0x35e   : > { %v4077_v17 = vrot.slane %v4055_v58, 1  ;;  %6430 = vrot.lane.b32.xlu0 %v6429_v60, %s9524_s3  ;;  %v4123_v24 = vrot.slane %v4055_v58, 7  ;;  %v4241_v12 = vrot.slane %v8937_v44, 1  ;;  %v4242_v39 = vrot.slane %v8932_v1, 1 }
 0x35f   : > { %v4244_v35 = vrot.slane %v8949_v20, 1  ;;  %v8957_v56 = vsel %vm830_vm0, %v4117_v36, %v4118_v34  ;;  %v8960_v63 = vsel %vm830_vm0, %v4075_v42, %v4117_v36  ;;  %v8963_v48 = vsel %vm830_vm0, %v4118_v34, %v4165_v62 }
 0x360   : > { %v8966_v49 = vsel %vm830_vm0, %v4120_v22, %v4121_v46  ;;  %v9613_v16 = vpack.i.bf16 %v8695_v31, %v8692_v37  ;;  %v4243_v52 = vsel %vm1754_vm2, %v4241_v12, %v4242_v39  ;;  %v4246_v19 = vrot.slane %v8960_v63, 1 }
 0x361   : > { %v4245_v15 = vsel %vm1754_vm2, %v4242_v39, %v4244_v35  ;;  %v4247_v42 = vrot.slane %v8957_v56, 1  ;;  %v4249_v34 = vrot.slane %v8963_v48, 1  ;;  %v8978_v62 = vsel %vm830_vm0, %v4076_v23, %v4120_v22 }
 0x362   : > { %6425 = vrot.lane.b32.xlu1 %v9613_v16, %s9521_s15  ;;  %v6434_v36 = vpack.i.bf16 %v4245_v15, %v4243_v52  ;;  %v8982_v47 = vsel %vm830_vm0, %v4121_v46, %v4166_v40  ;;  %v4251_v37 = vrot.slane %v8978_v62, 1  ;;  %v4252_v31 = vrot.slane %v8966_v49, 1  ;;  %s5650_s15 = sshll.u32 %s6646_s24, 4 }
 0x363   : > { %v4248_v60 = vsel %vm1754_vm2, %v4246_v19, %v4247_v42  ;;  %v4250_v58 = vsel %vm1754_vm2, %v4247_v42, %v4249_v34  ;;  %v4254_v41 = vrot.slane %v8982_v47, 1  ;;  %v8989_v21 = vsel %vm830_vm0, %v4123_v24, %v4124_v32  ;;  %s5135_s4 = sadd.s32 %s5650_s15, %s5634_s14 }
 0x364   : > { %v6439_v22 = vpack.i.bf16 %v4250_v58, %v4248_v60  ;;  %v4253_v23 = vsel %vm1754_vm2, %v4251_v37, %v4252_v31  ;;  %v8994_v12 = vsel %vm830_vm0, %v4077_v17, %v4123_v24  ;;  %v8997_v46 = vsel %vm830_vm0, %v4124_v32, %v4167_v61  ;;  %s5635_s0 = sshll.u32 %s5135_s4, 7 }
 0x365   : > { %v4255_v40 = vsel %vm1754_vm2, %v4252_v31, %v4254_v41  ;;  %v4418_v39 = vrot.slane %v8994_v12, 1  ;;  %v4419_v35 = vrot.slane %v8989_v21, 1  ;;  %v4421_v16 = vrot.slane %v8997_v46, 1  ;;  %s9359_s17 = scalar_lea.hbm %s9434_s12, %s5635_s0 }
 0x366   : > { %6435 = vrot.lane.b32.xlu1 %v6434_v36, %s9524_s3  ;;  %6440 = vrot.lane.b32.xlu0 %v6439_v22, %s9524_s3  ;;  %v6444_v52 = vpack.i.bf16 %v4255_v40, %v4253_v23  ;;  %v4317_v32 = vrot.slane %v8908_v54, 2  ;;  %v4314_v61 = vrot.slane %v8903_v57, 2  ;;  %v4315_v24 = vrot.slane %v8900_v7, 2  ;;  %v6555_v54 = vld [vmem:[%s9432_s10 + $0xc0] sm:$0xff]   ;;  %v6556_v23 = vld [vmem:[%s9432_s10 + $0xc8] sm:$0xff]  }
 0x367   : > { %v4420_v15 = vsel %vm1754_vm2, %v4418_v39, %v4419_v35  ;;  %v4422_v19 = vsel %vm1754_vm2, %v4419_v35, %v4421_v16  ;;  %v9035_v39 = vld [vmem:[%s9432_s10 + $0xd8] sm:$0xff]  }
 0x368   : > { %v6449_v17 = vpack.i.bf16 %v4422_v19, %v4420_v15  ;;  %v4316_v60 = vsel %vm2030_vm1, %v4314_v61, %v4315_v24  ;;  %v4318_v37 = vsel %vm2030_vm1, %v4315_v24, %v4317_v32  ;;  %v4322_v19 = vrot.slane %v8846_v26, 2  ;;  %v9049_v24 = vld [vmem:[%s9432_s10 + $0xe0] sm:$0xff]  }
 0x369   : > { %v9020_v22 = vpack.c.bf16 %v4318_v37, %v4316_v60  ;;  %v4319_v32 = vrot.slane %v8838_v18, 2  ;;  %v4320_v61 = vrot.slane %v8827_v45, 2 }
 0x36a   : > { %6445 = vrot.lane.b32.xlu1 %v6444_v52, %s9524_s3  ;;  %6450 = vrot.lane.b32.xlu0 %v6449_v17, %s9524_s3 }
 0x3b9   : > { %v6411_v42 = vpop.permute.xlu0 %6410 }
 0x3ba   : > { %v6413_v36 = vunpack.i.h.bf16 %v6411_v42  ;;  %v6412_v34 = vunpack.i.l.bf16 %v6411_v42  ;;  %v4321_v42 = vsel %vm2030_vm1, %v4319_v32, %v4320_v61 }
 0x3bc   : > { %v4363_v31 = vsel %vm2162_vm7, %v8790_v50, %v6413_v36  ;;  %v4362_v58 = vsel %vm2162_vm7, %v8793_v6, %v6412_v34  ;;  %v9614_v50 = vmov 0   ;;  %v6557_v6 = vld [vmem:[%s9432_s10 + $0xd0] sm:$0xff]   ;;  %v4323_v36 = vsel %vm2030_vm1, %v4320_v61, %v4322_v19  ;;  %v9061_v34 = vld [vmem:[%s9432_s10 + $0xe8] sm:$0xff]  }
 0x3bd   : > { %v4378_v41 = vpack.c.bf16 %v4363_v31, %v4362_v58 }
 0x3bf   : > { %4594 = vmatmul.mubr.bf16.vlgmr.msra.gmra.mrb[20].mxu0 %v4378_v41 }
 0x3c0   : > { %5559 = vmatprep.mubr.msk.bf16.mxu0 %vm2162_vm7, %v9020_v22  ;;  %4955 = vmatpush1.bf16.msra.mxu0 %v6555_v54 }
 0x3c1   : > { %4956 = vmatprep.subr.bf16.mxu0 %v9614_v50 }
 0x3c3   : > { %v6421_v60 = vpop.permute.xlu0 %6420 }
 0x3c4   : > { %4957 = vmatpush1.bf16.msra.mxu0 %v6556_v23 }
 0x3c5   : > { %4958 = vmatprep.subr.bf16.mxu0 %v9614_v50 }
 0x3c7   : > { %v6406_v40 = vpop.permute.xlu1 %6405 }
 0x3c8   : > { %4959 = vmatpush1.bf16.msra.mxu0 %v6557_v6  ;;  %v6408_v35 = vunpack.i.h.bf16 %v6406_v40  ;;  %v6407_v16 = vunpack.i.l.bf16 %v6406_v40  ;;  %v4324_v40 = vrot.slane %v8918_v53, 2 }
 0x3c9   : > { %4960 = vmatprep.subr.bf16.mxu0 %v9614_v50 }
 0x3ca   : > { %v4361_v52 = vsel %vm2162_vm7, %v8831_v59, %v6408_v35  ;;  %v4360_v15 = vsel %vm2162_vm7, %v8841_v51, %v6407_v16  ;;  %v4325_v35 = vrot.slane %v8915_v43, 2  ;;  %v6423_v16 = vunpack.i.h.bf16 %v6421_v60 }
 0x3cb   : > { %v4376_v17 = vpack.c.bf16 %v4361_v52, %v4360_v15  ;;  %v6422_v52 = vunpack.i.l.bf16 %v6421_v60 }
 0x3cc   : > { %4961 = vmatpush1.bf16.msra.mxu0 %v9035_v39 }
 0x3cd   : > { %4962 = vmatprep.subr.bf16.mxu0 %v9614_v50  ;;  %4766 = vmatmul.mubr.bf16.vlgmr.msra.gmra.mrb[20].mxu1 %v4376_v17 }
 0x3ce   : > { %v6416_v59 = vpop.permute.xlu1 %6415  ;;  %5579 = vmatprep.mubr.msk.bf16.mxu1 %vm2162_vm7, %v8806_v30  ;;  %5951 = vmatpush1.bf16.msra.mxu1 %v6555_v54  ;;  %v9070_v54 = vpack.c.bf16 %v4323_v36, %v4321_v42 }
 0x3cf   : > { %v6418_v51 = vunpack.i.h.bf16 %v6416_v59  ;;  %v6417_v26 = vunpack.i.l.bf16 %v6416_v59  ;;  %5940 = vmatprep.subr.bf16.mxu1 %v9614_v50 }
 0x3d0   : > { %4963 = vmatpush1.bf16.msra.mxu0 %v9049_v24 }
 0x3d1   : > { %4964 = vmatprep.subr.bf16.mxu0 %v9614_v50  ;;  %v4364_v30 = vsel %vm2162_vm7, %v8903_v57, %v6417_v26  ;;  %v4365_v37 = vsel %vm2162_vm7, %v8900_v7, %v6418_v51  ;;  %v9079_v7 = vld [vmem:[%s9432_s10 + $0xf0] sm:$0xff]   ;;  %v4327_v57 = vrot.slane %v8921_v33, 2  ;;  %v4366_v33 = vsel %vm2162_vm7, %v8838_v18, %v6422_v52  ;;  %v6431_v26 = vpop.permute.xlu0 %6430 }
 0x3d2   : > { %v9068_v58 = vpack.c.bf16 %v4365_v37, %v4364_v30  ;;  %5952 = vmatpush1.bf16.msra.mxu1 %v6556_v23  ;;  %v4332_v52 = vrot.slane %v8949_v20, 2 }
 0x3d3   : > { %5941 = vmatprep.subr.bf16.mxu1 %v9614_v50 }
 0x3d4   : > { %v6426_v31 = vpop.permute.xlu1 %6425  ;;  %4965 = vmatpush1.bf16.msra.mxu0 %v9061_v34 }
 0x3d5   : > { %v6428_v15 = vunpack.i.h.bf16 %v6426_v31  ;;  %v6427_v19 = vunpack.i.l.bf16 %v6426_v31  ;;  %4602 = vmatmul.mubr.bf16.gmra.mrb[24].mxu0 %v9068_v58  ;;  %4966 = vmatprep.subr.bf16.mxu0 %v9614_v50  ;;  %v6433_v31 = vunpack.i.h.bf16 %v6431_v26 }
 0x3d6   : > { %5560 = vmatprep.mubr.msk.bf16.mxu0 %vm2162_vm7, %v9070_v54  ;;  %4774 = vmatmul.mubr.bf16.gmra.mrb[24].mxu1 %v4378_v41  ;;  %v9102_v41 = vld [vmem:[%s9432_s10 + $0xf8] sm:$0xff]  }
 0x3d7   : > { %v4058_v23 = vsel %vm2141_vm6, %v8682_v13, %v6428_v15  ;;  %v4057_v17 = vsel %vm2141_vm6, %v8677_v10, %v6427_v19  ;;  %5580 = vmatprep.mubr.msk.bf16.mxu1 %vm2162_vm7, %v9020_v22  ;;  %5953 = vmatpush1.bf16.msra.mxu1 %v6557_v6  ;;  %v4367_v13 = vsel %vm2162_vm7, %v8827_v45, %v6423_v16  ;;  %v4329_v19 = vrot.slane %v8937_v44, 2 }
 0x3d8   : > { %v4127_v32 = vrot.slane %v4058_v23, 7  ;;  %v4168_v61 = vrot.slane %v4058_v23, 5  ;;  %v4078_v59 = vrot.slane %v4057_v17, 1  ;;  %v4126_v51 = vrot.slane %v4057_v17, 7  ;;  %5942 = vmatprep.subr.bf16.mxu1 %v9614_v50  ;;  %4967 = vmatpush1.bf16.msra.mxu0 %v9079_v7 }
 0x3d9   : > { %v4326_v10 = vsel %vm2030_vm1, %v4324_v40, %v4325_v35  ;;  %v4328_v6 = vsel %vm2030_vm1, %v4325_v35, %v4327_v57  ;;  %4968 = vmatprep.subr.bf16.mxu0 %v9614_v50  ;;  %v9117_v30 = vpack.c.bf16 %v4367_v13, %v4366_v33  ;;  %v6432_v40 = vunpack.i.l.bf16 %v6431_v26  ;;  %v6563_v57 = vld [vmem:[%s9432_s10 + $0x100] sm:$0xff]  }
 0x3da   : > { %v9106_v42 = vsel %vm830_vm0, %v4126_v51, %v4127_v32  ;;  %v9109_v18 = vsel %vm830_vm0, %v4078_v59, %v4126_v51  ;;  %v9112_v45 = vsel %vm830_vm0, %v4127_v32, %v4168_v61  ;;  %v9121_v35 = vpack.c.bf16 %v4328_v6, %v4326_v10  ;;  %v6436_v32 = vpop.permute.xlu1 %6435  ;;  %v6565_v6 = vld [vmem:[%s9432_s10 + $0x110] sm:$0xff]  }
 0x3db   : > { %v4832_v36 = vrot.slane %v9109_v18, 1  ;;  %v4833_v60 = vrot.slane %v9106_v42, 1  ;;  %v4835_v37 = vrot.slane %v9112_v45, 1  ;;  %5954 = vmatpush1.bf16.msra.mxu1 %v9035_v39  ;;  %v4330_v39 = vrot.slane %v8932_v1, 2 }
 0x3dc   : > { %5943 = vmatprep.subr.bf16.mxu1 %v9614_v50  ;;  %4969 = vmatpush1.bf16.msra.mxu0 %v9102_v41  ;;  %v4368_v20 = vsel %vm2162_vm7, %v8918_v53, %v6432_v40  ;;  %v4369_v17 = vsel %vm2162_vm7, %v8915_v43, %v6433_v31  ;;  %v6437_v33 = vunpack.i.l.bf16 %v6436_v32  ;;  %v6564_v43 = vld [vmem:[%s9432_s10 + $0x108] sm:$0xff]   ;;  %v4337_v13 = vrot.slane %v8963_v48, 2  ;;  %v6566_v40 = vld [vmem:[%s9432_s10 + $0x118] sm:$0xff]  }
 0x3dd   : > { %v4834_v16 = vsel %vm1754_vm2, %v4832_v36, %v4833_v60  ;;  %4610 = vmatmul.mubr.bf16.gmra.mrb[28].mxu0 %v9117_v30  ;;  %v4836_v15 = vsel %vm1754_vm2, %v4833_v60, %v4835_v37  ;;  %4970 = vmatprep.subr.bf16.mxu0 %v9614_v50  ;;  %v4331_v61 = vsel %vm2030_vm1, %v4329_v19, %v4330_v39  ;;  %v4334_v10 = vrot.slane %v8960_v63, 2  ;;  %v6441_v36 = vpop.permute.xlu0 %6440 }
 0x3de   : > { %5561 = vmatprep.mubr.msk.bf16.mxu0 %vm2162_vm7, %v9121_v35  ;;  %v6454_v23 = vpack.i.bf16 %v4836_v15, %v4834_v16  ;;  %4782 = vmatmul.mubr.bf16.gmra.mrb[28].mxu1 %v9068_v58  ;;  %v4333_v59 = vsel %vm2030_vm1, %v4330_v39, %v4332_v52  ;;  %v9150_v51 = vpack.c.bf16 %v4369_v17, %v4368_v20  ;;  %v4335_v26 = vrot.slane %v8957_v56, 2  ;;  %v6446_v19 = vpop.permute.xlu1 %6445 }
 0x3df   : > { %5581 = vmatprep.mubr.msk.bf16.mxu1 %vm2162_vm7, %v9070_v54  ;;  %5955 = vmatpush1.bf16.msra.mxu1 %v9049_v24  ;;  %v6438_v24 = vunpack.i.h.bf16 %v6436_v32  ;;  %v9153_v53 = vpack.c.bf16 %v4333_v59, %v4331_v61  ;;  %v4342_v16 = vrot.slane %v8982_v47, 2  ;;  %v4339_v52 = vrot.slane %v8978_v62, 2 }
 0x3e0   : > { %6455 = vrot.lane.b32.xlu1 %v6454_v23, %s9524_s3  ;;  %5944 = vmatprep.subr.bf16.mxu1 %v9614_v50  ;;  %v4336_v60 = vsel %vm2030_vm1, %v4334_v10, %v4335_v26  ;;  %v4338_v37 = vsel %vm2030_vm1, %v4335_v26, %v4337_v13  ;;  %v4340_v15 = vrot.slane %v8966_v49, 2  ;;  %v6448_v17 = vunpack.i.h.bf16 %v6446_v19  ;;  %s5138_s3 = sshll.u32 %s9288_s13, 4  ;;  %s9361_s3 = int_to_ptr.vmem [resolvable:$true] %s5138_s3 }
 0x3e1   : > { %4971 = vmatpush1.bf16.msra.mxu0 %v6563_v57  ;;  %v4371_v48 = vsel %vm2162_vm7, %v8932_v1, %v6438_v24  ;;  %v6442_v1 = vunpack.i.l.bf16 %v6441_v36  ;;  %v4389_v31 = vpack.c.bf16 %v4338_v37, %v4336_v60  ;;  %v6447_v32 = vunpack.i.l.bf16 %v6446_v19  ;;  %s6568_s29 = scalar_lea.vmem %s9361_s3, 2048  ;;  %p6575_p11 = scmp.lt.s32.totalorder %s9361_s3, %s6573_s20 }
 0x3e2   : > { %4972 = vmatprep.subr.bf16.mxu0 %v9614_v50  ;;  %v4341_v39 = vsel %vm2030_vm1, %v4339_v52, %v4340_v15  ;;  %v4343_v23 = vsel %vm2030_vm1, %v4340_v15, %v4342_v16  ;;  %v4375_v24 = vsel %vm2162_vm7, %v8966_v49, %v6448_v17  ;;  %p6569_p7 = scmp.ne.s32.totalorder %s9361_s3, %s6568_s29  ;;  %p6576_p12 = scmp.lt.s32.totalorder %s6574_s26, %s6568_s29 }
 0x3e3   : > { %5956 = vmatpush1.bf16.msra.mxu1 %v9061_v34  ;;  %v4370_v34 = vsel %vm2162_vm7, %v8937_v44, %v6437_v33  ;;  %v6443_v44 = vunpack.i.h.bf16 %v6441_v36  ;;  %v4391_v61 = vpack.c.bf16 %v4343_v23, %v4341_v39  ;;  %v4374_v59 = vsel %vm2162_vm7, %v8978_v62, %v6447_v32 }
 0x3e4   : > { %5945 = vmatprep.subr.bf16.mxu1 %v9614_v50  ;;  %v4390_v13 = vpack.c.bf16 %v4375_v24, %v4374_v59  ;;  %p6570_p9 = pnand %p6569_p7, %p6786_p3  ;;  %p6577_p13 = por %p6576_p12, %p6575_p11 }
 0x3e5   : > { %4618 = vmatmul.mubr.bf16.gmra.mrb[32].mxu0 %v9150_v51  ;;  %v4373_v47 = vsel %vm2162_vm7, %v8957_v56, %v6443_v44  ;;  %v4429_v56 = vrot.slane %v8994_v12, 2 }
 0x3e6   : > { %5562 = vmatprep.mubr.msk.bf16.mxu0 %vm2162_vm7, %v9153_v53  ;;  %4790 = vmatmul.mubr.bf16.gmra.mrb[32].mxu1 %v9117_v30  ;;  %p6571_p10 = pneg %p6570_p9 }
 0x3e7   : > { %5582 = vmatprep.mubr.msk.bf16.mxu1 %vm2162_vm7, %v9121_v35  ;;  %5957 = vmatpush1.bf16.msra.mxu1 %v9079_v7  ;;  %v9180_v7 = vpack.c.bf16 %v4371_v48, %v4370_v34 }
 0x3e8   : > { %5946 = vmatprep.subr.bf16.mxu1 %v9614_v50  ;;  %4973 = vmatpush1.bf16.msra.mxu0 %v6564_v43  ;;  %p6578_p0 = pnand %p6577_p13, %p6571_p10 }
 0x3e9   : > { %4974 = vmatprep.subr.bf16.mxu0 %v9614_v50 }
 0x3eb   : > { %5958 = vmatpush1.bf16.msra.mxu1 %v9102_v41  ;;  %v4372_v41 = vsel %vm2162_vm7, %v8960_v63, %v6442_v1  ;;  %v4432_v63 = vrot.slane %v8997_v46, 2  ;;  %v6451_v46 = vpop.permute.xlu0 %6450 }
 0x3ec   : > { %5947 = vmatprep.subr.bf16.mxu1 %v9614_v50  ;;  %4975 = vmatpush1.bf16.msra.mxu0 %v6565_v6  ;;  %v4388_v20 = vpack.c.bf16 %v4373_v47, %v4372_v41  ;;  %v6453_v10 = vunpack.i.h.bf16 %v6451_v46  ;;  %v6452_v26 = vunpack.i.l.bf16 %v6451_v46 }
 0x3ed   : > { %4626 = vmatmul.mubr.bf16.gmra.mrb[36].mxu0 %v9180_v7  ;;  %4976 = vmatprep.subr.bf16.mxu0 %v9614_v50 }
 0x3ee   : > { %5563 = vmatprep.mubr.msk.bf16.mxu0 %vm2162_vm7, %v4389_v31  ;;  %4798 = vmatmul.mubr.bf16.gmra.mrb[36].mxu1 %v9150_v51  ;;  %v4436_v49 = vsel %vm2162_vm7, %v8994_v12, %v6452_v26  ;;  %v4437_v62 = vsel %vm2162_vm7, %v8989_v21, %v6453_v10  ;;  %v4843_v12 = vrot.slane %v9109_v18, 2 }
 0x3ef   : > { %5583 = vmatprep.mubr.msk.bf16.mxu1 %vm2162_vm7, %v9153_v53  ;;  %5959 = vmatpush1.bf16.msra.mxu1 %v6563_v57  ;;  %v4430_v57 = vrot.slane %v8989_v21, 2  ;;  %v4846_v21 = vrot.slane %v9112_v45, 2 }
 0x3f0   : > { %5948 = vmatprep.subr.bf16.mxu1 %v9614_v50  ;;  %4977 = vmatpush1.bf16.msra.mxu0 %v6566_v40 }
 0x3f1   : > { %v4431_v33 = vsel %vm2030_vm1, %v4429_v56, %v4430_v57 }
 0x3f3   : > { %5960 = vmatpush1.bf16.msra.mxu1 %v6564_v43  ;;  %v4433_v43 = vsel %vm2030_vm1, %v4430_v57, %v4432_v63 }
 0x3f4   : > { %5949 = vmatprep.subr.bf16.mxu1 %v9614_v50  ;;  %v4439_v34 = vpack.c.bf16 %v4433_v43, %v4431_v33 }
 0x3f5   : > { %4634 = vmatmul.mubr.bf16.gmra.mrb[40].mxu0 %v4388_v20 }
 0x3f6   : > { %5564 = vmatprep.mubr.msk.bf16.mxu0 %vm2162_vm7, %v4391_v61  ;;  %4806 = vmatmul.mubr.bf16.gmra.mrb[40].mxu1 %v9180_v7 }
 0x3f7   : > { %5584 = vmatprep.mubr.msk.bf16.mxu1 %vm2162_vm7, %v4389_v31  ;;  %5961 = vmatpush1.bf16.msra.mxu1 %v6565_v6 }
 0x3f8   : > { %5950 = vmatprep.subr.bf16.mxu1 %v9614_v50  ;;  %v4438_v50 = vpack.c.bf16 %v4437_v62, %v4436_v49 }
 0x3fb   : > { %5962 = vmatpush1.bf16.msra.mxu1 %v6566_v40 }
 0x3fd   : > { %4642 = vmatmul.mubr.bf16.gmra.mrb[44].mxu0 %v4390_v13 }
 0x3fe   : > { %5565 = vmatprep.mubr.msk.bf16.mxu0 %vm2162_vm7, %v4439_v34  ;;  %4814 = vmatmul.mubr.bf16.gmra.mrb[44].mxu1 %v4388_v20 }
 0x3ff   : > { %5585 = vmatprep.mubr.msk.bf16.mxu1 %vm2162_vm7, %v4391_v61 }
 0x405   : > { %4650 = vmatmul.mubr.bf16.gmra.mrb[48].mxu0 %v4438_v50 }
 0x406   : > { %5622 = vmatprep.mubr.msk.bf16.mxu0 %vm2162_vm7, %v9020_v22  ;;  %4822 = vmatmul.mubr.bf16.gmra.mrb[48].mxu1 %v4390_v13  ;;  %v4844_v22 = vrot.slane %v9106_v42, 2 }
 0x407   : > { %5626 = vmatprep.mubr.msk.bf16.mxu1 %vm2162_vm7, %v4389_v31 }
 0x40d   : > { %4987 = vmatmul.mubr.bf16.vlgmr.msra.gmra.mrb[52].mxu0 %v9068_v58  ;;  %v4845_v58 = vsel %vm2030_vm1, %v4843_v12, %v4844_v22 }
 0x40e   : > { %5623 = vmatprep.mubr.msk.bf16.mxu0 %vm2162_vm7, %v9070_v54  ;;  %5019 = vmatmul.mubr.bf16.vlgmr.msra.gmra.mrb[52].mxu1 %v4388_v20  ;;  %v4847_v54 = vsel %vm2030_vm1, %v4844_v22, %v4846_v21 }
 0x40f   : > { %5627 = vmatprep.mubr.msk.bf16.mxu1 %vm2162_vm7, %v4391_v61  ;;  %v4853_v48 = vpack.c.bf16 %v4847_v54, %v4845_v58 }
 0x415   : > { %4995 = vmatmul.mubr.bf16.gmra.mrb[56].mxu0 %v9117_v30 }
 0x416   : > { %5624 = vmatprep.mubr.msk.bf16.mxu0 %vm2162_vm7, %v9121_v35  ;;  %5027 = vmatmul.mubr.bf16.gmra.mrb[56].mxu1 %v4390_v13 }
 0x417   : > { %5628 = vmatprep.mubr.msk.bf16.mxu1 %vm2162_vm7, %v4439_v34 }
 0x41d   : > { %5003 = vmatmul.mubr.bf16.gmra.mrb[60].mxu0 %v9150_v51 }
 0x41e   : > { %5625 = vmatprep.mubr.msk.bf16.mxu0 %vm2162_vm7, %v9153_v53  ;;  %5035 = vmatmul.mubr.bf16.gmra.mrb[60].mxu1 %v4438_v50 }
 0x41f   : > { %5629 = vmatprep.mubr.msk.bf16.mxu1 %vm2162_vm7, %v4853_v48 }
 0x425   : > { %5011 = vmatmul.mubr.bf16.gmra.mrb[64].mxu0 %v9180_v7 }
 0x452   : > { %v6456_v45 = vpop.permute.xlu1 %6455 }
 0x453   : > { %v6458_v30 = vunpack.i.h.bf16 %v6456_v45  ;;  %v6457_v35 = vunpack.i.l.bf16 %v6456_v45 }
 0x455   : > { %v4850_v6 = vsel %vm2162_vm7, %v9109_v18, %v6457_v35  ;;  %v4851_v36 = vsel %vm2162_vm7, %v9106_v42, %v6458_v30 }
 0x456   : > { %v4852_v60 = vpack.c.bf16 %v4851_v36, %v4850_v6 }
 0x458   : > { %5043 = vmatmul.mubr.bf16.gmra.mrb[64].mxu1 %v4852_v60 }
 0x492   : > { %v4595_v51 = vpop.f32.mrb[20].mxu0 }
 0x493   : > { %v4597_v37 = vpop.f32.mrb[21].mxu0 }
 0x494   : > { %v4598_v44 = vpop.f32.mrb[22].mxu0 }
 0x495   : > { %v4600_v53 = vpop.f32.mrb[23].mxu0 }
 0x4a0   : > { %v4767_v1 = vpop.f32.mrb[20].mxu1 }
 0x4a1   : > { %v9248_v31 = vadd.f32 %v4767_v1, %v4595_v51  ;;  %v4769_v40 = vpop.f32.mrb[21].mxu1 }
 0x4a2   : > { %v4770_v7 = vpop.f32.mrb[22].mxu1 }
 0x4a3   : > { %v9250_v16 = vadd.f32 %v4770_v7, %v4598_v44  ;;  %v4772_v52 = vpop.f32.mrb[23].mxu1 }
 0x4a8   : > { %v4603_v15 = vpop.f32.mrb[24].mxu0 }
 0x4a9   : > { %v4605_v41 = vpop.f32.mrb[25].mxu0  ;;  %v4775_v18 = vpop.f32.mrb[24].mxu1 }
 0x4aa   : > { %v4606_v47 = vpop.f32.mrb[26].mxu0  ;;  %v9252_v19 = vadd.f32 %v4775_v18, %v4603_v15  ;;  %v4777_v42 = vpop.f32.mrb[25].mxu1 }
 0x4ab   : > { %v4608_v39 = vpop.f32.mrb[27].mxu0  ;;  %v4778_v23 = vpop.f32.mrb[26].mxu1 }
 0x4ac   : > { %v9254_v20 = vadd.f32 %v4778_v23, %v4606_v47  ;;  %v4780_v17 = vpop.f32.mrb[27].mxu1 }
 0x4b0   : > { %v4611_v32 = vpop.f32.mrb[28].mxu0 }
 0x4b1   : > { %v4613_v61 = vpop.f32.mrb[29].mxu0  ;;  %v4783_v63 = vpop.f32.mrb[28].mxu1 }
 0x4b2   : > { %v4614_v56 = vpop.f32.mrb[30].mxu0  ;;  %v9256_v57 = vadd.f32 %v4783_v63, %v4611_v32  ;;  %v4785_v59 = vpop.f32.mrb[29].mxu1 }
 0x4b3   : > { %v4616_v24 = vpop.f32.mrb[31].mxu0  ;;  %v4786_v46 = vpop.f32.mrb[30].mxu1 }
 0x4b4   : > { %v9258_v33 = vadd.f32 %v4786_v46, %v4614_v56  ;;  %v4788_v43 = vpop.f32.mrb[31].mxu1 }
 0x4b8   : > { %v4619_v13 = vpop.f32.mrb[32].mxu0 }
 0x4b9   : > { %v4621_v10 = vpop.f32.mrb[33].mxu0  ;;  %v4791_v26 = vpop.f32.mrb[32].mxu1 }
 0x4ba   : > { %v4622_v34 = vpop.f32.mrb[34].mxu0  ;;  %v9260_v49 = vadd.f32 %v4791_v26, %v4619_v13  ;;  %v4793_v62 = vpop.f32.mrb[33].mxu1 }
 0x4bb   : > { %v4624_v50 = vpop.f32.mrb[35].mxu0  ;;  %v4794_v21 = vpop.f32.mrb[34].mxu1 }
 0x4bc   : > { %v9262_v12 = vadd.f32 %v4794_v21, %v4622_v34  ;;  %v4796_v22 = vpop.f32.mrb[35].mxu1 }
 0x4bd   : > { %v9276_v22 = vld [vmem:[%s9433_s11] ss:$0 sm:$0xff] }
 0x4c0   : > { %v4627_v58 = vpop.f32.mrb[36].mxu0 }
 0x4c1   : > { %v4629_v54 = vpop.f32.mrb[37].mxu0  ;;  %v4799_v48 = vpop.f32.mrb[36].mxu1 }
 0x4c2   : > { %v4630_v45 = vpop.f32.mrb[38].mxu0  ;;  %v4800_v30 = vadd.f32 %v4799_v48, %v4627_v58  ;;  %v4801_v35 = vpop.f32.mrb[37].mxu1 }
 0x4c3   : > { %v4632_v6 = vpop.f32.mrb[39].mxu0  ;;  %v4802_v36 = vpop.f32.mrb[38].mxu1 }
 0x4c4   : > { %v4803_v60 = vadd.f32 %v4802_v36, %v4630_v45  ;;  %v4804_v51 = vpop.f32.mrb[39].mxu1 }
 0x4c8   : > { %v4635_v37 = vpop.f32.mrb[40].mxu0 }
 0x4c9   : > { %v4637_v44 = vpop.f32.mrb[41].mxu0  ;;  %v4807_v53 = vpop.f32.mrb[40].mxu1 }
 0x4ca   : > { %v4638_v1 = vpop.f32.mrb[42].mxu0  ;;  %v4808_v40 = vadd.f32 %v4807_v53, %v4635_v37  ;;  %v4809_v7 = vpop.f32.mrb[41].mxu1 }
 0x4cb   : > { %v4640_v52 = vpop.f32.mrb[43].mxu0  ;;  %v4810_v15 = vpop.f32.mrb[42].mxu1 }
 0x4cc   : > { %v4811_v41 = vadd.f32 %v4810_v15, %v4638_v1  ;;  %v4812_v18 = vpop.f32.mrb[43].mxu1 }
 0x4d0   : > { %v4643_v47 = vpop.f32.mrb[44].mxu0 }
 0x4d1   : > { %v4645_v42 = vpop.f32.mrb[45].mxu0  ;;  %v4815_v39 = vpop.f32.mrb[44].mxu1 }
 0x4d2   : > { %v4646_v23 = vpop.f32.mrb[46].mxu0  ;;  %v9264_v17 = vadd.f32 %v4815_v39, %v4643_v47  ;;  %v4817_v32 = vpop.f32.mrb[45].mxu1 }
 0x4d3   : > { %v4648_v61 = vpop.f32.mrb[47].mxu0  ;;  %v4818_v63 = vpop.f32.mrb[46].mxu1 }
 0x4d4   : > { %v9266_v56 = vadd.f32 %v4818_v63, %v4646_v23  ;;  %v4820_v59 = vpop.f32.mrb[47].mxu1 }
 0x4d8   : > { %v4651_v24 = vpop.f32.mrb[48].mxu0 }
 0x4d9   : > { %v4653_v46 = vpop.f32.mrb[49].mxu0  ;;  %v4823_v43 = vpop.f32.mrb[48].mxu1 }
 0x4da   : > { %v4654_v13 = vpop.f32.mrb[50].mxu0  ;;  %v9268_v10 = vadd.f32 %v4823_v43, %v4651_v24  ;;  %v4825_v26 = vpop.f32.mrb[49].mxu1 }
 0x4db   : > { %v4656_v34 = vpop.f32.mrb[51].mxu0  ;;  %v4826_v62 = vpop.f32.mrb[50].mxu1 }
 0x4dc   : > { %v9270_v50 = vadd.f32 %v4826_v62, %v4654_v13  ;;  %v4828_v21 = vpop.f32.mrb[51].mxu1 }
 0x4e0   : > { %v4988_v58 = vpop.f32.mrb[52].mxu0 }
 0x4e1   : > { %v5051_v54 = vadd.f32 %v4988_v58, %v9248_v31  ;;  %v4990_v48 = vpop.f32.mrb[53].mxu0  ;;  %v5020_v45 = vpop.f32.mrb[52].mxu1 }
 0x4e2   : > { %v4991_v35 = vpop.f32.mrb[54].mxu0  ;;  %v5059_v6 = vadd.f32 %v5020_v45, %v4800_v30  ;;  %v5022_v36 = vpop.f32.mrb[53].mxu1 }
 0x4e3   : > { %v5073_v51 = vadd.f32 %v9276_v22, %v5051_v54  ;;  %v5052_v37 = vadd.f32 %v4991_v35, %v9250_v16  ;;  %v4993_v44 = vpop.f32.mrb[55].mxu0  ;;  %v5023_v53 = vpop.f32.mrb[54].mxu1 }
 0x4e4   : > { %v5081_v1 = vadd.f32 %v9276_v22, %v5059_v6  ;;  %v5060_v7 = vadd.f32 %v5023_v53, %v4803_v60  ;;  %v5025_v52 = vpop.f32.mrb[55].mxu1 }
 0x4e5   : > { %v5089_v15 = vadd.f32 %v5073_v51, %v8494_v11  ;;  %v5074_v18 = vadd.f32 %v9276_v22, %v5052_v37 }
 0x4e6   : > { %v5097_v31 = vadd.f32 %v5081_v1, %v8577_v4  ;;  %v5082_v47 = vadd.f32 %v9276_v22, %v5060_v7 }
 0x4e7   : > { %5105 = vst.msk [vmem:[%s9288_s13] sm:$0xff] %vm2141_vm6, %v5089_v15  ;;  %v5090_v16 = vadd.f32 %v5074_v18, %v8503_v28 }
 0x4e8   : > { %5113 = vst.msk [vmem:[%s9288_s13 + $0x40] sm:$0xff] %vm2141_vm6, %v5097_v31  ;;  %v5098_v11 = vadd.f32 %v5082_v47, %v8592_v29  ;;  %v4996_v30 = vpop.f32.mrb[56].mxu0 }
 0x4e9   : > { %5106 = vst.msk [vmem:[%s9288_s13 + $0x8] sm:$0xff] %vm2141_vm6, %v5090_v16  ;;  %v5053_v4 = vadd.f32 %v4996_v30, %v9252_v19  ;;  %v4998_v60 = vpop.f32.mrb[57].mxu0  ;;  %v5028_v42 = vpop.f32.mrb[56].mxu1 }
 0x4ea   : > { %5114 = vst.msk [vmem:[%s9288_s13 + $0x48] sm:$0xff] %vm2141_vm6, %v5098_v11  ;;  %v4999_v39 = vpop.f32.mrb[58].mxu0  ;;  %v5061_v23 = vadd.f32 %v5028_v42, %v4808_v40  ;;  %v5030_v32 = vpop.f32.mrb[57].mxu1 }
 0x4eb   : > { %v5075_v28 = vadd.f32 %v9276_v22, %v5053_v4  ;;  %v5054_v61 = vadd.f32 %v4999_v39, %v9254_v20  ;;  %v5001_v29 = vpop.f32.mrb[59].mxu0  ;;  %v5031_v63 = vpop.f32.mrb[58].mxu1 }
 0x4ec   : > { %v5083_v59 = vadd.f32 %v9276_v22, %v5061_v23  ;;  %v5062_v19 = vadd.f32 %v5031_v63, %v4811_v41  ;;  %v5033_v24 = vpop.f32.mrb[59].mxu1 }
 0x4ed   : > { %v5091_v46 = vadd.f32 %v5075_v28, %v8529_v55  ;;  %v5076_v43 = vadd.f32 %v9276_v22, %v5054_v61 }
 0x4ee   : > { %v5099_v13 = vadd.f32 %v5083_v59, %v8620_v5  ;;  %v5084_v40 = vadd.f32 %v9276_v22, %v5062_v19 }
 0x4ef   : > { %5107 = vst.msk [vmem:[%s9288_s13 + $0x10] sm:$0xff] %vm2141_vm6, %v5091_v46  ;;  %v5092_v26 = vadd.f32 %v5076_v43, %v8547_v8 }
 0x4f0   : > { %5115 = vst.msk [vmem:[%s9288_s13 + $0x50] sm:$0xff] %vm2141_vm6, %v5099_v13  ;;  %v5100_v20 = vadd.f32 %v5084_v40, %v8643_v3  ;;  %v5004_v34 = vpop.f32.mrb[60].mxu0 }
 0x4f1   : > { %5108 = vst.msk [vmem:[%s9288_s13 + $0x18] sm:$0xff] %vm2141_vm6, %v5092_v26  ;;  %v5055_v41 = vadd.f32 %v5004_v34, %v9256_v57  ;;  %v5006_v55 = vpop.f32.mrb[61].mxu0  ;;  %v5036_v62 = vpop.f32.mrb[60].mxu1 }
 0x4f2   : > { %5116 = vst.msk [vmem:[%s9288_s13 + $0x58] sm:$0xff] %vm2141_vm6, %v5100_v20  ;;  %v5007_v5 = vpop.f32.mrb[62].mxu0  ;;  %v5063_v21 = vadd.f32 %v5036_v62, %v9264_v17  ;;  %v5038_v58 = vpop.f32.mrb[61].mxu1 }
 0x4f3   : > { %v5077_v8 = vadd.f32 %v9276_v22, %v5055_v41  ;;  %v5056_v3 = vadd.f32 %v5007_v5, %v9258_v33  ;;  %v5009_v54 = vpop.f32.mrb[63].mxu0  ;;  %v5039_v48 = vpop.f32.mrb[62].mxu1 }
 0x4f4   : > { %v5085_v57 = vadd.f32 %v9276_v22, %v5063_v21  ;;  %v5064_v45 = vadd.f32 %v5039_v48, %v9266_v56  ;;  %v5041_v35 = vpop.f32.mrb[63].mxu1 }
 0x4f5   : > { %v5093_v6 = vadd.f32 %v5077_v8, %v8518_v9  ;;  %v5078_v36 = vadd.f32 %v9276_v22, %v5056_v3 }
 0x4f6   : > { %v5101_v17 = vadd.f32 %v5085_v57, %v8616_v27  ;;  %v5086_v51 = vadd.f32 %v9276_v22, %v5064_v45 }
 0x4f7   : > { %5109 = vst.msk [vmem:[%s9288_s13 + $0x20] sm:$0xff] %vm2141_vm6, %v5093_v6  ;;  %v5094_v33 = vadd.f32 %v5078_v36, %v8539_v38 }
 0x4f8   : > { %5117 = vst.msk [vmem:[%s9288_s13 + $0x60] sm:$0xff] %vm2141_vm6, %v5101_v17  ;;  %v5102_v56 = vadd.f32 %v5086_v51, %v8631_v25  ;;  %v5012_v37 = vpop.f32.mrb[64].mxu0 }
 0x4f9   : > { %5110 = vst.msk [vmem:[%s9288_s13 + $0x28] sm:$0xff] %vm2141_vm6, %v5094_v33  ;;  %v5057_v9 = vadd.f32 %v5012_v37, %v9260_v49  ;;  %v5014_v27 = vpop.f32.mrb[65].mxu0 }
 0x4fa   : > { %5118 = vst.msk [vmem:[%s9288_s13 + $0x68] sm:$0xff] %vm2141_vm6, %v5102_v56  ;;  %v5015_v44 = vpop.f32.mrb[66].mxu0 }
 0x4fb   : > { %v5079_v53 = vadd.f32 %v9276_v22, %v5057_v9  ;;  %v5058_v38 = vadd.f32 %v5015_v44, %v9262_v12  ;;  %v5017_v1 = vpop.f32.mrb[67].mxu0 }
 0x4fd   : > { %v5095_v7 = vadd.f32 %v5079_v53, %v8581_v0  ;;  %v5080_v25 = vadd.f32 %v9276_v22, %v5058_v38 }
 0x4ff   : > { %5111 = vst.msk [vmem:[%s9288_s13 + $0x30] sm:$0xff] %vm2141_vm6, %v5095_v7  ;;  %v5096_v52 = vadd.f32 %v5080_v25, %v8604_v14 }
 0x501   : > { %5112 = vst.msk [vmem:[%s9288_s13 + $0x38] sm:$0xff] %vm2141_vm6, %v5096_v52 }
 0x52b   : > { %v5044_v49 = vpop.f32.mrb[64].mxu1 }
 0x52c   : > { %v5065_v12 = vadd.f32 %v5044_v49, %v9268_v10  ;;  %v5046_v15 = vpop.f32.mrb[65].mxu1  ;;  %v9615_v10 = vld [vmem:[#allocation14_spill] sm:$0xff] }
 0x52d   : > { %v5047_v0 = vpop.f32.mrb[66].mxu1 }
 0x52e   : > { %v5087_v18 = vadd.f32 %v9276_v22, %v5065_v12  ;;  %v5066_v31 = vadd.f32 %v5047_v0, %v9270_v50  ;;  %v5049_v47 = vpop.f32.mrb[67].mxu1 }
 0x530   : > { %v5103_v14 = vadd.f32 %v5087_v18, %v8656_v2  ;;  %v5088_v16 = vadd.f32 %v9276_v22, %v5066_v31 }
 0x532   : > { %5119 = vst.msk [vmem:[%s9288_s13 + $0x70] sm:$0xff] %vm2141_vm6, %v5103_v14  ;;  %v5104_v50 = vadd.f32 %v5088_v16, %v9615_v10 }
 0x534   : > { %5120 = vst.msk [vmem:[%s9288_s13 + $0x78] sm:$0xff] %vm2141_vm6, %v5104_v50 }
 0x535   : > { %6581 = shalt.err (!%p6578_p0)
}
 0x536   : > { %s6582_s27 = scalar_lea.hbm %s9359_s17, 2048  ;;  %s6586_s13 = scalar_lea.hbm %s9434_s12, 8192 }
 0x537   : > { %p6583_p1 = scmp.ne.s32.totalorder %s9359_s17, %s6582_s27  ;;  %p6587_p5 = scmp.lt.u32.totalorder %s9359_s17, %s9434_s12 }
 0x538   : > { %p6588_p6 = scmp.lt.u32.totalorder %s6586_s13, %s6582_s27  ;;  %p6590_p9 = scmp.lt.u32.totalorder %s6582_s27, %s9359_s17 }
 0x539   : > { %p6584_p2 = pnand %p6583_p1, %p6786_p3 }
 0x53a   : > { %p6589_p7 = por %p6588_p6, %p6587_p5 }
 0x53b   : > { %p6585_p4 = pneg %p6584_p2 }
 0x53c   : > { %p6591_p10 = por %p6590_p9, %p6589_p7 }
 0x53e   : > { %p6592_p11 = pnand %p6591_p10, %p6585_p4 }
 0x540   : > { %6595 = shalt.err (!%p6592_p11)
}
 0x541   : > { %s6668_s4 = smov 128   ;;  %s6669_s0 = smov 8  }
 0x542   : > { %6043 = dma.vmem_to_hbm [thread:$0]  (%p6786_p3), %s9361_s3, 2048, %s9359_s17, %s9370_s19, %s6668_s4, %s6668_s4, %s6669_s0  }
 0x543 PF: > { %p6049_p12 = scmp.ge.s32.totalorder %s6662_s28, 2  ;;  %s5153_s25 = sand.u32 1, %s6634_s21  }
 0x544   : > { %s5154_s29 = scalar_lea.sflag [#allocation3], %s5153_s25 }
 0x545   : > { %p6046_p13 = pnand %p6049_p12, %p6795_p8 }
 0x547   : > { %6629 = dma.done.wait (!%p6046_p13), %s5154_s29, 2048  }
 0x548   : > { %6631 = vsyncadd (!%p6046_p13), %s5154_s29, 4294965248  ;;  %s25_s28 = sadd.s32 1, %s6662_s28   ;;  %s9617_s18 = sld [smem:[#allocation5_spill]] }
 0x549   : > { %p22_p0 = scmp.ge.s32.totalorder %s25_s28, 6   ;;  %s9618_s23 = sld [smem:[#allocation11_spill]] }
 0x54a   : > { %s9619_s24 = sld [smem:[#allocation6_spill]]  ;;  %s9620_s25 = sld [smem:[#allocation7_spill]] }
 0x54b   : > { %s9621_s26 = sld [smem:[#allocation8_spill]]  ;;  %s9622_s27 = sld [smem:[#allocation9_spill]] }
 0x54c   : > { %s9623_s21 = smov %s6638_s22  ;;  %24 = sbr.rel (!%p22_p0) target bundleno = 9 (0x9), region = 124 }
 0x54e   : > { %s9624_s22 = smov %s9617_s18 }
 0x553   :  { %5159 = vsyncpa [#allocation3], 1 }
 0x554   :  { %5161 = vsyncpa [#allocation3 + $0x1], 1 }

</bundles_post_ra>
